<compile_context>
chip_gen: v6e
topology: v6e:2x2x1
jax: 0.10.0
libtpu: 0.0.40
codegen_flags: <defaults>
</compile_context>

<pallas_src>
import jax
import jax.numpy as jnp
from jax.experimental import pallas as pl
from jax.experimental.pallas import tpu as pltpu


def _round_up(x, m):
    return (x + m - 1) // m * m


# ----------------------------------------------------------------------------
# Backbone kernel: 3x3 "SAME" conv + bias + ReLU + global-average-pool (raw sums).
#   Grid: (n_pad // NB,)  -- batch tiles, "parallel" (no cross-step dependency).
#   x_ref     : (NB, H+2, W+2, cin_p) bf16   zero-padded NHWC image tile
#   wc_ref    : (9*cin_p, cout_p)     bf16   conv weight, tap-major im2col layout
#   bc_ref    : (1, cout_p)           f32
#   pooled_ref: (NB, cout_p)          f32    raw pooled sums (scaled in head)
#   patch_scr : (NB*H*W, 9*cin_p)     bf16   VMEM im2col scratch
# ----------------------------------------------------------------------------
def _backbone_kernel(x_ref, wc_ref, bc_ref, pooled_ref, patch_scr):
    NB = x_ref.shape[0]
    H = x_ref.shape[1] - 2
    W = x_ref.shape[2] - 2
    cin_p = x_ref.shape[3]

    xt = x_ref[...]                                       # (NB, H+2, W+2, cin_p) bf16

    # im2col via direct static-offset stores into a preallocated VMEM scratch
    # (replaces the previous 9x slice -> reshape -> concatenate relayout chain).
    # TODO(synk): for realistic image sizes (224x224) add a spatial row-block grid
    # axis and accumulate pooled sums incrementally so the conv slab stays in VMEM.
    for kh in range(3):
        for kw in range(3):
            t = kh * 3 + kw
            col = xt[:, kh:kh + H, kw:kw + W, :].reshape(NB * H * W, cin_p)
            patch_scr[:, t * cin_p:(t + 1) * cin_p] = col

    conv = jnp.dot(patch_scr[...], wc_ref[...],
                   preferred_element_type=jnp.float32)    # (NB*H*W, cout_p) f32
    conv = jnp.maximum(conv + bc_ref[...], 0.0)           # bias + ReLU (f32, VPU)

    # Global average pool: raw sums only (single 1/(H*W) scale done in the head).
    pooled_ref[...] = jnp.sum(conv.reshape(NB, H * W, conv.shape[-1]), axis=1)


# ----------------------------------------------------------------------------
# Head kernel: bottleneck Linear + BatchNorm1d (training batch stats) + ReLU + fc.
#   Single grid step over the full (unpadded) batch.
#   fb_ref : (N, cout_p) f32 raw pooled sums ; w1 (cout_p, d_p) bf16 ;
#   b1/g/beta (1, d_p) f32 ; w2 (d_p, k_p) bf16 ; b2 (1, k_p) f32
#   outputs: f (N, d_p) f32 , logits (N, k_p) f32
# ----------------------------------------------------------------------------
def _make_head_kernel(inv_hw, eps=1e-5):
    def _head_kernel(fb_ref, w1_ref, b1_ref, g_ref, beta_ref, w2_ref, b2_ref,
                     f_ref, logits_ref):
        # Apply the pooling scale once (exact: inv_hw is a power of two here).
        fb = (fb_ref[...] * inv_hw).astype(jnp.bfloat16)           # (N, cout_p)
        z = jnp.dot(fb, w1_ref[...],
                    preferred_element_type=jnp.float32) + b1_ref[...]
        # BatchNorm1d training mode: biased batch statistics over the batch dim (f32).
        mu = jnp.mean(z, axis=0, keepdims=True)
        var = jnp.mean((z - mu) ** 2, axis=0, keepdims=True)
        zn = (z - mu) * jax.lax.rsqrt(var + eps) * g_ref[...] + beta_ref[...]
        f = jnp.maximum(zn, 0.0)                                   # ReLU
        f_ref[...] = f
        logits_ref[...] = (jnp.dot(f.astype(jnp.bfloat16), w2_ref[...],
                                   preferred_element_type=jnp.float32)
                           + b2_ref[...])
    return _head_kernel


# ----------------------------------------------------------------------------
# Parameters (natural PyTorch-like shapes; padding/casting done in the wrapper)
# ----------------------------------------------------------------------------
def init_params(key, cin, cout, bottleneck_dim, n_classes):
    ks = jax.random.split(key, 6)
    return {
        # conv weight in (kh, kw, Cin, Cout) layout
        "conv_w": jax.random.normal(ks[0], (3, 3, cin, cout), jnp.float32) * 0.1,
        "conv_b": jax.random.normal(ks[1], (1, cout), jnp.float32) * 0.01,
        "fc1_w": jax.random.normal(ks[2], (cout, bottleneck_dim), jnp.float32) * 0.1,
        "fc1_b": jax.random.normal(ks[3], (1, bottleneck_dim), jnp.float32) * 0.01,
        # BatchNorm1d affine params (PyTorch defaults: gamma=1, beta=0)
        "bn_g": jnp.ones((1, bottleneck_dim), jnp.float32),
        "bn_b": jnp.zeros((1, bottleneck_dim), jnp.float32),
        "fc2_w": jax.random.normal(ks[4], (bottleneck_dim, n_classes), jnp.float32) * 0.1,
        "fc2_b": jax.random.normal(ks[5], (1, n_classes), jnp.float32) * 0.01,
    }


# ----------------------------------------------------------------------------
# Wrapper: layout prep (NCHW -> padded NHWC bf16, padded weights) + 2 pallas_calls
# ----------------------------------------------------------------------------
def tlib_classifier_cdan_forward(x_nchw, params):
    x = jnp.transpose(x_nchw, (0, 2, 3, 1)).astype(jnp.float32)   # NHWC
    N, H, W, Cin = x.shape
    Cout = params["conv_w"].shape[-1]
    D = params["fc1_w"].shape[-1]
    K = params["fc2_w"].shape[-1]

    LANE = 128
    PACK_BF16 = 16                          # bf16 sublane pack
    cin_p = _round_up(Cin, PACK_BF16)       # contraction slice, bf16-pack friendly
    cout_p = _round_up(Cout, LANE)          # lane-dense feature width
    d_p = _round_up(D, LANE)                # lane-dense bottleneck width
    k_p = _round_up(K, LANE)                # lane-dense logits width

    # Batch tile: several images per grid step to amortize per-step overhead.
    NB = 8 if N >= 8 else N
    n_pad = _round_up(N, NB)

    # Single fused producer: transpose + spatial zero-pad (pad=1 conv) + channel
    # pad + batch pad + bf16 cast. No HBM im2col is materialized.
    xp = jnp.pad(x, ((0, n_pad - N), (1, 1), (1, 1), (0, cin_p - Cin))
                 ).astype(jnp.bfloat16)

    # Conv weight -> tap-major im2col layout (9*cin_p, cout_p), zero-padded, bf16.
    wc = jnp.pad(params["conv_w"],
                 ((0, 0), (0, 0), (0, cin_p - Cin), (0, cout_p - Cout)))
    wc = wc.reshape(9 * cin_p, cout_p).astype(jnp.bfloat16)
    bc = jnp.pad(params["conv_b"], ((0, 0), (0, cout_p - Cout)))          # f32

    bb_flops = 2 * n_pad * H * W * (9 * cin_p) * cout_p
    bb_bytes = xp.size * 2 + wc.size * 2 + bc.size * 4 + n_pad * cout_p * 4

    pooled = pl.pallas_call(
        _backbone_kernel,
        out_shape=jax.ShapeDtypeStruct((n_pad, cout_p), jnp.float32),
        grid=(n_pad // NB,),
        in_specs=[
            pl.BlockSpec((NB, H + 2, W + 2, cin_p), lambda i: (i, 0, 0, 0)),
            pl.BlockSpec((9 * cin_p, cout_p), lambda i: (0, 0)),
            pl.BlockSpec((1, cout_p), lambda i: (0, 0)),
        ],
        out_specs=pl.BlockSpec((NB, cout_p), lambda i: (i, 0)),
        scratch_shapes=[pltpu.VMEM((NB * H * W, 9 * cin_p), jnp.bfloat16)],
        compiler_params=pltpu.CompilerParams(
            # Each batch tile is independent -> usable by both v7x TensorCores.
            dimension_semantics=("parallel",),
            vmem_limit_bytes=48 * 1024 * 1024,
        ),
        cost_estimate=pl.CostEstimate(flops=bb_flops, transcendentals=0,
                                      bytes_accessed=bb_bytes),
    )(xp, wc, bc)

    # Drop padded batch rows BEFORE the head so BN batch stats see exactly N rows.
    pooled = pooled[:N]

    w1 = jnp.pad(params["fc1_w"],
                 ((0, cout_p - Cout), (0, d_p - D))).astype(jnp.bfloat16)
    b1 = jnp.pad(params["fc1_b"], ((0, 0), (0, d_p - D)))
    g = jnp.pad(params["bn_g"], ((0, 0), (0, d_p - D)))
    be = jnp.pad(params["bn_b"], ((0, 0), (0, d_p - D)))
    w2 = jnp.pad(params["fc2_w"],
                 ((0, d_p - D), (0, k_p - K))).astype(jnp.bfloat16)
    b2 = jnp.pad(params["fc2_b"], ((0, 0), (0, k_p - K)))

    full2d = lambda i: (0, 0)
    head_flops = 2 * N * cout_p * d_p + 2 * N * d_p * k_p
    head_bytes = (N * cout_p * 4 + w1.size * 2 + w2.size * 2
                  + (b1.size + g.size + be.size + b2.size) * 4
                  + N * (d_p + k_p) * 4)

    f_pad, logits_pad = pl.pallas_call(
        _make_head_kernel(1.0 / float(H * W)),
        out_shape=(jax.ShapeDtypeStruct((N, d_p), jnp.float32),
                   jax.ShapeDtypeStruct((N, k_p), jnp.float32)),
        grid=(1,),
        in_specs=[
            pl.BlockSpec((N, cout_p), full2d),
            pl.BlockSpec((cout_p, d_p), full2d),
            pl.BlockSpec((1, d_p), full2d),
            pl.BlockSpec((1, d_p), full2d),
            pl.BlockSpec((1, d_p), full2d),
            pl.BlockSpec((d_p, k_p), full2d),
            pl.BlockSpec((1, k_p), full2d),
        ],
        out_specs=(pl.BlockSpec((N, d_p), full2d),
                   pl.BlockSpec((N, k_p), full2d)),
        compiler_params=pltpu.CompilerParams(
            dimension_semantics=("arbitrary",)),
        cost_estimate=pl.CostEstimate(flops=head_flops, transcendentals=d_p,
                                      bytes_accessed=head_bytes),
    )(pooled, w1, b1, g, be, w2, b2)

    # Slice off lane padding; CDAN training-mode output is (predictions, features).
    return logits_pad[:, :K], f_pad[:, :D]


# ----------------------------------------------------------------------------
# Pure-JAX reference mirroring the kernel's precision (bf16 MXU operands,
# f32 accumulation / BN math) for a correctness check.
# ----------------------------------------------------------------------------
def _reference_forward(x_nchw, params):
    x = jnp.transpose(x_nchw, (0, 2, 3, 1)).astype(jnp.float32)
    conv = jax.lax.conv_general_dilated(
        x.astype(jnp.bfloat16), params["conv_w"].astype(jnp.bfloat16),
        window_strides=(1, 1), padding="SAME",
        dimension_numbers=("NHWC", "HWIO", "NHWC"),
        preferred_element_type=jnp.float32)
    conv = jnp.maximum(conv + params["conv_b"].reshape(1, 1, 1, -1), 0.0)
    fb = jnp.mean(conv, axis=(1, 2))
    z = jnp.dot(fb.astype(jnp.bfloat16), params["fc1_w"].astype(jnp.bfloat16),
                preferred_element_type=jnp.float32) + params["fc1_b"]
    mu = jnp.mean(z, axis=0, keepdims=True)
    var = jnp.mean((z - mu) ** 2, axis=0, keepdims=True)
    f = jnp.maximum((z - mu) * jax.lax.rsqrt(var + 1e-5) * params["bn_g"]
                    + params["bn_b"], 0.0)
    logits = jnp.dot(f.astype(jnp.bfloat16), params["fc2_w"].astype(jnp.bfloat16),
                     preferred_element_type=jnp.float32) + params["fc2_b"]
    return logits, f


if __name__ == "__main__":
    # Small shapes consistent with the module's forward:
    #   x: (batch=2, channels=4, H=16, W=16), backbone out_features=32,
    #   bottleneck_dim=32, n_classes=8.
    key = jax.random.PRNGKey(0)
    k_x, k_p = jax.random.split(key)
    x = jax.random.normal(k_x, (2, 4, 16, 16), jnp.float32)   # NCHW
    params = init_params(k_p, cin=4, cout=32, bottleneck_dim=32, n_classes=8)

    fwd = jax.jit(tlib_classifier_cdan_forward)
    logits, f = fwd(x, params)
    jax.block_until_ready((logits, f))

    assert logits.shape == (2, 8) and f.shape == (2, 32)
    assert bool(jnp.all(jnp.isfinite(logits))) and bool(jnp.all(jnp.isfinite(f)))

    ref_logits, ref_f = _reference_forward(x, params)
    err_l = float(jnp.max(jnp.abs(logits - ref_logits)))
    err_f = float(jnp.max(jnp.abs(f - ref_f)))
    # bf16-MXU tolerance (kernel and reference use matching bf16 operand casts).
    assert err_l < 5e-2 and err_f < 5e-2, (err_l, err_f)

    print("KERNEL_OK")
</pallas_src>

<mosaic_0001>
module attributes {stable_mosaic.version = 11 : i64} {
  func.func @_head_kernel(%arg0: i32, %arg1: memref<2x128xf32, #tpu.memory_space<vmem>>, %arg2: memref<128x128xbf16, #tpu.memory_space<vmem>>, %arg3: memref<1x128xf32, #tpu.memory_space<vmem>>, %arg4: memref<1x128xf32, #tpu.memory_space<vmem>>, %arg5: memref<1x128xf32, #tpu.memory_space<vmem>>, %arg6: memref<128x128xbf16, #tpu.memory_space<vmem>>, %arg7: memref<1x128xf32, #tpu.memory_space<vmem>>, %arg8: memref<2x128xf32, #tpu.memory_space<vmem>>, %arg9: memref<2x128xf32, #tpu.memory_space<vmem>>) attributes {dimension_semantics = [#tpu.dimension_semantics<arbitrary>], iteration_bounds = array<i64: 1>, scalar_prefetch = 0 : i64, scratch_operands = 0 : i64, tpu.core_type = #tpu.core_type<tc>, window_params = [{pipeline_mode = #tpu.pipeline_mode<synchronous>, transform_indices = @transform_0, window_bounds = array<i64: 2, 128>}, {pipeline_mode = #tpu.pipeline_mode<synchronous>, transform_indices = @transform_1, window_bounds = array<i64: 128, 128>}, {pipeline_mode = #tpu.pipeline_mode<synchronous>, transform_indices = @transform_2, window_bounds = array<i64: 1, 128>}, {pipeline_mode = #tpu.pipeline_mode<synchronous>, transform_indices = @transform_3, window_bounds = array<i64: 1, 128>}, {pipeline_mode = #tpu.pipeline_mode<synchronous>, transform_indices = @transform_4, window_bounds = array<i64: 1, 128>}, {pipeline_mode = #tpu.pipeline_mode<synchronous>, transform_indices = @transform_5, window_bounds = array<i64: 128, 128>}, {pipeline_mode = #tpu.pipeline_mode<synchronous>, transform_indices = @transform_6, window_bounds = array<i64: 1, 128>}, {pipeline_mode = #tpu.pipeline_mode<synchronous>, transform_indices = @transform_7, window_bounds = array<i64: 2, 128>}, {pipeline_mode = #tpu.pipeline_mode<synchronous>, transform_indices = @transform_8, window_bounds = array<i64: 2, 128>}]} {
    %c0 = arith.constant 0 : index
    %c0_0 = arith.constant 0 : index
    %0 = vector.load %arg1[%c0, %c0_0] : memref<2x128xf32, #tpu.memory_space<vmem>>, vector<2x128xf32>
    %cst = arith.constant 3.906250e-03 : f32
    %1 = vector.broadcast %cst : f32 to vector<2x128xf32>
    %2 = arith.mulf %0, %1 : vector<2x128xf32>
    %3 = arith.truncf %2 : vector<2x128xf32> to vector<2x128xbf16>
    %c0_1 = arith.constant 0 : index
    %c0_2 = arith.constant 0 : index
    %4 = vector.load %arg2[%c0_1, %c0_2] : memref<128x128xbf16, #tpu.memory_space<vmem>>, vector<128x128xbf16>
    %cst_3 = arith.constant dense<0.000000e+00> : vector<2x128xf32>
    %5 = tpu.matmul %3, %4, %cst_3 {dimension_numbers = #tpu.dot_dimension_numbers<[1], [0], [0], [1], [0, 0, 1, 1], [], []>} : vector<2x128xbf16>, vector<128x128xbf16>, vector<2x128xf32> -> vector<2x128xf32>
    %c0_4 = arith.constant 0 : index
    %c0_5 = arith.constant 0 : index
    %6 = vector.load %arg3[%c0_4, %c0_5] : memref<1x128xf32, #tpu.memory_space<vmem>>, vector<1x128xf32>
    %7 = vector.broadcast %6 : vector<1x128xf32> to vector<2x128xf32>
    %8 = arith.addf %5, %7 : vector<2x128xf32>
    %cst_6 = arith.constant dense<0.000000e+00> : vector<128xf32>
    %9 = vector.multi_reduction <add>, %8, %cst_6 [0] : vector<2x128xf32> to vector<128xf32>
    %10 = vector.shape_cast %9 : vector<128xf32> to vector<1x128xf32>
    %cst_7 = arith.constant 2.000000e+00 : f32
    %11 = vector.broadcast %cst_7 : f32 to vector<1x128xf32>
    %12 = arith.divf %10, %11 : vector<1x128xf32>
    %13 = vector.broadcast %12 : vector<1x128xf32> to vector<2x128xf32>
    %14 = arith.subf %8, %13 : vector<2x128xf32>
    %15 = arith.mulf %14, %14 : vector<2x128xf32>
    %cst_8 = arith.constant dense<0.000000e+00> : vector<128xf32>
    %16 = vector.multi_reduction <add>, %15, %cst_8 [0] : vector<2x128xf32> to vector<128xf32>
    %17 = vector.shape_cast %16 : vector<128xf32> to vector<1x128xf32>
    %cst_9 = arith.constant 2.000000e+00 : f32
    %18 = vector.broadcast %cst_9 : f32 to vector<1x128xf32>
    %19 = arith.divf %17, %18 : vector<1x128xf32>
    %20 = vector.broadcast %12 : vector<1x128xf32> to vector<2x128xf32>
    %21 = arith.subf %8, %20 : vector<2x128xf32>
    %cst_10 = arith.constant 9.99999974E-6 : f32
    %22 = vector.broadcast %cst_10 : f32 to vector<1x128xf32>
    %23 = arith.addf %19, %22 : vector<1x128xf32>
    %24 = math.rsqrt %23 : vector<1x128xf32>
    %25 = vector.broadcast %24 : vector<1x128xf32> to vector<2x128xf32>
    %26 = arith.mulf %21, %25 : vector<2x128xf32>
    %c0_11 = arith.constant 0 : index
    %c0_12 = arith.constant 0 : index
    %27 = vector.load %arg4[%c0_11, %c0_12] : memref<1x128xf32, #tpu.memory_space<vmem>>, vector<1x128xf32>
    %28 = vector.broadcast %27 : vector<1x128xf32> to vector<2x128xf32>
    %29 = arith.mulf %26, %28 : vector<2x128xf32>
    %c0_13 = arith.constant 0 : index
    %c0_14 = arith.constant 0 : index
    %30 = vector.load %arg5[%c0_13, %c0_14] : memref<1x128xf32, #tpu.memory_space<vmem>>, vector<1x128xf32>
    %31 = vector.broadcast %30 : vector<1x128xf32> to vector<2x128xf32>
    %32 = arith.addf %29, %31 : vector<2x128xf32>
    %cst_15 = arith.constant 0.000000e+00 : f32
    %33 = vector.broadcast %cst_15 : f32 to vector<2x128xf32>
    %34 = arith.maximumf %32, %33 : vector<2x128xf32>
    %c0_16 = arith.constant 0 : index
    %c0_17 = arith.constant 0 : index
    %35 = vector.load %arg8[%c0_16, %c0_17] : memref<2x128xf32, #tpu.memory_space<vmem>>, vector<2x128xf32>
    tpu.vector_store %arg8[%c0_16, %c0_17], %34 {strides = array<i32>} : memref<2x128xf32, #tpu.memory_space<vmem>>, vector<2x128xf32>,
    %36 = arith.truncf %34 : vector<2x128xf32> to vector<2x128xbf16>
    %c0_18 = arith.constant 0 : index
    %c0_19 = arith.constant 0 : index
    %37 = vector.load %arg6[%c0_18, %c0_19] : memref<128x128xbf16, #tpu.memory_space<vmem>>, vector<128x128xbf16>
    %cst_20 = arith.constant dense<0.000000e+00> : vector<2x128xf32>
    %38 = tpu.matmul %36, %37, %cst_20 {dimension_numbers = #tpu.dot_dimension_numbers<[1], [0], [0], [1], [0, 0, 1, 1], [], []>} : vector<2x128xbf16>, vector<128x128xbf16>, vector<2x128xf32> -> vector<2x128xf32>
    %c0_21 = arith.constant 0 : index
    %c0_22 = arith.constant 0 : index
    %39 = vector.load %arg7[%c0_21, %c0_22] : memref<1x128xf32, #tpu.memory_space<vmem>>, vector<1x128xf32>
    %40 = vector.broadcast %39 : vector<1x128xf32> to vector<2x128xf32>
    %41 = arith.addf %38, %40 : vector<2x128xf32>
    %c0_23 = arith.constant 0 : index
    %c0_24 = arith.constant 0 : index
    %42 = vector.load %arg9[%c0_23, %c0_24] : memref<2x128xf32, #tpu.memory_space<vmem>>, vector<2x128xf32>
    tpu.vector_store %arg9[%c0_23, %c0_24], %41 {strides = array<i32>} : memref<2x128xf32, #tpu.memory_space<vmem>>, vector<2x128xf32>,
    return
  }
  func.func @transform_0(%arg0: i32) -> (i32, i32) {
    %c0_i32 = arith.constant 0 : i32
    %c0_i32_0 = arith.constant 0 : i32
    %c0_i32_1 = arith.constant 0 : i32
    return %c0_i32, %c0_i32_0 : i32, i32
  }
  func.func @transform_1(%arg0: i32) -> (i32, i32) {
    %c0_i32 = arith.constant 0 : i32
    %c0_i32_0 = arith.constant 0 : i32
    %c0_i32_1 = arith.constant 0 : i32
    return %c0_i32, %c0_i32_0 : i32, i32
  }
  func.func @transform_2(%arg0: i32) -> (i32, i32) {
    %c0_i32 = arith.constant 0 : i32
    %c0_i32_0 = arith.constant 0 : i32
    %c0_i32_1 = arith.constant 0 : i32
    return %c0_i32, %c0_i32_0 : i32, i32
  }
  func.func @transform_3(%arg0: i32) -> (i32, i32) {
    %c0_i32 = arith.constant 0 : i32
    %c0_i32_0 = arith.constant 0 : i32
    %c0_i32_1 = arith.constant 0 : i32
    return %c0_i32, %c0_i32_0 : i32, i32
  }
  func.func @transform_4(%arg0: i32) -> (i32, i32) {
    %c0_i32 = arith.constant 0 : i32
    %c0_i32_0 = arith.constant 0 : i32
    %c0_i32_1 = arith.constant 0 : i32
    return %c0_i32, %c0_i32_0 : i32, i32
  }
  func.func @transform_5(%arg0: i32) -> (i32, i32) {
    %c0_i32 = arith.constant 0 : i32
    %c0_i32_0 = arith.constant 0 : i32
    %c0_i32_1 = arith.constant 0 : i32
    return %c0_i32, %c0_i32_0 : i32, i32
  }
  func.func @transform_6(%arg0: i32) -> (i32, i32) {
    %c0_i32 = arith.constant 0 : i32
    %c0_i32_0 = arith.constant 0 : i32
    %c0_i32_1 = arith.constant 0 : i32
    return %c0_i32, %c0_i32_0 : i32, i32
  }
  func.func @transform_7(%arg0: i32) -> (i32, i32) {
    %c0_i32 = arith.constant 0 : i32
    %c0_i32_0 = arith.constant 0 : i32
    %c0_i32_1 = arith.constant 0 : i32
    return %c0_i32, %c0_i32_0 : i32, i32
  }
  func.func @transform_8(%arg0: i32) -> (i32, i32) {
    %c0_i32 = arith.constant 0 : i32
    %c0_i32_0 = arith.constant 0 : i32
    %c0_i32_1 = arith.constant 0 : i32
    return %c0_i32, %c0_i32_0 : i32, i32
  }
}

module attributes {stable_mosaic.version = 11 : i64} {
  func.func @_backbone_kernel(%arg0: i32, %arg1: memref<2x18x18x16xbf16, #tpu.memory_space<vmem>>, %arg2: memref<144x128xbf16, #tpu.memory_space<vmem>>, %arg3: memref<1x128xf32, #tpu.memory_space<vmem>>, %arg4: memref<2x128xf32, #tpu.memory_space<vmem>>, %arg5: memref<512x144xbf16, #tpu.memory_space<vmem>>) attributes {dimension_semantics = [#tpu.dimension_semantics<parallel>], iteration_bounds = array<i64: 1>, scalar_prefetch = 0 : i64, scratch_operands = 1 : i64, tpu.core_type = #tpu.core_type<tc>, window_params = [{transform_indices = @transform_0, window_bounds = array<i64: 2, 18, 18, 16>}, {pipeline_mode = #tpu.pipeline_mode<synchronous>, transform_indices = @transform_1, window_bounds = array<i64: 144, 128>}, {pipeline_mode = #tpu.pipeline_mode<synchronous>, transform_indices = @transform_2, window_bounds = array<i64: 1, 128>}, {transform_indices = @transform_3, window_bounds = array<i64: 2, 128>}]} {
    %c0 = arith.constant 0 : index
    %c0_0 = arith.constant 0 : index
    %c0_1 = arith.constant 0 : index
    %c0_2 = arith.constant 0 : index
    %0 = vector.load %arg1[%c0, %c0_0, %c0_1, %c0_2] : memref<2x18x18x16xbf16, #tpu.memory_space<vmem>>, vector<2x18x18x16xbf16>
    %1 = vector.extract_strided_slice %0 {offsets = [0, 0, 0, 0], sizes = [2, 16, 16, 16], strides = [1, 1, 1, 1]} : vector<2x18x18x16xbf16> to vector<2x16x16x16xbf16>
    %2 = vector.shape_cast %1 : vector<2x16x16x16xbf16> to vector<512x16xbf16>
    %c0_3 = arith.constant 0 : index
    %c0_4 = arith.constant 0 : index
    %3 = vector.load %arg5[%c0_3, %c0_4] : memref<512x144xbf16, #tpu.memory_space<vmem>>, vector<512x16xbf16>
    tpu.vector_store %arg5[%c0_3, %c0_4], %2 {strides = array<i32>} : memref<512x144xbf16, #tpu.memory_space<vmem>>, vector<512x16xbf16>,
    %4 = vector.extract_strided_slice %0 {offsets = [0, 0, 1, 0], sizes = [2, 16, 16, 16], strides = [1, 1, 1, 1]} : vector<2x18x18x16xbf16> to vector<2x16x16x16xbf16>
    %5 = vector.shape_cast %4 : vector<2x16x16x16xbf16> to vector<512x16xbf16>
    %c0_5 = arith.constant 0 : index
    %c16 = arith.constant 16 : index
    %6 = vector.load %arg5[%c0_5, %c16] : memref<512x144xbf16, #tpu.memory_space<vmem>>, vector<512x16xbf16>
    tpu.vector_store %arg5[%c0_5, %c16], %5 {strides = array<i32>} : memref<512x144xbf16, #tpu.memory_space<vmem>>, vector<512x16xbf16>,
    %7 = vector.extract_strided_slice %0 {offsets = [0, 0, 2, 0], sizes = [2, 16, 16, 16], strides = [1, 1, 1, 1]} : vector<2x18x18x16xbf16> to vector<2x16x16x16xbf16>
    %8 = vector.shape_cast %7 : vector<2x16x16x16xbf16> to vector<512x16xbf16>
    %c0_6 = arith.constant 0 : index
    %c32 = arith.constant 32 : index
    %9 = vector.load %arg5[%c0_6, %c32] : memref<512x144xbf16, #tpu.memory_space<vmem>>, vector<512x16xbf16>
    tpu.vector_store %arg5[%c0_6, %c32], %8 {strides = array<i32>} : memref<512x144xbf16, #tpu.memory_space<vmem>>, vector<512x16xbf16>,
    %10 = vector.extract_strided_slice %0 {offsets = [0, 1, 0, 0], sizes = [2, 16, 16, 16], strides = [1, 1, 1, 1]} : vector<2x18x18x16xbf16> to vector<2x16x16x16xbf16>
    %11 = vector.shape_cast %10 : vector<2x16x16x16xbf16> to vector<512x16xbf16>
    %c0_7 = arith.constant 0 : index
    %c48 = arith.constant 48 : index
    %12 = vector.load %arg5[%c0_7, %c48] : memref<512x144xbf16, #tpu.memory_space<vmem>>, vector<512x16xbf16>
    tpu.vector_store %arg5[%c0_7, %c48], %11 {strides = array<i32>} : memref<512x144xbf16, #tpu.memory_space<vmem>>, vector<512x16xbf16>,
    %13 = vector.extract_strided_slice %0 {offsets = [0, 1, 1, 0], sizes = [2, 16, 16, 16], strides = [1, 1, 1, 1]} : vector<2x18x18x16xbf16> to vector<2x16x16x16xbf16>
    %14 = vector.shape_cast %13 : vector<2x16x16x16xbf16> to vector<512x16xbf16>
    %c0_8 = arith.constant 0 : index
    %c64 = arith.constant 64 : index
    %15 = vector.load %arg5[%c0_8, %c64] : memref<512x144xbf16, #tpu.memory_space<vmem>>, vector<512x16xbf16>
    tpu.vector_store %arg5[%c0_8, %c64], %14 {strides = array<i32>} : memref<512x144xbf16, #tpu.memory_space<vmem>>, vector<512x16xbf16>,
    %16 = vector.extract_strided_slice %0 {offsets = [0, 1, 2, 0], sizes = [2, 16, 16, 16], strides = [1, 1, 1, 1]} : vector<2x18x18x16xbf16> to vector<2x16x16x16xbf16>
    %17 = vector.shape_cast %16 : vector<2x16x16x16xbf16> to vector<512x16xbf16>
    %c0_9 = arith.constant 0 : index
    %c80 = arith.constant 80 : index
    %18 = vector.load %arg5[%c0_9, %c80] : memref<512x144xbf16, #tpu.memory_space<vmem>>, vector<512x16xbf16>
    tpu.vector_store %arg5[%c0_9, %c80], %17 {strides = array<i32>} : memref<512x144xbf16, #tpu.memory_space<vmem>>, vector<512x16xbf16>,
    %19 = vector.extract_strided_slice %0 {offsets = [0, 2, 0, 0], sizes = [2, 16, 16, 16], strides = [1, 1, 1, 1]} : vector<2x18x18x16xbf16> to vector<2x16x16x16xbf16>
    %20 = vector.shape_cast %19 : vector<2x16x16x16xbf16> to vector<512x16xbf16>
    %c0_10 = arith.constant 0 : index
    %c96 = arith.constant 96 : index
    %21 = vector.load %arg5[%c0_10, %c96] : memref<512x144xbf16, #tpu.memory_space<vmem>>, vector<512x16xbf16>
    tpu.vector_store %arg5[%c0_10, %c96], %20 {strides = array<i32>} : memref<512x144xbf16, #tpu.memory_space<vmem>>, vector<512x16xbf16>,
    %22 = vector.extract_strided_slice %0 {offsets = [0, 2, 1, 0], sizes = [2, 16, 16, 16], strides = [1, 1, 1, 1]} : vector<2x18x18x16xbf16> to vector<2x16x16x16xbf16>
    %23 = vector.shape_cast %22 : vector<2x16x16x16xbf16> to vector<512x16xbf16>
    %c0_11 = arith.constant 0 : index
    %c112 = arith.constant 112 : index
    %24 = vector.load %arg5[%c0_11, %c112] : memref<512x144xbf16, #tpu.memory_space<vmem>>, vector<512x16xbf16>
    tpu.vector_store %arg5[%c0_11, %c112], %23 {strides = array<i32>} : memref<512x144xbf16, #tpu.memory_space<vmem>>, vector<512x16xbf16>,
    %25 = vector.extract_strided_slice %0 {offsets = [0, 2, 2, 0], sizes = [2, 16, 16, 16], strides = [1, 1, 1, 1]} : vector<2x18x18x16xbf16> to vector<2x16x16x16xbf16>
    %26 = vector.shape_cast %25 : vector<2x16x16x16xbf16> to vector<512x16xbf16>
    %c0_12 = arith.constant 0 : index
    %c128 = arith.constant 128 : index
    %27 = vector.load %arg5[%c0_12, %c128] : memref<512x144xbf16, #tpu.memory_space<vmem>>, vector<512x16xbf16>
    tpu.vector_store %arg5[%c0_12, %c128], %26 {strides = array<i32>} : memref<512x144xbf16, #tpu.memory_space<vmem>>, vector<512x16xbf16>,
    %c0_13 = arith.constant 0 : index
    %c0_14 = arith.constant 0 : index
    %28 = vector.load %arg5[%c0_13, %c0_14] : memref<512x144xbf16, #tpu.memory_space<vmem>>, vector<512x144xbf16>
    %c0_15 = arith.constant 0 : index
    %c0_16 = arith.constant 0 : index
    %29 = vector.load %arg2[%c0_15, %c0_16] : memref<144x128xbf16, #tpu.memory_space<vmem>>, vector<144x128xbf16>
    %cst = arith.constant dense<0.000000e+00> : vector<512x128xf32>
    %30 = tpu.matmul %28, %29, %cst {dimension_numbers = #tpu.dot_dimension_numbers<[1], [0], [0], [1], [0, 0, 1, 1], [], []>} : vector<512x144xbf16>, vector<144x128xbf16>, vector<512x128xf32> -> vector<512x128xf32>
    %c0_17 = arith.constant 0 : index
    %c0_18 = arith.constant 0 : index
    %31 = vector.load %arg3[%c0_17, %c0_18] : memref<1x128xf32, #tpu.memory_space<vmem>>, vector<1x128xf32>
    %32 = vector.broadcast %31 : vector<1x128xf32> to vector<512x128xf32>
    %33 = arith.addf %30, %32 : vector<512x128xf32>
    %cst_19 = arith.constant 0.000000e+00 : f32
    %34 = vector.broadcast %cst_19 : f32 to vector<512x128xf32>
    %35 = arith.maximumf %33, %34 : vector<512x128xf32>
    %36 = vector.shape_cast %35 : vector<512x128xf32> to vector<2x256x128xf32>
    %cst_20 = arith.constant dense<0.000000e+00> : vector<2x128xf32>
    %37 = vector.multi_reduction <add>, %36, %cst_20 [1] : vector<2x256x128xf32> to vector<2x128xf32>
    %c0_21 = arith.constant 0 : index
    %c0_22 = arith.constant 0 : index
    %38 = vector.load %arg4[%c0_21, %c0_22] : memref<2x128xf32, #tpu.memory_space<vmem>>, vector<2x128xf32>
    tpu.vector_store %arg4[%c0_21, %c0_22], %37 {strides = array<i32>} : memref<2x128xf32, #tpu.memory_space<vmem>>, vector<2x128xf32>,
    return
  }
  func.func @transform_0(%arg0: i32) -> (i32, i32, i32, i32) {
    %c0_i32 = arith.constant 0 : i32
    %c0_i32_0 = arith.constant 0 : i32
    %c0_i32_1 = arith.constant 0 : i32
    %c0_i32_2 = arith.constant 0 : i32
    return %arg0, %c0_i32, %c0_i32_0, %c0_i32_1 : i32, i32, i32, i32
  }
  func.func @transform_1(%arg0: i32) -> (i32, i32) {
    %c0_i32 = arith.constant 0 : i32
    %c0_i32_0 = arith.constant 0 : i32
    %c0_i32_1 = arith.constant 0 : i32
    return %c0_i32, %c0_i32_0 : i32, i32
  }
  func.func @transform_2(%arg0: i32) -> (i32, i32) {
    %c0_i32 = arith.constant 0 : i32
    %c0_i32_0 = arith.constant 0 : i32
    %c0_i32_1 = arith.constant 0 : i32
    return %c0_i32, %c0_i32_0 : i32, i32
  }
  func.func @transform_3(%arg0: i32) -> (i32, i32) {
    %c0_i32 = arith.constant 0 : i32
    %c0_i32_0 = arith.constant 0 : i32
    return %arg0, %c0_i32 : i32, i32
  }
}

</mosaic_0001>

<bundles_post_ra>
// kernel: tlib_classifier_cdan_forward.3
= control target key start
LH: loop header
LB: loop body
LE: loop exit
PB: predicated region body
PF: predicated region fallthrough
CT: control target
= control target key end

     0   :  { %14 = vsyncpa [#allocation3], 0  ;;  %v471_v1 = vmov 0.0   ;;  %vm472_vm0 = vmmov 0   ;;  %s589_s0 = inlined_call_operand.vmem [shape: f32[2,128], index: 0, kind: input, shape index: {}]   ;;  %s590_s1 = inlined_call_operand.vmem [shape: bf16[128,128], index: 1, kind: input, shape index: {}]   ;;  %s591_s2 = inlined_call_operand.vmem [shape: f32[1,128], index: 2, kind: input, shape index: {}]   ;;  %s592_s3 = inlined_call_operand.vmem [shape: f32[1,128], index: 3, kind: input, shape index: {}]   ;;  %s593_s4 = inlined_call_operand.vmem [shape: f32[1,128], index: 4, kind: input, shape index: {}]   ;;  %s594_s5 = inlined_call_operand.vmem [shape: bf16[128,128], index: 5, kind: input, shape index: {}]   ;;  %s595_s6 = inlined_call_operand.vmem [shape: f32[1,128], index: 6, kind: input, shape index: {}]   ;;  %s596_s7 = inlined_call_operand.hbm [shape: f32[2,128], index: 7, kind: output, shape index: {0}]   ;;  %s597_s8 = inlined_call_operand.hbm [shape: f32[2,128], index: 8, kind: output, shape index: {1}]  }
   0x1   :  { %v409_v0 = vld [vmem:[%s590_s1 + $0x38] sm:$0xff]   ;;  %365 = vmatprep.subr.bf16.mxu0 %v471_v1  ;;  %385 = vmatprep.subr.bf16.mxu1 %v471_v1  ;;  %v410_v2 = vld [vmem:[%s590_s1 + $0x30] sm:$0xff]   ;;  %v411_v3 = vld [vmem:[%s590_s1 + $0x28] sm:$0xff]  }
   0x2   :  { %366 = vmatpush3.bf16.msra.mxu0 %v409_v0  ;;  %381 = vmatprep.mubr.msk.bf16.mxu0 %vm472_vm0, %v471_v1  ;;  %v412_v4 = vld [vmem:[%s590_s1 + $0x20] sm:$0xff]   ;;  %v413_v5 = vld [vmem:[%s590_s1 + $0x18] sm:$0xff]  }
   0x3   :  { %367 = vmatprep.subr.bf16.mxu0 %v471_v1  ;;  %401 = vmatprep.mubr.msk.bf16.mxu1 %vm472_vm0, %v471_v1 }
   0x6   :  { %368 = vmatpush3.bf16.msra.mxu0 %v410_v2 }
   0x7   :  { %369 = vmatprep.subr.bf16.mxu0 %v471_v1 }
   0xa   :  { %370 = vmatpush3.bf16.msra.mxu0 %v411_v3 }
   0xb   :  { %371 = vmatprep.subr.bf16.mxu0 %v471_v1 }
   0xe   :  { %372 = vmatpush3.bf16.msra.mxu0 %v412_v4 }
   0xf   :  { %15 = vsyncpa [#allocation5], 0  ;;  %373 = vmatprep.subr.bf16.mxu0 %v471_v1  ;;  %v414_v6 = vld [vmem:[%s590_s1 + $0x10] sm:$0xff]   ;;  %v415_v7 = vld [vmem:[%s590_s1 + $0x8] sm:$0xff]   ;;  %vm145_vm1 = vcmask 1041408   ;;  %s473_s19 = smov [#allocation2]  }
  0x10   :  { %v31_v8 = vld [vmem:[%s589_s0] sm:$0x3]  ;;  %v417_v12 = vld [vmem:[%s594_s5 + $0x38] sm:$0xff]   ;;  %v418_v13 = vld [vmem:[%s594_s5 + $0x30] sm:$0xff]   ;;  %s305_s20 = sshll.u32 %s473_s19, 4  ;;  %s306_s20 = int_to_ptr.vmem [resolvable:$true] %s305_s20 }
  0x11   :  { %v32_v9 = vmul.f32 0.00390625, %v31_v8  ;;  %v416_v10 = vld [vmem:[%s590_s1] sm:$0xff]   ;;  %386 = vmatpush3.bf16.msra.mxu1 %v417_v12  ;;  %v419_v14 = vld [vmem:[%s594_s5 + $0x28] sm:$0xff]   ;;  %v421_v16 = vld [vmem:[%s594_s5 + $0x18] sm:$0xff]   ;;  %s427_s21 = scalar_lea.vmem %s306_s20, 32  ;;  %p432_p1 = scmp.lt.s32.totalorder %s306_s20, %s306_s20 }
  0x12   :  { %374 = vmatpush3.bf16.msra.mxu0 %v413_v5  ;;  %387 = vmatprep.subr.bf16.mxu1 %v471_v1  ;;  %v420_v15 = vld [vmem:[%s594_s5 + $0x20] sm:$0xff]   ;;  %v422_v17 = vld [vmem:[%s594_s5 + $0x10] sm:$0xff]   ;;  %v423_v18 = vld [vmem:[%s594_s5 + $0x8] sm:$0xff]   ;;  %p428_p0 = scmp.ne.s32.totalorder %s306_s20, %s427_s21  ;;  %p433_p2 = scmp.lt.s32.totalorder %s427_s21, %s427_s21 }
  0x13   :  { %375 = vmatprep.subr.bf16.mxu0 %v471_v1  ;;  %v33_v11 = vpack.c.bf16 %v32_v9, %v32_v9  ;;  %v424_v19 = vld [vmem:[%s594_s5] sm:$0xff]  }
  0x14   :  { %v327_v20 = vld [vmem:[%s591_s2] ss:$0 sm:$0xff]  ;;  %p434_p3 = por %p433_p2, %p432_p1 }
  0x15   :  { %388 = vmatpush3.bf16.msra.mxu1 %v418_v13  ;;  %v336_v46 = vld [vmem:[%s592_s3] ss:$0 sm:$0xff] }
  0x16   :  { %376 = vmatpush3.bf16.msra.mxu0 %v414_v6  ;;  %389 = vmatprep.subr.bf16.mxu1 %v471_v1  ;;  %v337_v48 = vld [vmem:[%s593_s4] ss:$0 sm:$0xff]  ;;  %p435_p4 = pnand %p434_p3, %p428_p0 }
  0x17   :  { %377 = vmatprep.subr.bf16.mxu0 %v471_v1 }
  0x19   :  { %390 = vmatpush3.bf16.msra.mxu1 %v419_v14 }
  0x1a   :  { %378 = vmatpush3.bf16.msra.mxu0 %v415_v7  ;;  %391 = vmatprep.subr.bf16.mxu1 %v471_v1 }
  0x1b   :  { %379 = vmatprep.subr.bf16.mxu0 %v471_v1 }
  0x1d   :  { %392 = vmatpush3.bf16.msra.mxu1 %v420_v15 }
  0x1e   :  { %380 = vmatpush3.bf16.msra.mxu0 %v416_v10  ;;  %393 = vmatprep.subr.bf16.mxu1 %v471_v1 }
  0x21   :  { %382 = vmatmul.mubr.bf16.vlgmr.msra.gmra.mxu0 %v33_v11  ;;  %394 = vmatpush3.bf16.msra.mxu1 %v421_v16 }
  0x22   :  { %395 = vmatprep.subr.bf16.mxu1 %v471_v1 }
  0x25   :  { %396 = vmatpush3.bf16.msra.mxu1 %v422_v17 }
  0x26   :  { %397 = vmatprep.subr.bf16.mxu1 %v471_v1 }
  0x29   :  { %398 = vmatpush3.bf16.msra.mxu1 %v423_v18 }
  0x2a   :  { %399 = vmatprep.subr.bf16.mxu1 %v471_v1 }
  0x2d   :  { %400 = vmatpush3.bf16.msra.mxu1 %v424_v19 }
  0xe1   :  { %v139_v21 = vpop.f32.mrf.mxu0 }
  0xe2   :  { %v140_v22 = vadd.f32 %v327_v20, %v139_v21 }
  0xe3   :  { %v383_v23 = vpop.f32.mrf.mxu0 }
  0xe4   :  { %v146_v24 = vsel %vm145_vm1, %v140_v22, 0.0 }
  0xe5   :  { %v147_v25 = vrot.slane %v146_v24, 4  ;;  %v142_v26 = vpop.f32.mrf.mxu0 }
  0xe7   :  { %v148_v27 = vadd.f32 %v147_v25, %v146_v24  ;;  %v384_v28 = vpop.f32.mrf.mxu0 }
  0xe9   :  { %v149_v29 = vrot.slane %v148_v27, 2 }
  0xeb   :  { %v150_v30 = vadd.f32 %v149_v29, %v148_v27 }
  0xed   :  { %v151_v31 = vrot.slane %v150_v30, 1 }
  0xef   :  { %v152_v32 = vadd.f32 %v151_v31, %v150_v30 }
  0xf1   :  { %v154_v33 = vmul.f32 0.5, %v152_v32 }
  0xf3   :  { %v155_v34 = vsub.f32 %v140_v22, %v154_v33 }
  0xf5   :  { %v156_v35 = vmul.f32 %v155_v34, %v155_v34 }
  0xf7   :  { %v157_v36 = vsel %vm145_vm1, %v156_v35, 0.0 }
  0xf8   :  { %v158_v37 = vrot.slane %v157_v36, 4 }
  0xfa   :  { %v159_v38 = vadd.f32 %v158_v37, %v157_v36 }
  0xfc   :  { %v160_v39 = vrot.slane %v159_v38, 2 }
  0xfe   :  { %v161_v40 = vadd.f32 %v160_v39, %v159_v38 }
 0x100   :  { %v162_v41 = vrot.slane %v161_v40, 1 }
 0x102   :  { %v163_v42 = vadd.f32 %v162_v41, %v161_v40 }
 0x104   :  { %v164_v43 = vmul.f32 0.5, %v163_v42 }
 0x106   :  { %v165_v44 = vadd.f32 1e-05, %v164_v43 }
 0x108   :  { %425 = vrsqrt.f32 %v165_v44 }
 0x115   :  { %v426_v45 = vpop.eup %425 }
 0x116   :  { %v167_v47 = vmul.f32 %v426_v45, %v155_v34 }
 0x118   :  { %v175_v49 = vmul.f32 %v336_v46, %v167_v47 }
 0x11a   :  { %v183_v50 = vadd.f32 %v337_v48, %v175_v49 }
 0x11c   :  { %v184_v51 = vmax.f32 %v183_v50, 0.0 }
 0x11e   :  { %v186_v52 = vpack.c.bf16 %v184_v51, %v184_v51  ;;  %185 = vst [vmem:[#allocation2] sm:$0x3] %v184_v51 }
 0x120   :  { %402 = vmatmul.mubr.bf16.vlgmr.msra.gmra.mxu1 %v186_v52 }
 0x121   :  { %438 = shalt.err (!%p435_p4)
}
 0x122   :  { %308 = dma.vmem_to_hbm [thread:$0]  %s306_s20, 32, %s596_s7, [#allocation3]   ;;  %v338_v53 = vld [vmem:[%s595_s6] ss:$0 sm:$0xff] }
 0x123   :  { %s474_s24 = smov [#allocation4]  }
 0x124   :  { %s315_s25 = sshll.u32 %s474_s24, 4  ;;  %s316_s25 = int_to_ptr.vmem [resolvable:$true] %s315_s25 }
 0x125   :  { %s447_s26 = scalar_lea.vmem %s316_s25, 32  ;;  %p452_p6 = scmp.lt.s32.totalorder %s316_s25, %s316_s25 }
 0x126   :  { %p448_p5 = scmp.ne.s32.totalorder %s316_s25, %s447_s26  ;;  %p453_p7 = scmp.lt.s32.totalorder %s447_s26, %s447_s26 }
 0x128   :  { %p454_p8 = por %p453_p7, %p452_p6 }
 0x12a   :  { %p455_p9 = pnand %p454_p8, %p448_p5 }
 0x1e0   :  { %v292_v54 = vpop.f32.mrf.mxu1 }
 0x1e1   :  { %v293_v55 = vadd.f32 %v338_v53, %v292_v54 }
 0x1e2   :  { %v403_v56 = vpop.f32.mrf.mxu1 }
 0x1e3   :  { %298 = vst [vmem:[#allocation4] sm:$0x3] %v293_v55 }
 0x1e4   :  { %v295_v57 = vpop.f32.mrf.mxu1 }
 0x1e5   :  { %458 = shalt.err (!%p455_p9)
}
 0x1e6   :  { %318 = dma.vmem_to_hbm [thread:$0]  %s316_s25, 32, %s597_s8, [#allocation5]   ;;  %v404_v58 = vpop.f32.mrf.mxu1 }
 0x1e7   :  { %467 = dma.done.wait [#allocation3], 32  }
 0x1e8   :  { %468 = vsyncadd [#allocation3], 4294967264 }
 0x1e9   :  { %469 = dma.done.wait [#allocation5], 32  }
 0x1ea   :  { %470 = vsyncadd [#allocation5], 4294967264 }
 0x1eb   :  { %325 = vsyncpa [#allocation3], 1 }
 0x1ec   :  { %326 = vsyncpa [#allocation5], 1 }

// kernel: tlib_classifier_cdan_forward.2
= control target key start
LH: loop header
LB: loop body
LE: loop exit
PB: predicated region body
PF: predicated region fallthrough
CT: control target
= control target key end

     0   :  { %vm188_vm0 = vsmask.f32 3328  ;;  %vm123_vm1 = vcmask 125952   ;;  %vm189_vm2 = vsmask.f32 7440  ;;  %v8027_v26 = vmov 0  ;;  %s7731_s0 = inlined_call_operand.vmem [shape: bf16[2,18,18,16], index: 0, kind: input, shape index: {}]   ;;  %s7732_s1 = inlined_call_operand.vmem [shape: bf16[144,128], index: 1, kind: input, shape index: {}]   ;;  %s7733_s2 = inlined_call_operand.vmem [shape: f32[1,128], index: 2, kind: input, shape index: {}]   ;;  %s7734_s3 = inlined_call_operand.vmem [shape: f32[2,128], index: 3, kind: output, shape index: {}]  }
   0x1   :  { %v4610_v0 = vld [vmem:[%s7731_s0 + $0xc] sm:$0xf]  ;;  %v4615_v1 = vld [vmem:[%s7731_s0 + $0x10] sm:$0xf]  ;;  %v4623_v5 = vld [vmem:[%s7731_s0] sm:$0xf] }
   0x2   :  { %v216_v2 = vshrl.u32 %v4610_v0, 16  ;;  %v219_v3 = vshll.u32 %v4610_v0, 16  ;;  %v225_v4 = vshll.u32 %v4615_v1, 16  ;;  %v229_v6 = vshrl.u32 %v4615_v1, 16  ;;  %126 = vst.msk [vmem:[#allocation2 + $0x10] sm:$0xf] %vm123_vm1, %v4610_v0  ;;  %vm4661_vm3 = vmor %vm188_vm0, %vm189_vm2 }
   0x3   :  { %127 = vst.msk [vmem:[#allocation2 + $0x18] sm:$0xf] %vm123_vm1, %v4615_v1  ;;  %v4633_v7 = vld [vmem:[%s7731_s0 + $0x4] sm:$0xf]  ;;  %v192_v8 = vshrl.u32 %v4623_v5, 16  ;;  %v195_v9 = vshll.u32 %v4623_v5, 16 }
   0x4   :  { %v20_v10 = vld [vmem:[%s7731_s0 + $0x14] sm:$0x1]  ;;  %124 = vst.msk [vmem:[#allocation2] sm:$0xf] %vm123_vm1, %v4623_v5  ;;  %v218_v11 = vrot.slane %v216_v2, 4  ;;  %v221_v12 = vrot.slane %v219_v3, 5 }
   0x5   :  { %v227_v13 = vrot.slane %v225_v4, 5  ;;  %v201_v14 = vshll.u32 %v4633_v7, 16  ;;  %v17_v15 = vld [vmem:[%s7731_s0 + $0x8] sm:$0x1]  ;;  %125 = vst.msk [vmem:[#allocation2 + $0x8] sm:$0xf] %vm123_vm1, %v4633_v7 }
   0x6   :  { %v194_v16 = vrot.slane %v192_v8, 4  ;;  %v197_v17 = vrot.slane %v195_v9, 5  ;;  %v231_v18 = vrot.slane %v229_v6, 4  ;;  %v235_v19 = vshll.u32 %v20_v10, 16  ;;  %v4651_v20 = vld [vmem:[%s7731_s0 + $0x1c] sm:$0xf] }
   0x7   :  { %v222_v21 = vor.u32 %v221_v12, %v218_v11  ;;  %v203_v22 = vrot.slane %v201_v14, 5  ;;  %v205_v23 = vshrl.u32 %v4633_v7, 16  ;;  %v211_v24 = vshll.u32 %v17_v15, 16  ;;  %v23_v25 = vld [vmem:[%s7731_s0 + $0x20] sm:$0x1]  ;;  %s4579_s11 = smov 16  }
   0x8   :  { %129 = vst.msk [vmem:[#allocation2 + $0x28] sm:$0xf] %vm123_vm1, %v4651_v20  ;;  %v8028_v26 = vsel %vm4661_vm3, 4294967295, %v8027_v26  ;;  %v198_v27 = vor.u32 %v197_v17, %v194_v16  ;;  %v232_v28 = vor.u32 %v231_v18, %v227_v13  ;;  %v237_v29 = vrot.slane %v235_v19, 5  ;;  %v4669_v31 = vld [vmem:[%s7731_s0 + $0x18] sm:$0xf] }
   0x9   :  { %8029 = vst [vmem:[#allocation3_spill] sm:$0xff] %v8028_v26  ;;  %v249_v30 = vshll.u32 %v4651_v20, 16  ;;  %v4674_v32 = vld [vmem:[%s7731_s0 + $0x28] sm:$0xf]  ;;  %v223_v33 = vrot.slane %v222_v21, 4  ;;  %v207_v34 = vrot.slane %v205_v23, 4 }
   0xa   :  { %8030 = vst [vmem:[#allocation4_spill] sm:$0xff] %v4674_v32  ;;  %v213_v35 = vrot.slane %v211_v24, 5  ;;  %v253_v36 = vshrl.u32 %v4651_v20, 16  ;;  %128 = vst.msk [vmem:[#allocation2 + $0x20] sm:$0xf] %vm123_vm1, %v4669_v31  ;;  %v199_v37 = vrot.slane %v198_v27, 4 }
   0xb   :  { %131 = vst.msk [vmem:[#allocation2 + $0x38] sm:$0xf] %vm123_vm1, %v4674_v32  ;;  %v233_v38 = vrot.slane %v232_v28, 4  ;;  %v4681_v39 = vrot.slane %v249_v30, 5  ;;  %v259_v40 = vshll.u32 %v23_v25, 16  ;;  %v4690_v42 = vsel %vm4661_vm3, %v223_v33, %v227_v13  ;;  %s4580_s6 = smov 32  }
   0xc   :  { %v4686_v41 = vld [vmem:[%s7731_s0 + $0x24] sm:$0xf]  ;;  %8032 = vst [vmem:[#allocation6_spill] sm:$0xff] %v4690_v42  ;;  %v208_v43 = vor.u32 %v207_v34, %v203_v22  ;;  %v255_v44 = vrot.slane %v253_v36, 4  ;;  %v240_v45 = vshrl.u32 %v4669_v31, 16  ;;  %963 = vrot.lane.b32.xlu1 %v4690_v42, %s4579_s11  ;;  %v204_v48 = vsel %vm4661_vm3, %v199_v37, %v203_v22  ;;  %s4582_s14 = smov 64  }
   0xd   :  { %8031 = vst [vmem:[#allocation5_spill] sm:$0xff] %v4686_v41  ;;  %v26_v46 = vld [vmem:[%s7731_s0 + $0x2c] sm:$0x1]  ;;  %v4699_v47 = vld [vmem:[%s7731_s0 + $0x34] sm:$0xf]  ;;  %v4709_v49 = vsel %vm4661_vm3, %v233_v38, %v237_v29  ;;  %v261_v50 = vrot.slane %v259_v40, 5  ;;  %959 = vrot.lane.b32.xlu0 %v204_v48, %s4579_s11 }
   0xe   :  { %8033 = vst [vmem:[#allocation7_spill] sm:$0xff] %v4699_v47  ;;  %130 = vst.msk [vmem:[#allocation2 + $0x30] sm:$0xf] %vm123_vm1, %v4686_v41  ;;  %v243_v51 = vshll.u32 %v4669_v31, 16  ;;  %v4715_v52 = vld [vmem:[%s7731_s0 + $0x30] sm:$0xf]  ;;  %v256_v55 = vor.u32 %v255_v44, %v4681_v39 }
   0xf   :  { %8034 = vst [vmem:[#allocation8_spill] sm:$0xff] %v4709_v49  ;;  %8035 = vst [vmem:[#allocation9_spill] sm:$0xff] %v4715_v52  ;;  %v4720_v53 = vld [vmem:[%s7731_s0 + $0x40] sm:$0xf]  ;;  %v209_v54 = vrot.slane %v208_v43, 4  ;;  %v242_v56 = vrot.slane %v240_v45, 4 }
  0x10   :  { %8036 = vst [vmem:[#allocation10_spill] sm:$0xff] %v4720_v53  ;;  %133 = vst.msk [vmem:[#allocation2 + $0x48] sm:$0xf] %vm123_vm1, %v4699_v47  ;;  %v273_v57 = vshll.u32 %v4674_v32, 16  ;;  %v29_v58 = vld [vmem:[%s7731_s0 + $0x38] sm:$0x1]  ;;  %965 = vrot.lane.b32.xlu1 %v4709_v49, %s4579_s11 }
  0x11   :  { %132 = vst.msk [vmem:[#allocation2 + $0x40] sm:$0xf] %vm123_vm1, %v4715_v52  ;;  %135 = vst.msk [vmem:[#allocation2 + $0x58] sm:$0xf] %vm123_vm1, %v4720_v53  ;;  %v245_v59 = vrot.slane %v243_v51, 5  ;;  %v277_v60 = vshrl.u32 %v4674_v32, 16  ;;  %v214_v2 = vsel %vm4661_vm3, %v209_v54, %v213_v35 }
  0x12   :  { %v283_v61 = vshll.u32 %v26_v46, 16  ;;  %v264_v62 = vshrl.u32 %v4686_v41, 16  ;;  %v4739_v63 = vld [vmem:[%s7731_s0 + $0x3c] sm:$0xf]  ;;  %v257_v3 = vrot.slane %v256_v55, 4  ;;  %v275_v4 = vrot.slane %v273_v57, 5  ;;  %961 = vrot.lane.b32.xlu0 %v214_v2, %s4579_s11 }
  0x13   :  { %8037 = vst [vmem:[#allocation11_spill] sm:$0xff] %v4739_v63  ;;  %v267_v6 = vshll.u32 %v4686_v41, 16  ;;  %v4747_v8 = vld [vmem:[%s7731_s0 + $0x4c] sm:$0xf]  ;;  %134 = vst.msk [vmem:[#allocation2 + $0x50] sm:$0xf] %vm123_vm1, %v4739_v63  ;;  %v246_v9 = vor.u32 %v245_v59, %v242_v56 }
  0x14   :  { %8038 = vst [vmem:[#allocation12_spill] sm:$0xff] %v4747_v8  ;;  %v279_v10 = vrot.slane %v277_v60, 4  ;;  %v285_v11 = vrot.slane %v283_v61, 5  ;;  %v266_v12 = vrot.slane %v264_v62, 4  ;;  %137 = vst.msk [vmem:[#allocation2 + $0x68] sm:$0xf] %vm123_vm1, %v4747_v8  ;;  %v4758_v13 = vsel %vm4661_vm3, %v257_v3, %v261_v50 }
  0x15   :  { %8039 = vst [vmem:[#allocation13_spill] sm:$0xff] %v4758_v13  ;;  %v269_v14 = vrot.slane %v267_v6, 5  ;;  %v297_v15 = vshll.u32 %v4699_v47, 16  ;;  %v301_v16 = vshrl.u32 %v4699_v47, 16  ;;  %v4765_v17 = vld [vmem:[%s7731_s0 + $0x48] sm:$0xf]  ;;  %969 = vrot.lane.b32.xlu1 %v4758_v13, %s4579_s11 }
  0x16   :  { %8040 = vst [vmem:[#allocation14_spill] sm:$0xff] %v4765_v17  ;;  %v247_v18 = vrot.slane %v246_v9, 4  ;;  %v280_v19 = vor.u32 %v279_v10, %v275_v4  ;;  %v307_v21 = vshll.u32 %v29_v58, 16  ;;  %v288_v22 = vshrl.u32 %v4715_v52, 16  ;;  %v4771_v23 = vld [vmem:[%s7731_s0 + $0x58] sm:$0xf] }
  0x17   :  { %8041 = vst [vmem:[#allocation15_spill] sm:$0xff] %v4771_v23  ;;  %136 = vst.msk [vmem:[#allocation2 + $0x60] sm:$0xf] %vm123_vm1, %v4765_v17  ;;  %v270_v24 = vor.u32 %v269_v14, %v266_v12  ;;  %v299_v25 = vrot.slane %v297_v15, 5  ;;  %v303_v27 = vrot.slane %v301_v16, 4  ;;  %v291_v28 = vshll.u32 %v4715_v52, 16 }
  0x18   :  { %v32_v29 = vld [vmem:[%s7731_s0 + $0x44] sm:$0x1]  ;;  %139 = vst.msk [vmem:[#allocation2 + $0x78] sm:$0xf] %vm123_vm1, %v4771_v23  ;;  %v4786_v30 = vsel %vm4661_vm3, %v247_v18, %v4681_v39  ;;  %v281_v33 = vrot.slane %v280_v19, 4  ;;  %v309_v34 = vrot.slane %v307_v21, 5 }
  0x19   :  { %8042 = vst [vmem:[#allocation16_spill] sm:$0xff] %v4786_v30  ;;  %v290_v35 = vrot.slane %v288_v22, 4  ;;  %v4791_v36 = vld [vmem:[%s7731_s0 + $0x54] sm:$0xf]  ;;  %967 = vrot.lane.b32.xlu0 %v4786_v30, %s4579_s11  ;;  %v271_v37 = vrot.slane %v270_v24, 4  ;;  %v304_v38 = vor.u32 %v303_v27, %v299_v25  ;;  %v293_v40 = vrot.slane %v291_v28, 5 }
  0x1a   :  { %8043 = vst [vmem:[#allocation17_spill] sm:$0xff] %v4791_v36  ;;  %v321_v43 = vshll.u32 %v4720_v53, 16  ;;  %v4799_v39 = vld [vmem:[%s7731_s0 + $0x64] sm:$0xf]  ;;  %138 = vst.msk [vmem:[#allocation2 + $0x70] sm:$0xf] %vm123_vm1, %v4791_v36  ;;  %v4805_v44 = vsel %vm4661_vm3, %v281_v33, %v285_v11 }
  0x1b   :  { %8044 = vst [vmem:[#allocation18_spill] sm:$0xff] %v4799_v39  ;;  %8045 = vst [vmem:[#allocation19_spill] sm:$0xff] %v4805_v44  ;;  %v325_v45 = vshrl.u32 %v4720_v53, 16  ;;  %v331_v46 = vshll.u32 %v32_v29, 16  ;;  %v312_v48 = vshrl.u32 %v4739_v63, 16  ;;  %v4816_v51 = vsel %vm4661_vm3, %v271_v37, %v275_v4  ;;  %973 = vrot.lane.b32.xlu1 %v4805_v44, %s4579_s11  ;;  %s4584_s27 = smov 80  }
  0x1c   :  { %v35_v50 = vld [vmem:[%s7731_s0 + $0x50] sm:$0x1]  ;;  %141 = vst.msk [vmem:[#allocation2 + $0x88] sm:$0xf] %vm123_vm1, %v4799_v39  ;;  %8046 = vst [vmem:[#allocation20_spill] sm:$0xff] %v4816_v51  ;;  %v305_v54 = vrot.slane %v304_v38, 4  ;;  %v294_v55 = vor.u32 %v293_v40, %v290_v35 }
  0x1d   :  { %v323_v56 = vrot.slane %v321_v43, 5  ;;  %v4821_v57 = vld [vmem:[%s7731_s0 + $0x60] sm:$0xf]  ;;  %v4826_v58 = vld [vmem:[%s7731_s0 + $0x70] sm:$0xf]  ;;  %v327_v59 = vrot.slane %v325_v45, 4  ;;  %971 = vrot.lane.b32.xlu0 %v4816_v51, %s4579_s11 }
  0x1e   :  { %8047 = vst [vmem:[#allocation21_spill] sm:$0xff] %v4821_v57  ;;  %8048 = vst [vmem:[#allocation22_spill] sm:$0xff] %v4826_v58  ;;  %v333_v60 = vrot.slane %v331_v46, 5  ;;  %v314_v61 = vrot.slane %v312_v48, 4  ;;  %v315_v62 = vshll.u32 %v4739_v63, 16  ;;  %v4839_v2 = vsel %vm4661_vm3, %v305_v54, %v309_v34  ;;  %s4586_s9 = smov 112  }
  0x1f   :  { %140 = vst.msk [vmem:[#allocation2 + $0x80] sm:$0xf] %vm123_vm1, %v4821_v57  ;;  %143 = vst.msk [vmem:[#allocation2 + $0x98] sm:$0xf] %vm123_vm1, %v4826_v58  ;;  %v295_v3 = vrot.slane %v294_v55, 4  ;;  %v345_v4 = vshll.u32 %v4747_v8, 16  ;;  %v328_v10 = vor.u32 %v327_v59, %v323_v56  ;;  %977 = vrot.lane.b32.xlu1 %v4839_v2, %s4579_s11 }
  0x20   :  { %8049 = vst [vmem:[#allocation23_spill] sm:$0xff] %v4839_v2  ;;  %v349_v6 = vshrl.u32 %v4747_v8, 16  ;;  %v4846_v9 = vld [vmem:[%s7731_s0 + $0x6c] sm:$0xf]  ;;  %v317_v11 = vrot.slane %v315_v62, 5  ;;  %v355_v12 = vshll.u32 %v35_v50, 16 }
  0x21   :  { %8050 = vst [vmem:[#allocation24_spill] sm:$0xff] %v4846_v9  ;;  %v336_v14 = vshrl.u32 %v4765_v17, 16  ;;  %v4852_v15 = vld [vmem:[%s7731_s0 + $0x7c] sm:$0xf]  ;;  %142 = vst.msk [vmem:[#allocation2 + $0x90] sm:$0xf] %vm123_vm1, %v4846_v9  ;;  %v4858_v16 = vsel %vm4661_vm3, %v295_v3, %v299_v25 }
  0x22   :  { %8051 = vst [vmem:[#allocation25_spill] sm:$0xff] %v4852_v15  ;;  %8052 = vst [vmem:[#allocation26_spill] sm:$0xff] %v4858_v16  ;;  %v347_v18 = vrot.slane %v345_v4, 5  ;;  %v351_v19 = vrot.slane %v349_v6, 4  ;;  %v339_v21 = vshll.u32 %v4765_v17, 16  ;;  %v329_v24 = vrot.slane %v328_v10, 4  ;;  %975 = vrot.lane.b32.xlu0 %v4858_v16, %s4579_s11 }
  0x23   :  { %v38_v22 = vld [vmem:[%s7731_s0 + $0x5c] sm:$0x1]  ;;  %145 = vst.msk [vmem:[#allocation2 + $0xa8] sm:$0xf] %vm123_vm1, %v4852_v15  ;;  %v318_v27 = vor.u32 %v317_v11, %v314_v61  ;;  %v357_v28 = vrot.slane %v355_v12, 5  ;;  %v338_v29 = vrot.slane %v336_v14, 4 }
  0x24   :  { %v4871_v25 = vld [vmem:[%s7731_s0 + $0x78] sm:$0xf]  ;;  %v352_v33 = vor.u32 %v351_v19, %v347_v18  ;;  %v341_v34 = vrot.slane %v339_v21, 5  ;;  %v369_v35 = vshll.u32 %v4771_v23, 16  ;;  %v373_v37 = vshrl.u32 %v4771_v23, 16 }
  0x25   :  { %8053 = vst [vmem:[#allocation27_spill] sm:$0xff] %v4871_v25  ;;  %v4880_v38 = vld [vmem:[%s7731_s0 + $0x88] sm:$0xf]  ;;  %144 = vst.msk [vmem:[#allocation2 + $0xa0] sm:$0xf] %vm123_vm1, %v4871_v25  ;;  %v4886_v40 = vsel %vm4661_vm3, %v329_v24, %v333_v60  ;;  %v319_v43 = vrot.slane %v318_v27, 4 }
  0x26   :  { %8054 = vst [vmem:[#allocation28_spill] sm:$0xff] %v4880_v38  ;;  %8055 = vst [vmem:[#allocation29_spill] sm:$0xff] %v4886_v40  ;;  %v379_v45 = vshll.u32 %v38_v22, 16  ;;  %v360_v46 = vshrl.u32 %v4791_v36, 16  ;;  %v41_v48 = vld [vmem:[%s7731_s0 + $0x68] sm:$0x1]  ;;  %v342_v54 = vor.u32 %v341_v34, %v338_v29  ;;  %981 = vrot.lane.b32.xlu1 %v4886_v40, %s4579_s11 }
  0x27   :  { %147 = vst.msk [vmem:[#allocation2 + $0xb8] sm:$0xf] %vm123_vm1, %v4880_v38  ;;  %v353_v50 = vrot.slane %v352_v33, 4  ;;  %v371_v55 = vrot.slane %v369_v35, 5  ;;  %v375_v59 = vrot.slane %v373_v37, 4  ;;  %v4903_v61 = vsel %vm4661_vm3, %v319_v43, %v323_v56 }
  0x28   :  { %v4897_v60 = vld [vmem:[%s7731_s0 + $0x84] sm:$0xf]  ;;  %8057 = vst [vmem:[#allocation31_spill] sm:$0xff] %v4903_v61  ;;  %v381_v62 = vrot.slane %v379_v45, 5  ;;  %v362_v3 = vrot.slane %v360_v46, 4  ;;  %v363_v4 = vshll.u32 %v4791_v36, 16  ;;  %979 = vrot.lane.b32.xlu0 %v4903_v61, %s4579_s11 }
  0x29   :  { %8056 = vst [vmem:[#allocation30_spill] sm:$0xff] %v4897_v60  ;;  %v4909_v6 = vld [vmem:[%s7731_s0 + $0x94] sm:$0xf]  ;;  %146 = vst.msk [vmem:[#allocation2 + $0xb0] sm:$0xf] %vm123_vm1, %v4897_v60  ;;  %v4917_v10 = vsel %vm4661_vm3, %v353_v50, %v357_v28  ;;  %v343_v56 = vrot.slane %v342_v54, 4  ;;  %v376_v11 = vor.u32 %v375_v59, %v371_v55 }
  0x2a   :  { %8058 = vst [vmem:[#allocation32_spill] sm:$0xff] %v4909_v6  ;;  %8059 = vst [vmem:[#allocation33_spill] sm:$0xff] %v4917_v10  ;;  %v393_v12 = vshll.u32 %v4799_v39, 16  ;;  %v4923_v14 = vld [vmem:[%s7731_s0 + $0x90] sm:$0xf]  ;;  %v365_v19 = vrot.slane %v363_v4, 5  ;;  %985 = vrot.lane.b32.xlu1 %v4917_v10, %s4579_s11 }
  0x2b   :  { %8060 = vst [vmem:[#allocation34_spill] sm:$0xff] %v4923_v14  ;;  %149 = vst.msk [vmem:[#allocation2 + $0xc8] sm:$0xf] %vm123_vm1, %v4909_v6  ;;  %v397_v21 = vshrl.u32 %v4799_v39, 16  ;;  %v403_v22 = vshll.u32 %v41_v48, 16  ;;  %v384_v24 = vshrl.u32 %v4821_v57, 16  ;;  %v4938_v28 = vsel %vm4661_vm3, %v343_v56, %v347_v18 }
  0x2c   :  { %v4932_v27 = vld [vmem:[%s7731_s0 + $0xa0] sm:$0xf]  ;;  %148 = vst.msk [vmem:[#allocation2 + $0xc0] sm:$0xf] %vm123_vm1, %v4923_v14  ;;  %8062 = vst [vmem:[#allocation36_spill] sm:$0xff] %v4938_v28  ;;  %v377_v29 = vrot.slane %v376_v11, 4  ;;  %v366_v37 = vor.u32 %v365_v19, %v362_v3  ;;  %983 = vrot.lane.b32.xlu0 %v4938_v28, %s4579_s11 }
  0x2d   :  { %8061 = vst [vmem:[#allocation35_spill] sm:$0xff] %v4932_v27  ;;  %v395_v33 = vrot.slane %v393_v12, 5  ;;  %v387_v34 = vshll.u32 %v4821_v57, 16  ;;  %v44_v35 = vld [vmem:[%s7731_s0 + $0x74] sm:$0x1]  ;;  %v399_v43 = vrot.slane %v397_v21, 4 }
  0x2e   :  { %151 = vst.msk [vmem:[#allocation2 + $0xd8] sm:$0xf] %vm123_vm1, %v4932_v27  ;;  %v405_v45 = vrot.slane %v403_v22, 5  ;;  %v386_v46 = vrot.slane %v384_v24, 4  ;;  %v4951_v18 = vld [vmem:[%s7731_s0 + $0x9c] sm:$0xf]  ;;  %v4957_v48 = vsel %vm4661_vm3, %v377_v29, %v381_v62 }
  0x2f   :  { %8063 = vst [vmem:[#allocation37_spill] sm:$0xff] %v4951_v18  ;;  %8064 = vst [vmem:[#allocation38_spill] sm:$0xff] %v4957_v48  ;;  %v389_v50 = vrot.slane %v387_v34, 5  ;;  %v417_v54 = vshll.u32 %v4826_v58, 16  ;;  %v421_v59 = vshrl.u32 %v4826_v58, 16  ;;  %v367_v4 = vrot.slane %v366_v37, 4  ;;  %989 = vrot.lane.b32.xlu1 %v4957_v48, %s4579_s11 }
  0x30   :  { %v4964_v3 = vld [vmem:[%s7731_s0 + $0xac] sm:$0xf]  ;;  %150 = vst.msk [vmem:[#allocation2 + $0xd0] sm:$0xf] %vm123_vm1, %v4951_v18  ;;  %v400_v56 = vor.u32 %v399_v43, %v395_v33  ;;  %v427_v11 = vshll.u32 %v44_v35, 16  ;;  %v408_v12 = vshrl.u32 %v4846_v9, 16 }
  0x31   :  { %8065 = vst [vmem:[#allocation39_spill] sm:$0xff] %v4964_v3  ;;  %v47_v62 = vld [vmem:[%s7731_s0 + $0x80] sm:$0x1]  ;;  %153 = vst.msk [vmem:[#allocation2 + $0xe8] sm:$0xf] %vm123_vm1, %v4964_v3  ;;  %v390_v19 = vor.u32 %v389_v50, %v386_v46  ;;  %v419_v21 = vrot.slane %v417_v54, 5  ;;  %v4984_v34 = vsel %vm4661_vm3, %v367_v4, %v371_v55 }
  0x32   :  { %v423_v22 = vrot.slane %v421_v59, 4  ;;  %v411_v24 = vshll.u32 %v4846_v9, 16  ;;  %v4978_v29 = vld [vmem:[%s7731_s0 + $0xa8] sm:$0xf]  ;;  %8067 = vst [vmem:[#allocation41_spill] sm:$0xff] %v4984_v34  ;;  %v401_v35 = vrot.slane %v400_v56, 4  ;;  %987 = vrot.lane.b32.xlu0 %v4984_v34, %s4579_s11 }
  0x33   :  { %8066 = vst [vmem:[#allocation40_spill] sm:$0xff] %v4978_v29  ;;  %v429_v37 = vrot.slane %v427_v11, 5  ;;  %v410_v43 = vrot.slane %v408_v12, 4  ;;  %v4989_v46 = vld [vmem:[%s7731_s0 + $0xb8] sm:$0xf]  ;;  %v391_v50 = vrot.slane %v390_v19, 4 }
  0x34   :  { %8068 = vst [vmem:[#allocation42_spill] sm:$0xff] %v4989_v46  ;;  %152 = vst.msk [vmem:[#allocation2 + $0xe0] sm:$0xf] %vm123_vm1, %v4978_v29  ;;  %v424_v54 = vor.u32 %v423_v22, %v419_v21  ;;  %v413_v59 = vrot.slane %v411_v24, 5  ;;  %v441_v55 = vshll.u32 %v4852_v15, 16  ;;  %v5000_v4 = vsel %vm4661_vm3, %v401_v35, %v405_v45 }
  0x35   :  { %155 = vst.msk [vmem:[#allocation2 + $0xf8] sm:$0xf] %vm123_vm1, %v4989_v46  ;;  %8069 = vst [vmem:[#allocation43_spill] sm:$0xff] %v5000_v4  ;;  %v445_v56 = vshrl.u32 %v4852_v15, 16  ;;  %v451_v11 = vshll.u32 %v47_v62, 16  ;;  %v432_v12 = vshrl.u32 %v4871_v25, 16  ;;  %v5011_v22 = vsel %vm4661_vm3, %v391_v50, %v395_v33  ;;  %993 = vrot.lane.b32.xlu1 %v5000_v4, %s4579_s11 }
  0x36   :  { %v5007_v19 = vld [vmem:[%s7731_s0 + $0xb4] sm:$0xf]  ;;  %8071 = vst [vmem:[#allocation45_spill] sm:$0xff] %v5011_v22  ;;  %v425_v24 = vrot.slane %v424_v54, 4  ;;  %v414_v34 = vor.u32 %v413_v59, %v410_v43  ;;  %v443_v48 = vrot.slane %v441_v55, 5  ;;  %v435_v43 = vshll.u32 %v4871_v25, 16  ;;  %991 = vrot.lane.b32.xlu0 %v5011_v22, %s4579_s11 }
  0x37   :  { %8070 = vst [vmem:[#allocation44_spill] sm:$0xff] %v5007_v19  ;;  %v50_v45 = vld [vmem:[%s7731_s0 + $0x8c] sm:$0x1]  ;;  %v5019_v62 = vld [vmem:[%s7731_s0 + $0xdc] sm:$0xf]  ;;  %v447_v33 = vrot.slane %v445_v56, 4 }
  0x38   :  { %8072 = vst [vmem:[#allocation46_spill] sm:$0xff] %v5019_v62  ;;  %154 = vst.msk [vmem:[#allocation2 + $0xf0] sm:$0xf] %vm123_vm1, %v5007_v19  ;;  %v453_v35 = vrot.slane %v451_v11, 5  ;;  %v434_v50 = vrot.slane %v432_v12, 4  ;;  %v5037_v59 = vsel %vm4661_vm3, %v425_v24, %v429_v37  ;;  %v415_v55 = vrot.slane %v414_v34, 4 }
  0x39   :  { %v5029_v54 = vld [vmem:[%s7731_s0 + $0xd8] sm:$0xf]  ;;  %157 = vst.msk [vmem:[#allocation2 + $0x108] sm:$0xf] %vm123_vm1, %v5019_v62  ;;  %8074 = vst [vmem:[#allocation48_spill] sm:$0xff] %v5037_v59  ;;  %v465_v56 = vshll.u32 %v4880_v38, 16  ;;  %v448_v4 = vor.u32 %v447_v33, %v443_v48  ;;  %997 = vrot.lane.b32.xlu1 %v5037_v59, %s4579_s11 }
  0x3a   :  { %8073 = vst [vmem:[#allocation47_spill] sm:$0xff] %v5029_v54  ;;  %v469_v11 = vshrl.u32 %v4880_v38, 16  ;;  %v5044_v12 = vld [vmem:[%s7731_s0 + $0xe8] sm:$0xf]  ;;  %156 = vst.msk [vmem:[#allocation2 + $0x100] sm:$0xf] %vm123_vm1, %v5029_v54  ;;  %v5056_v37 = vsel %vm4661_vm3, %v415_v55, %v419_v21 }
  0x3b   :  { %8075 = vst [vmem:[#allocation49_spill] sm:$0xff] %v5044_v12  ;;  %v437_v28 = vrot.slane %v435_v43, 5  ;;  %v475_v22 = vshll.u32 %v50_v45, 16  ;;  %v456_v10 = vshrl.u32 %v4897_v60, 16  ;;  %v53_v34 = vld [vmem:[%s7731_s0 + $0x98] sm:$0x1]  ;;  %995 = vrot.lane.b32.xlu0 %v5056_v37, %s4579_s11 }
  0x3c   :  { %159 = vst.msk [vmem:[#allocation2 + $0x118] sm:$0xf] %vm123_vm1, %v5044_v12  ;;  %8076 = vst [vmem:[#allocation50_spill] sm:$0xff] %v5056_v37  ;;  %v467_v24 = vrot.slane %v465_v56, 5  ;;  %v471_v61 = vrot.slane %v469_v11, 4  ;;  %v459_v40 = vshll.u32 %v4897_v60, 16 }
  0x3d   :  { %v5062_v45 = vld [vmem:[%s7731_s0 + $0xe4] sm:$0xf]  ;;  %v449_v33 = vrot.slane %v448_v4, 4  ;;  %v438_v43 = vor.u32 %v437_v28, %v434_v50  ;;  %v477_v16 = vrot.slane %v475_v22, 5  ;;  %v458_v2 = vrot.slane %v456_v10, 4 }
  0x3e   :  { %8077 = vst [vmem:[#allocation51_spill] sm:$0xff] %v5062_v45  ;;  %v5069_v21 = vld [vmem:[%s7731_s0 + $0xf4] sm:$0xf]  ;;  %158 = vst.msk [vmem:[#allocation2 + $0x110] sm:$0xf] %vm123_vm1, %v5062_v45  ;;  %v472_v55 = vor.u32 %v471_v61, %v467_v24  ;;  %v461_v56 = vrot.slane %v459_v40, 5 }
  0x3f   :  { %8078 = vst [vmem:[#allocation52_spill] sm:$0xff] %v5069_v21  ;;  %v489_v11 = vshll.u32 %v4909_v6, 16  ;;  %v493_v4 = vshrl.u32 %v4909_v6, 16  ;;  %v56_v10 = vld [vmem:[%s7731_s0 + $0xa4] sm:$0x1]  ;;  %v5084_v28 = vsel %vm4661_vm3, %v449_v33, %v453_v35  ;;  %v439_v22 = vrot.slane %v438_v43, 4 }
  0x40   :  { %161 = vst.msk [vmem:[#allocation2 + $0x128] sm:$0xf] %vm123_vm1, %v5069_v21  ;;  %8079 = vst [vmem:[#allocation53_spill] sm:$0xff] %v5084_v28  ;;  %v499_v50 = vshll.u32 %v53_v34, 16  ;;  %v480_v61 = vshrl.u32 %v4923_v14, 16  ;;  %v473_v37 = vrot.slane %v472_v55, 4  ;;  %v462_v59 = vor.u32 %v461_v56, %v458_v2  ;;  %1001 = vrot.lane.b32.xlu1 %v5084_v28, %s4579_s11 }
  0x41   :  { %v5090_v40 = vld [vmem:[%s7731_s0 + $0xf0] sm:$0xf]  ;;  %v491_v51 = vrot.slane %v489_v11, 5  ;;  %v495_v44 = vrot.slane %v493_v4, 4  ;;  %v5095_v30 = vld [vmem:[%s7731_s0 + $0x100] sm:$0xf]  ;;  %v5103_v35 = vsel %vm4661_vm3, %v439_v22, %v443_v48 }
  0x42   :  { %8080 = vst [vmem:[#allocation54_spill] sm:$0xff] %v5090_v40  ;;  %8081 = vst [vmem:[#allocation55_spill] sm:$0xff] %v5095_v30  ;;  %v501_v34 = vrot.slane %v499_v50, 5  ;;  %v482_v33 = vrot.slane %v480_v61, 4  ;;  %v483_v2 = vshll.u32 %v4923_v14, 16  ;;  %999 = vrot.lane.b32.xlu0 %v5103_v35, %s4579_s11  ;;  %v5112_v43 = vsel %vm4661_vm3, %v473_v37, %v477_v16 }
  0x43   :  { %160 = vst.msk [vmem:[#allocation2 + $0x120] sm:$0xf] %vm123_vm1, %v5090_v40  ;;  %8082 = vst [vmem:[#allocation56_spill] sm:$0xff] %v5103_v35  ;;  %v463_v55 = vrot.slane %v462_v59, 4  ;;  %v496_v56 = vor.u32 %v495_v44, %v491_v51  ;;  %v513_v11 = vshll.u32 %v4932_v27, 16  ;;  %v517_v50 = vshrl.u32 %v4932_v27, 16 }
  0x44   :  { %163 = vst.msk [vmem:[#allocation2 + $0x138] sm:$0xf] %vm123_vm1, %v5095_v30  ;;  %8083 = vst [vmem:[#allocation57_spill] sm:$0xff] %v5112_v43  ;;  %v5118_v48 = vld [vmem:[%s7731_s0 + $0xfc] sm:$0xf]  ;;  %v485_v22 = vrot.slane %v483_v2, 5  ;;  %1005 = vrot.lane.b32.xlu1 %v5112_v43, %s4579_s11 }
  0x45   :  { %8084 = vst [vmem:[#allocation58_spill] sm:$0xff] %v5118_v48  ;;  %v5123_v4 = vld [vmem:[%s7731_s0 + $0x10c] sm:$0xf]  ;;  %v523_v61 = vshll.u32 %v56_v10, 16  ;;  %v504_v16 = vshrl.u32 %v4951_v18, 16  ;;  %v5136_v59 = vsel %vm4661_vm3, %v463_v55, %v467_v24  ;;  %v497_v37 = vrot.slane %v496_v56, 4 }
  0x46   :  { %8085 = vst [vmem:[#allocation59_spill] sm:$0xff] %v5123_v4  ;;  %v59_v44 = vld [vmem:[%s7731_s0 + $0xb0] sm:$0x1]  ;;  %162 = vst.msk [vmem:[#allocation2 + $0x130] sm:$0xf] %vm123_vm1, %v5118_v48  ;;  %v515_v2 = vrot.slane %v513_v11, 5  ;;  %v486_v28 = vor.u32 %v485_v22, %v482_v33  ;;  %1003 = vrot.lane.b32.xlu0 %v5136_v59, %s4579_s11 }
  0x47   :  { %165 = vst.msk [vmem:[#allocation2 + $0x148] sm:$0xf] %vm123_vm1, %v5123_v4  ;;  %8086 = vst [vmem:[#allocation60_spill] sm:$0xff] %v5136_v59  ;;  %v507_v10 = vshll.u32 %v4951_v18, 16  ;;  %v5142_v35 = vld [vmem:[%s7731_s0 + $0x108] sm:$0xf]  ;;  %v5157_v55 = vsel %vm4661_vm3, %v497_v37, %v501_v34 }
  0x48   :  { %8087 = vst [vmem:[#allocation61_spill] sm:$0xff] %v5142_v35  ;;  %v519_v13 = vrot.slane %v517_v50, 4  ;;  %v525_v42 = vrot.slane %v523_v61, 5  ;;  %v506_v49 = vrot.slane %v504_v16, 4  ;;  %v5149_v24 = vld [vmem:[%s7731_s0 + $0x118] sm:$0xf]  ;;  %1009 = vrot.lane.b32.xlu1 %v5157_v55, %s4579_s11 }
  0x49   :  { %8088 = vst [vmem:[#allocation62_spill] sm:$0xff] %v5149_v24  ;;  %164 = vst.msk [vmem:[#allocation2 + $0x140] sm:$0xf] %vm123_vm1, %v5142_v35  ;;  %v509_v56 = vrot.slane %v507_v10, 5  ;;  %v537_v33 = vshll.u32 %v4964_v3, 16  ;;  %v541_v11 = vshrl.u32 %v4964_v3, 16 }
  0x4a   :  { %8089 = vst [vmem:[#allocation63_spill] sm:$0xff] %v5157_v55  ;;  %v62_v22 = vld [vmem:[%s7731_s0 + $0xbc] sm:$0x1]  ;;  %167 = vst.msk [vmem:[#allocation2 + $0x158] sm:$0xf] %vm123_vm1, %v5149_v24  ;;  %v487_v50 = vrot.slane %v486_v28, 4  ;;  %v520_v61 = vor.u32 %v519_v13, %v515_v2 }
  0x4b   :  { %v547_v16 = vshll.u32 %v59_v44, 16  ;;  %v528_v59 = vshrl.u32 %v4978_v29, 16  ;;  %v5170_v34 = vld [vmem:[%s7731_s0 + $0x114] sm:$0xf]  ;;  %v510_v37 = vor.u32 %v509_v56, %v506_v49  ;;  %v539_v10 = vrot.slane %v537_v33, 5 }
  0x4c   :  { %8090 = vst [vmem:[#allocation64_spill] sm:$0xff] %v5170_v34  ;;  %v543_v43 = vrot.slane %v541_v11, 4  ;;  %v531_v3 = vshll.u32 %v4978_v29, 16  ;;  %v5176_v18 = vld [vmem:[%s7731_s0 + $0x124] sm:$0xf]  ;;  %v5184_v13 = vsel %vm4661_vm3, %v487_v50, %v491_v51  ;;  %v521_v49 = vrot.slane %v520_v61, 4 }
  0x4d   :  { %8091 = vst [vmem:[#allocation65_spill] sm:$0xff] %v5176_v18  ;;  %166 = vst.msk [vmem:[#allocation2 + $0x150] sm:$0xf] %vm123_vm1, %v5170_v34  ;;  %v549_v28 = vrot.slane %v547_v16, 5  ;;  %v530_v44 = vrot.slane %v528_v59, 4  ;;  %1007 = vrot.lane.b32.xlu0 %v5184_v13, %s4579_s11  ;;  %v511_v56 = vrot.slane %v510_v37, 4 }
  0x4e   :  { %8092 = vst [vmem:[#allocation66_spill] sm:$0xff] %v5184_v13  ;;  %169 = vst.msk [vmem:[#allocation2 + $0x168] sm:$0xf] %vm123_vm1, %v5176_v18  ;;  %v544_v33 = vor.u32 %v543_v43, %v539_v10  ;;  %v533_v11 = vrot.slane %v531_v3, 5  ;;  %v561_v29 = vshll.u32 %v4989_v46, 16  ;;  %v5198_v51 = vsel %vm4661_vm3, %v521_v49, %v525_v42 }
  0x4f   :  { %v5194_v55 = vld [vmem:[%s7731_s0 + $0x120] sm:$0xf]  ;;  %8093 = vst [vmem:[#allocation67_spill] sm:$0xff] %v5198_v51  ;;  %v565_v59 = vshrl.u32 %v4989_v46, 16  ;;  %v571_v50 = vshll.u32 %v62_v22, 16  ;;  %v552_v61 = vshrl.u32 %v5007_v19, 16  ;;  %v5211_v43 = vsel %vm4661_vm3, %v511_v56, %v515_v2  ;;  %1013 = vrot.lane.b32.xlu1 %v5198_v51, %s4579_s11 }
  0x50   :  { %v5205_v3 = vld [vmem:[%s7731_s0 + $0x130] sm:$0xf]  ;;  %168 = vst.msk [vmem:[#allocation2 + $0x160] sm:$0xf] %vm123_vm1, %v5194_v55  ;;  %8095 = vst [vmem:[#allocation69_spill] sm:$0xff] %v5211_v43  ;;  %v545_v16 = vrot.slane %v544_v33, 4  ;;  %v534_v42 = vor.u32 %v533_v11, %v530_v44 }
  0x51   :  { %8094 = vst [vmem:[#allocation68_spill] sm:$0xff] %v5205_v3  ;;  %v563_v37 = vrot.slane %v561_v29, 5  ;;  %v71_v22 = vld [vmem:[%s7731_s0 + $0xe0] sm:$0x1]  ;;  %v5219_v49 = vld [vmem:[%s7731_s0 + $0x12c] sm:$0xf]  ;;  %1011 = vrot.lane.b32.xlu0 %v5211_v43, %s4579_s11 }
  0x52   :  { %8096 = vst [vmem:[#allocation70_spill] sm:$0xff] %v5219_v49  ;;  %171 = vst.msk [vmem:[#allocation2 + $0x178] sm:$0xf] %vm123_vm1, %v5205_v3  ;;  %v567_v2 = vrot.slane %v565_v59, 4  ;;  %v573_v56 = vrot.slane %v571_v50, 5  ;;  %v554_v33 = vrot.slane %v552_v61, 4  ;;  %v5237_v11 = vsel %vm4661_vm3, %v545_v16, %v549_v28 }
  0x53   :  { %v555_v29 = vshll.u32 %v5007_v19, 16  ;;  %v5229_v44 = vld [vmem:[%s7731_s0 + $0x13c] sm:$0xf]  ;;  %170 = vst.msk [vmem:[#allocation2 + $0x170] sm:$0xf] %vm123_vm1, %v5219_v49  ;;  %8098 = vst [vmem:[#allocation72_spill] sm:$0xff] %v5237_v11  ;;  %1017 = vrot.lane.b32.xlu1 %v5237_v11, %s4579_s11 }
  0x54   :  { %8097 = vst [vmem:[#allocation71_spill] sm:$0xff] %v5229_v44  ;;  %v535_v59 = vrot.slane %v534_v42, 4  ;;  %v585_v50 = vshll.u32 %v5019_v62, 16  ;;  %v589_v61 = vshrl.u32 %v5019_v62, 16  ;;  %v74_v51 = vld [vmem:[%s7731_s0 + $0xec] sm:$0x1]  ;;  %v568_v13 = vor.u32 %v567_v2, %v563_v37 }
  0x55   :  { %173 = vst.msk [vmem:[#allocation2 + $0x188] sm:$0xf] %vm123_vm1, %v5229_v44  ;;  %v557_v19 = vrot.slane %v555_v29, 5  ;;  %v595_v46 = vshll.u32 %v71_v22, 16  ;;  %v576_v43 = vshrl.u32 %v5029_v54, 16  ;;  %v579_v27 = vshll.u32 %v5029_v54, 16 }
  0x56   :  { %v5250_v28 = vld [vmem:[%s7731_s0 + $0x138] sm:$0xf]  ;;  %v5254_v16 = vsel %vm4661_vm3, %v535_v59, %v539_v10  ;;  %v587_v42 = vrot.slane %v585_v50, 5  ;;  %v591_v62 = vrot.slane %v589_v61, 4  ;;  %v5260_v2 = vld [vmem:[%s7731_s0 + $0x148] sm:$0xf] }
  0x57   :  { %8099 = vst [vmem:[#allocation73_spill] sm:$0xff] %v5250_v28  ;;  %8100 = vst [vmem:[#allocation74_spill] sm:$0xff] %v5254_v16  ;;  %v569_v22 = vrot.slane %v568_v13, 4  ;;  %v558_v29 = vor.u32 %v557_v19, %v554_v33  ;;  %v597_v14 = vrot.slane %v595_v46, 5  ;;  %v578_v10 = vrot.slane %v576_v43, 4  ;;  %1015 = vrot.lane.b32.xlu0 %v5254_v16, %s4579_s11 }
  0x58   :  { %8101 = vst [vmem:[#allocation75_spill] sm:$0xff] %v5260_v2  ;;  %172 = vst.msk [vmem:[#allocation2 + $0x180] sm:$0xf] %vm123_vm1, %v5250_v28  ;;  %v592_v59 = vor.u32 %v591_v62, %v587_v42  ;;  %v581_v50 = vrot.slane %v579_v27, 5  ;;  %v609_v61 = vshll.u32 %v5044_v12, 16  ;;  %v613_v54 = vshrl.u32 %v5044_v12, 16 }
  0x59   :  { %175 = vst.msk [vmem:[#allocation2 + $0x198] sm:$0xf] %vm123_vm1, %v5260_v2  ;;  %v5275_v11 = vld [vmem:[%s7731_s0 + $0x144] sm:$0xf]  ;;  %v5279_v46 = vsel %vm4661_vm3, %v569_v22, %v573_v56  ;;  %v559_v19 = vrot.slane %v558_v29, 4  ;;  %v619_v13 = vshll.u32 %v74_v51, 16 }
  0x5a   :  { %8102 = vst [vmem:[#allocation76_spill] sm:$0xff] %v5275_v11  ;;  %8103 = vst [vmem:[#allocation77_spill] sm:$0xff] %v5279_v46  ;;  %v600_v43 = vshrl.u32 %v5062_v45, 16  ;;  %v5285_v27 = vld [vmem:[%s7731_s0 + $0x154] sm:$0xf]  ;;  %v593_v62 = vrot.slane %v592_v59, 4  ;;  %v582_v33 = vor.u32 %v581_v50, %v578_v10  ;;  %1021 = vrot.lane.b32.xlu1 %v5279_v46, %s4579_s11 }
  0x5b   :  { %8104 = vst [vmem:[#allocation78_spill] sm:$0xff] %v5285_v27  ;;  %174 = vst.msk [vmem:[#allocation2 + $0x190] sm:$0xf] %vm123_vm1, %v5275_v11  ;;  %v611_v16 = vrot.slane %v609_v61, 5  ;;  %v615_v12 = vrot.slane %v613_v54, 4  ;;  %v5300_v51 = vsel %vm4661_vm3, %v559_v19, %v563_v37  ;;  %v621_v22 = vrot.slane %v619_v13, 5 }
  0x5c   :  { %v5292_v56 = vld [vmem:[%s7731_s0 + $0xf8] sm:$0x1]  ;;  %177 = vst.msk [vmem:[#allocation2 + $0x1a8] sm:$0xf] %vm123_vm1, %v5285_v27  ;;  %8106 = vst [vmem:[#allocation80_spill] sm:$0xff] %v5300_v51  ;;  %v602_v29 = vrot.slane %v600_v43, 4  ;;  %1019 = vrot.lane.b32.xlu0 %v5300_v51, %s4579_s11  ;;  %v598_v59 = vsel %vm4661_vm3, %v593_v62, %v597_v14 }
  0x5d   :  { %8105 = vst [vmem:[#allocation79_spill] sm:$0xff] %v5292_v56  ;;  %v603_v10 = vshll.u32 %v5062_v45, 16  ;;  %v5306_v54 = vld [vmem:[%s7731_s0 + $0x150] sm:$0xf]  ;;  %v583_v50 = vrot.slane %v582_v33, 4  ;;  %v616_v61 = vor.u32 %v615_v12, %v611_v16  ;;  %v633_v37 = vshll.u32 %v5069_v21, 16 }
  0x5e   :  { %8107 = vst [vmem:[#allocation81_spill] sm:$0xff] %v5306_v54  ;;  %v5316_v19 = vld [vmem:[%s7731_s0 + $0x104] sm:$0x1]  ;;  %v5321_v13 = vld [vmem:[%s7731_s0 + $0x160] sm:$0xf]  ;;  %v637_v14 = vshrl.u32 %v5069_v21, 16  ;;  %1025 = vrot.lane.b32.xlu1 %v598_v59, %s4579_s11 }
  0x5f   :  { %8108 = vst [vmem:[#allocation82_spill] sm:$0xff] %v5316_v19  ;;  %8109 = vst [vmem:[#allocation83_spill] sm:$0xff] %v5321_v13  ;;  %v605_v43 = vrot.slane %v603_v10, 5  ;;  %v643_v12 = vshll.u32 %v5292_v56, 16  ;;  %v624_v62 = vshrl.u32 %v5090_v40, 16  ;;  %v588_v51 = vsel %vm4661_vm3, %v583_v50, %v587_v42 }
  0x60   :  { %176 = vst.msk [vmem:[#allocation2 + $0x1a0] sm:$0xf] %vm123_vm1, %v5306_v54  ;;  %v5331_v33 = vld [vmem:[%s7731_s0 + $0x15c] sm:$0xf]  ;;  %179 = vst.msk [vmem:[#allocation2 + $0x1b8] sm:$0xf] %vm123_vm1, %v5321_v13  ;;  %1023 = vrot.lane.b32.xlu0 %v588_v51, %s4579_s11 }
  0x61   :  { %8110 = vst [vmem:[#allocation84_spill] sm:$0xff] %v5331_v33  ;;  %v617_v46 = vrot.slane %v616_v61, 4  ;;  %v635_v45 = vrot.slane %v633_v37, 5  ;;  %v627_v10 = vshll.u32 %v5090_v40, 16  ;;  %v5341_v56 = vld [vmem:[%s7731_s0 + $0x16c] sm:$0xf]  ;;  %v606_v21 = vor.u32 %v605_v43, %v602_v29 }
  0x62   :  { %8111 = vst [vmem:[#allocation85_spill] sm:$0xff] %v5341_v56  ;;  %178 = vst.msk [vmem:[#allocation2 + $0x1b0] sm:$0xf] %vm123_vm1, %v5331_v33  ;;  %v639_v6 = vrot.slane %v637_v14, 4  ;;  %v645_v60 = vrot.slane %v643_v12, 5  ;;  %v626_v38 = vrot.slane %v624_v62, 4 }
  0x63   :  { %181 = vst.msk [vmem:[#allocation2 + $0x1c8] sm:$0xf] %vm123_vm1, %v5341_v56  ;;  %v5351_v42 = vsel %vm4661_vm3, %v617_v46, %v621_v22  ;;  %v629_v50 = vrot.slane %v627_v10, 5  ;;  %v657_v61 = vshll.u32 %v5095_v30, 16  ;;  %v661_v37 = vshrl.u32 %v5095_v30, 16 }
  0x64   :  { %8112 = vst [vmem:[#allocation86_spill] sm:$0xff] %v5351_v42  ;;  %v5358_v29 = vld [vmem:[%s7731_s0 + $0x168] sm:$0xf]  ;;  %v607_v59 = vrot.slane %v606_v21, 4  ;;  %v640_v43 = vor.u32 %v639_v6, %v635_v45  ;;  %v667_v14 = vshll.u32 %v5316_v19, 16  ;;  %v648_v51 = vshrl.u32 %v5118_v48, 16  ;;  %1029 = vrot.lane.b32.xlu1 %v5351_v42, %s4579_s11 }
  0x65   :  { %8113 = vst [vmem:[#allocation87_spill] sm:$0xff] %v5358_v29  ;;  %180 = vst.msk [vmem:[#allocation2 + $0x1c0] sm:$0xf] %vm123_vm1, %v5358_v29  ;;  %v5367_v46 = vld [vmem:[%s7731_s0 + $0x178] sm:$0xf]  ;;  %v630_v22 = vor.u32 %v629_v50, %v626_v38  ;;  %v659_v12 = vrot.slane %v657_v61, 5 }
  0x66   :  { %8114 = vst [vmem:[#allocation88_spill] sm:$0xff] %v5367_v46  ;;  %v663_v62 = vrot.slane %v661_v37, 4  ;;  %v651_v10 = vshll.u32 %v5118_v48, 16  ;;  %v5373_v6 = vld [vmem:[%s7731_s0 + $0x110] sm:$0x1]  ;;  %v5381_v21 = vsel %vm4661_vm3, %v607_v59, %v611_v16  ;;  %v641_v38 = vrot.slane %v640_v43, 4 }
  0x67   :  { %8115 = vst [vmem:[#allocation89_spill] sm:$0xff] %v5373_v6  ;;  %183 = vst.msk [vmem:[#allocation2 + $0x1d8] sm:$0xf] %vm123_vm1, %v5367_v46  ;;  %v669_v50 = vrot.slane %v667_v14, 5  ;;  %v650_v61 = vrot.slane %v648_v51, 4  ;;  %1027 = vrot.lane.b32.xlu0 %v5381_v21, %s4579_s11  ;;  %v631_v48 = vrot.slane %v630_v22, 4 }
  0x68   :  { %8116 = vst [vmem:[#allocation90_spill] sm:$0xff] %v5381_v21  ;;  %v5386_v37 = vld [vmem:[%s7731_s0 + $0x174] sm:$0xf]  ;;  %v664_v19 = vor.u32 %v663_v62, %v659_v12  ;;  %v653_v30 = vrot.slane %v651_v10, 5  ;;  %v681_v42 = vshll.u32 %v5123_v4, 16  ;;  %v5400_v59 = vsel %vm4661_vm3, %v641_v38, %v645_v60 }
  0x69   :  { %8117 = vst [vmem:[#allocation91_spill] sm:$0xff] %v5386_v37  ;;  %182 = vst.msk [vmem:[#allocation2 + $0x1d0] sm:$0xf] %vm123_vm1, %v5386_v37  ;;  %v5396_v16 = vld [vmem:[%s7731_s0 + $0x184] sm:$0xf]  ;;  %v685_v43 = vshrl.u32 %v5123_v4, 16  ;;  %v5414_v62 = vsel %vm4661_vm3, %v631_v48, %v635_v45  ;;  %1033 = vrot.lane.b32.xlu1 %v5400_v59, %s4579_s11 }
  0x6a   :  { %8118 = vst [vmem:[#allocation92_spill] sm:$0xff] %v5396_v16  ;;  %8119 = vst [vmem:[#allocation93_spill] sm:$0xff] %v5400_v59  ;;  %v691_v14 = vshll.u32 %v5373_v6, 16  ;;  %v672_v51 = vshrl.u32 %v5142_v35, 16  ;;  %v5408_v22 = vld [vmem:[%s7731_s0 + $0x11c] sm:$0x1]  ;;  %v654_v10 = vor.u32 %v653_v30, %v650_v61 }
  0x6b   :  { %8120 = vst [vmem:[#allocation94_spill] sm:$0xff] %v5408_v22  ;;  %185 = vst.msk [vmem:[#allocation2 + $0x1e8] sm:$0xf] %vm123_vm1, %v5396_v16  ;;  %v665_v60 = vrot.slane %v664_v19, 4  ;;  %v683_v38 = vrot.slane %v681_v42, 5  ;;  %v687_v4 = vrot.slane %v685_v43, 4  ;;  %1031 = vrot.lane.b32.xlu0 %v5414_v62, %s4579_s11 }
  0x6c   :  { %8121 = vst [vmem:[#allocation95_spill] sm:$0xff] %v5414_v62  ;;  %v5419_v21 = vld [vmem:[%s7731_s0 + $0x180] sm:$0xf]  ;;  %v5424_v6 = vld [vmem:[%s7731_s0 + $0x190] sm:$0xf]  ;;  %v693_v40 = vrot.slane %v691_v14, 5 }
  0x6d   :  { %8122 = vst [vmem:[#allocation96_spill] sm:$0xff] %v5419_v21  ;;  %8123 = vst [vmem:[#allocation97_spill] sm:$0xff] %v5424_v6  ;;  %v674_v45 = vrot.slane %v672_v51, 4  ;;  %v675_v48 = vshll.u32 %v5142_v35, 16  ;;  %v5437_v30 = vsel %vm4661_vm3, %v665_v60, %v669_v50  ;;  %v655_v19 = vrot.slane %v654_v10, 4 }
  0x6e   :  { %184 = vst.msk [vmem:[#allocation2 + $0x1e0] sm:$0xf] %vm123_vm1, %v5419_v21  ;;  %187 = vst.msk [vmem:[#allocation2 + $0x1f8] sm:$0xf] %vm123_vm1, %v5424_v6  ;;  %v705_v42 = vshll.u32 %v5149_v24, 16  ;;  %v709_v61 = vshrl.u32 %v5149_v24, 16  ;;  %v688_v14 = vor.u32 %v687_v4, %v683_v38  ;;  %1037 = vrot.lane.b32.xlu1 %v5437_v30, %s4579_s11 }
  0x6f   :  { %8124 = vst [vmem:[#allocation98_spill] sm:$0xff] %v5437_v30  ;;  %v5444_v43 = vld [vmem:[%s7731_s0 + $0x18c] sm:$0xf]  ;;  %v677_v51 = vrot.slane %v675_v48, 5  ;;  %v715_v59 = vshll.u32 %v5408_v22, 16  ;;  %v696_v62 = vshrl.u32 %v5170_v34, 16  ;;  %v5452_v50 = vsel %vm4661_vm3, %v655_v19, %v659_v12 }
  0x70   :  { %8125 = vst [vmem:[#allocation99_spill] sm:$0xff] %v5444_v43  ;;  %186 = vst.msk [vmem:[#allocation2 + $0x1f0] sm:$0xf] %vm123_vm1, %v5444_v43  ;;  %v707_v60 = vrot.slane %v705_v42, 5  ;;  %v711_v10 = vrot.slane %v709_v61, 4  ;;  %v699_v24 = vshll.u32 %v5170_v34, 16  ;;  %1035 = vrot.lane.b32.xlu0 %v5452_v50, %s4579_s11 }
  0x71   :  { %8126 = vst [vmem:[#allocation100_spill] sm:$0xff] %v5452_v50  ;;  %v5458_v4 = vld [vmem:[%s7731_s0 + $0x128] sm:$0x1]  ;;  %v689_v48 = vrot.slane %v688_v14, 4  ;;  %v678_v22 = vor.u32 %v677_v51, %v674_v45  ;;  %v717_v35 = vrot.slane %v715_v59, 5  ;;  %v698_v25 = vrot.slane %v696_v62, 4 }
  0x72   :  { %v712_v12 = vor.u32 %v711_v10, %v707_v60  ;;  %v701_v19 = vrot.slane %v699_v24, 5  ;;  %v729_v42 = vshll.u32 %v5176_v18, 16  ;;  %v733_v61 = vshrl.u32 %v5176_v18, 16  ;;  %v5475_v24 = vld [vmem:[%s7731_s0 + $0x134] sm:$0x1] }
  0x73   :  { %v5468_v34 = vsel %vm4661_vm3, %v689_v48, %v693_v40  ;;  %v679_v15 = vrot.slane %v678_v22, 4  ;;  %v739_v30 = vshll.u32 %v5458_v4, 16  ;;  %v720_v45 = vshrl.u32 %v5194_v55, 16  ;;  %8128 = vst [vmem:[#allocation102_spill] sm:$0xff] %v5475_v24 }
  0x74   :  { %8127 = vst [vmem:[#allocation101_spill] sm:$0xff] %v5468_v34  ;;  %v713_v59 = vrot.slane %v712_v12, 4  ;;  %v702_v62 = vor.u32 %v701_v19, %v698_v25  ;;  %v731_v14 = vrot.slane %v729_v42, 5  ;;  %v735_v51 = vrot.slane %v733_v61, 4  ;;  %1041 = vrot.lane.b32.xlu1 %v5468_v34, %s4579_s11 }
  0x75   :  { %v5481_v40 = vsel %vm4661_vm3, %v679_v15, %v683_v38  ;;  %v741_v22 = vrot.slane %v739_v30, 5  ;;  %v722_v10 = vrot.slane %v720_v45, 4  ;;  %v723_v48 = vshll.u32 %v5194_v55, 16 }
  0x76   :  { %8129 = vst [vmem:[#allocation103_spill] sm:$0xff] %v5481_v40  ;;  %1039 = vrot.lane.b32.xlu0 %v5481_v40, %s4579_s11  ;;  %v5488_v25 = vsel %vm4661_vm3, %v713_v59, %v717_v35  ;;  %v703_v12 = vrot.slane %v702_v62, 4  ;;  %v736_v19 = vor.u32 %v735_v51, %v731_v14  ;;  %v753_v42 = vshll.u32 %v5205_v3, 16  ;;  %v5502_v59 = vld [vmem:[%s7731_s0 + $0x140] sm:$0x1] }
  0x77   :  { %8130 = vst [vmem:[#allocation104_spill] sm:$0xff] %v5488_v25  ;;  %v725_v61 = vrot.slane %v723_v48, 5  ;;  %v757_v34 = vshrl.u32 %v5205_v3, 16  ;;  %v763_v15 = vshll.u32 %v5475_v24, 16  ;;  %v744_v38 = vshrl.u32 %v5219_v49, 16 }
  0x78   :  { %v5496_v30 = vsel %vm4661_vm3, %v703_v12, %v707_v60  ;;  %v737_v45 = vrot.slane %v736_v19, 4  ;;  %v755_v40 = vrot.slane %v753_v42, 5  ;;  %v747_v35 = vshll.u32 %v5219_v49, 16  ;;  %1045 = vrot.lane.b32.xlu1 %v5488_v25, %s4579_s11 }
  0x79   :  { %8131 = vst [vmem:[#allocation105_spill] sm:$0xff] %v5496_v30  ;;  %v726_v62 = vor.u32 %v725_v61, %v722_v10  ;;  %v759_v51 = vrot.slane %v757_v34, 4  ;;  %v765_v48 = vrot.slane %v763_v15, 5  ;;  %v746_v50 = vrot.slane %v744_v38, 4 }
  0x7a   :  { %1043 = vrot.lane.b32.xlu0 %v5496_v30, %s4579_s11  ;;  %v5510_v60 = vsel %vm4661_vm3, %v737_v45, %v741_v22  ;;  %v749_v12 = vrot.slane %v747_v35, 5  ;;  %v777_v19 = vshll.u32 %v5229_v44, 16  ;;  %v781_v42 = vshrl.u32 %v5229_v44, 16  ;;  %v5520_v22 = vld [vmem:[%s7731_s0 + $0x14c] sm:$0x1] }
  0x7b   :  { %8132 = vst [vmem:[#allocation106_spill] sm:$0xff] %v5510_v60  ;;  %v727_v49 = vrot.slane %v726_v62, 4  ;;  %v760_v24 = vor.u32 %v759_v51, %v755_v40  ;;  %v787_v25 = vshll.u32 %v5502_v59, 16  ;;  %v768_v34 = vshrl.u32 %v5250_v28, 16 }
  0x7c   :  { %v750_v10 = vor.u32 %v749_v12, %v746_v50  ;;  %v779_v61 = vrot.slane %v777_v19, 5  ;;  %v783_v15 = vrot.slane %v781_v42, 4  ;;  %v771_v38 = vshll.u32 %v5250_v28, 16  ;;  %1049 = vrot.lane.b32.xlu1 %v5510_v60, %s4579_s11 }
  0x7d   :  { %v5526_v45 = vsel %vm4661_vm3, %v727_v49, %v731_v14  ;;  %v761_v35 = vrot.slane %v760_v24, 4  ;;  %v789_v62 = vrot.slane %v787_v25, 5  ;;  %v770_v51 = vrot.slane %v768_v34, 4 }
  0x7e   :  { %8133 = vst [vmem:[#allocation107_spill] sm:$0xff] %v5526_v45  ;;  %1047 = vrot.lane.b32.xlu0 %v5526_v45, %s4579_s11  ;;  %v751_v50 = vrot.slane %v750_v10, 4  ;;  %v784_v12 = vor.u32 %v783_v15, %v779_v61  ;;  %v773_v19 = vrot.slane %v771_v38, 5  ;;  %v801_v42 = vshll.u32 %v5260_v2, 16  ;;  %v5545_v15 = vld [vmem:[%s7731_s0 + $0x158] sm:$0x1] }
  0x7f   :  { %v5533_v30 = vsel %vm4661_vm3, %v761_v35, %v765_v48  ;;  %v805_v60 = vshrl.u32 %v5260_v2, 16  ;;  %v811_v49 = vshll.u32 %v5520_v22, 16  ;;  %v792_v14 = vshrl.u32 %v5275_v11, 16  ;;  %8136 = vst [vmem:[#allocation110_spill] sm:$0xff] %v5545_v15 }
  0x80   :  { %8134 = vst [vmem:[#allocation108_spill] sm:$0xff] %v5533_v30  ;;  %v5540_v24 = vsel %vm4661_vm3, %v751_v50, %v755_v40  ;;  %v785_v25 = vrot.slane %v784_v12, 4  ;;  %v774_v34 = vor.u32 %v773_v19, %v770_v51  ;;  %v803_v10 = vrot.slane %v801_v42, 5  ;;  %1053 = vrot.lane.b32.xlu1 %v5533_v30, %s4579_s11 }
  0x81   :  { %8135 = vst [vmem:[#allocation109_spill] sm:$0xff] %v5540_v24  ;;  %v807_v48 = vrot.slane %v805_v60, 4  ;;  %v813_v38 = vrot.slane %v811_v49, 5  ;;  %v794_v35 = vrot.slane %v792_v14, 4  ;;  %v795_v45 = vshll.u32 %v5275_v11, 16 }
  0x82   :  { %1051 = vrot.lane.b32.xlu0 %v5540_v24, %s4579_s11  ;;  %v5554_v40 = vsel %vm4661_vm3, %v785_v25, %v789_v62  ;;  %v775_v51 = vrot.slane %v774_v34, 4  ;;  %v825_v50 = vshll.u32 %v5285_v27, 16  ;;  %v829_v12 = vshrl.u32 %v5285_v27, 16  ;;  %v5568_v25 = vld [vmem:[%s7731_s0 + $0x164] sm:$0x1] }
  0x83   :  { %8137 = vst [vmem:[#allocation111_spill] sm:$0xff] %v5554_v40  ;;  %v808_v19 = vor.u32 %v807_v48, %v803_v10  ;;  %v797_v42 = vrot.slane %v795_v45, 5  ;;  %v835_v60 = vshll.u32 %v5545_v15, 16  ;;  %v816_v49 = vshrl.u32 %v5306_v54, 16 }
  0x84   :  { %v5562_v14 = vsel %vm4661_vm3, %v775_v51, %v779_v61  ;;  %v827_v24 = vrot.slane %v825_v50, 5  ;;  %v831_v30 = vrot.slane %v829_v12, 4  ;;  %v819_v62 = vshll.u32 %v5306_v54, 16  ;;  %1057 = vrot.lane.b32.xlu1 %v5554_v40, %s4579_s11 }
  0x85   :  { %8138 = vst [vmem:[#allocation112_spill] sm:$0xff] %v5562_v14  ;;  %v809_v45 = vrot.slane %v808_v19, 4  ;;  %v798_v34 = vor.u32 %v797_v42, %v794_v35  ;;  %v837_v48 = vrot.slane %v835_v60, 5  ;;  %v818_v15 = vrot.slane %v816_v49, 4 }
  0x86   :  { %1055 = vrot.lane.b32.xlu0 %v5562_v14, %s4579_s11  ;;  %v832_v61 = vor.u32 %v831_v30, %v827_v24  ;;  %v821_v51 = vrot.slane %v819_v62, 5  ;;  %v849_v50 = vshll.u32 %v5321_v13, 16  ;;  %v853_v12 = vshrl.u32 %v5321_v13, 16  ;;  %v5585_v30 = vld [vmem:[%s7731_s0 + $0x170] sm:$0x1] }
  0x87   :  { %v5578_v54 = vsel %vm4661_vm3, %v809_v45, %v813_v38  ;;  %v799_v27 = vrot.slane %v798_v34, 4  ;;  %v859_v40 = vshll.u32 %v5568_v25, 16  ;;  %v840_v35 = vshrl.u32 %v5331_v33, 16  ;;  %8140 = vst [vmem:[#allocation114_spill] sm:$0xff] %v5585_v30 }
  0x88   :  { %8139 = vst [vmem:[#allocation113_spill] sm:$0xff] %v5578_v54  ;;  %v833_v19 = vrot.slane %v832_v61, 4  ;;  %v822_v42 = vor.u32 %v821_v51, %v818_v15  ;;  %v851_v60 = vrot.slane %v849_v50, 5  ;;  %v855_v49 = vrot.slane %v853_v12, 4  ;;  %1061 = vrot.lane.b32.xlu1 %v5578_v54, %s4579_s11 }
  0x89   :  { %v5591_v38 = vsel %vm4661_vm3, %v799_v27, %v803_v10  ;;  %v861_v62 = vrot.slane %v859_v40, 5  ;;  %v842_v45 = vrot.slane %v840_v35, 4  ;;  %v843_v34 = vshll.u32 %v5331_v33, 16 }
  0x8a   :  { %8141 = vst [vmem:[#allocation115_spill] sm:$0xff] %v5591_v38  ;;  %1059 = vrot.lane.b32.xlu0 %v5591_v38, %s4579_s11  ;;  %v5598_v15 = vsel %vm4661_vm3, %v833_v19, %v837_v48  ;;  %v823_v61 = vrot.slane %v822_v42, 4  ;;  %v856_v51 = vor.u32 %v855_v49, %v851_v60  ;;  %v873_v50 = vshll.u32 %v5341_v56, 16  ;;  %v5612_v19 = vld [vmem:[%s7731_s0 + $0x17c] sm:$0x1] }
  0x8b   :  { %8142 = vst [vmem:[#allocation116_spill] sm:$0xff] %v5598_v15  ;;  %v845_v12 = vrot.slane %v843_v34, 5  ;;  %v877_v54 = vshrl.u32 %v5341_v56, 16  ;;  %v883_v27 = vshll.u32 %v5585_v30, 16  ;;  %v864_v10 = vshrl.u32 %v5358_v29, 16 }
  0x8c   :  { %v5606_v40 = vsel %vm4661_vm3, %v823_v61, %v827_v24  ;;  %v857_v35 = vrot.slane %v856_v51, 4  ;;  %v875_v38 = vrot.slane %v873_v50, 5  ;;  %v867_v48 = vshll.u32 %v5358_v29, 16  ;;  %1065 = vrot.lane.b32.xlu1 %v5598_v15, %s4579_s11 }
  0x8d   :  { %8143 = vst [vmem:[#allocation117_spill] sm:$0xff] %v5606_v40  ;;  %v846_v42 = vor.u32 %v845_v12, %v842_v45  ;;  %v879_v49 = vrot.slane %v877_v54, 4  ;;  %v885_v34 = vrot.slane %v883_v27, 5  ;;  %v866_v14 = vrot.slane %v864_v10, 4 }
  0x8e   :  { %vm1151_vm4 = vcmask 257152   ;;  %1063 = vrot.lane.b32.xlu0 %v5606_v40, %s4579_s11  ;;  %v5620_v24 = vsel %vm4661_vm3, %v857_v35, %v861_v62  ;;  %v869_v61 = vrot.slane %v867_v48, 5  ;;  %v897_v51 = vshll.u32 %v5367_v46, 16  ;;  %v5630_v62 = vld [vmem:[%s7731_s0 + $0x188] sm:$0x1] }
  0x8f   :  { %8144 = vst [vmem:[#allocation118_spill] sm:$0xff] %v5620_v24  ;;  %v901_v50 = vshrl.u32 %v5367_v46, 16  ;;  %v847_v29 = vrot.slane %v846_v42, 4  ;;  %v880_v30 = vor.u32 %v879_v49, %v875_v38  ;;  %v907_v45 = vshll.u32 %v5612_v19, 16 }
  0x90   :  { %v888_v54 = vshrl.u32 %v5386_v37, 16  ;;  %v870_v12 = vor.u32 %v869_v61, %v866_v14  ;;  %v899_v27 = vrot.slane %v897_v51, 5  ;;  %v891_v40 = vshll.u32 %v5386_v37, 16  ;;  %1069 = vrot.lane.b32.xlu1 %v5620_v24, %s4579_s11 }
  0x91   :  { %v903_v10 = vrot.slane %v901_v50, 4  ;;  %v5636_v35 = vsel %vm4661_vm3, %v847_v29, %v851_v60  ;;  %v881_v48 = vrot.slane %v880_v30, 4  ;;  %v909_v42 = vrot.slane %v907_v45, 5 }
  0x92   :  { %8145 = vst [vmem:[#allocation119_spill] sm:$0xff] %v5636_v35  ;;  %v890_v49 = vrot.slane %v888_v54, 4  ;;  %1067 = vrot.lane.b32.xlu0 %v5636_v35, %s4579_s11  ;;  %v871_v14 = vrot.slane %v870_v12, 4  ;;  %v893_v51 = vrot.slane %v891_v40, 5  ;;  %v921_v50 = vshll.u32 %v5396_v16, 16 }
  0x93   :  { %v904_v61 = vor.u32 %v903_v10, %v899_v27  ;;  %v5643_v15 = vsel %vm4661_vm3, %v881_v48, %v885_v34  ;;  %v925_v24 = vshrl.u32 %v5396_v16, 16  ;;  %v931_v29 = vshll.u32 %v5630_v62, 16  ;;  %v5655_v40 = vld [vmem:[%s7731_s0 + $0x194] sm:$0x1] }
  0x94   :  { %8146 = vst [vmem:[#allocation120_spill] sm:$0xff] %v5643_v15  ;;  %v912_v60 = vshrl.u32 %v5419_v21, 16  ;;  %v5650_v30 = vsel %vm4661_vm3, %v871_v14, %v875_v38  ;;  %v894_v54 = vor.u32 %v893_v51, %v890_v49  ;;  %v923_v12 = vrot.slane %v921_v50, 5  ;;  %8148 = vst [vmem:[#allocation122_spill] sm:$0xff] %v5655_v40  ;;  %1073 = vrot.lane.b32.xlu1 %v5643_v15, %s4579_s11  ;;  %v964_v51 = vpop.permute.xlu1 %963 }
  0x95   :  { %8147 = vst [vmem:[#allocation121_spill] sm:$0xff] %v5650_v30  ;;  %v905_v45 = vrot.slane %v904_v61, 4  ;;  %v927_v34 = vrot.slane %v925_v24, 4  ;;  %v933_v10 = vrot.slane %v931_v29, 5  ;;  %v915_v35 = vshll.u32 %v5419_v21, 16 }
  0x96   :  { %v914_v48 = vrot.slane %v912_v60, 4  ;;  %1071 = vrot.lane.b32.xlu0 %v5650_v30, %s4579_s11  ;;  %v895_v49 = vrot.slane %v894_v54, 4  ;;  %v945_v14 = vshll.u32 %v5424_v6, 16  ;;  %v949_v61 = vshrl.u32 %v5424_v6, 16  ;;  %1154 = vst.msk [vmem:[#allocation2 + $0x10] sm:$0xf] %vm1151_vm4, %v964_v51  ;;  %v960_v60 = vpop.permute.xlu0 %959 }
  0x97   :  { %v5664_v38 = vsel %vm4661_vm3, %v905_v45, %v909_v42  ;;  %v928_v50 = vor.u32 %v927_v34, %v923_v12  ;;  %v917_v15 = vrot.slane %v915_v35, 5  ;;  %v955_v24 = vshll.u32 %v5655_v40, 16  ;;  %1152 = vst.msk [vmem:[#allocation2] sm:$0xf] %vm1151_vm4, %v960_v60 }
  0x98   :  { %8149 = vst [vmem:[#allocation123_spill] sm:$0xff] %v5664_v38  ;;  %v936_v29 = vshrl.u32 %v5444_v43, 16  ;;  %v5673_v30 = vsel %vm4661_vm3, %v895_v49, %v899_v27  ;;  %v947_v42 = vrot.slane %v945_v14, 5  ;;  %v951_v45 = vrot.slane %v949_v61, 4  ;;  %1077 = vrot.lane.b32.xlu1 %v5664_v38, %s4579_s11  ;;  %v966_v27 = vpop.permute.xlu1 %965 }
  0x99   :  { %8150 = vst [vmem:[#allocation124_spill] sm:$0xff] %v5673_v30  ;;  %v939_v54 = vshll.u32 %v5444_v43, 16  ;;  %v929_v35 = vrot.slane %v928_v50, 4  ;;  %v918_v34 = vor.u32 %v917_v15, %v914_v48  ;;  %v957_v40 = vrot.slane %v955_v24, 5  ;;  %v4555_v48 = vld [vmem:[%s7731_s0 + $0x8] sm:$0x1] }
  0x9a   :  { %v938_v6 = vrot.slane %v936_v29, 4  ;;  %1075 = vrot.lane.b32.xlu0 %v5673_v30, %s4579_s11  ;;  %v952_v51 = vor.u32 %v951_v45, %v947_v42  ;;  %vm1312_vm5 = vcmask 1042432   ;;  %vm1313_vm6 = vcmask 1046532   ;;  %1155 = vst.msk [vmem:[#allocation2 + $0x18] sm:$0xf] %vm1151_vm4, %v966_v27  ;;  %v962_v24 = vpop.permute.xlu0 %961 }
  0x9b   :  { %v941_v21 = vrot.slane %v939_v54, 5  ;;  %v5683_v49 = vsel %vm4661_vm3, %v929_v35, %v933_v10  ;;  %v919_v14 = vrot.slane %v918_v34, 4  ;;  %vm5685_vm7 = vmor %vm1312_vm5, %vm1313_vm6  ;;  %v8152_v61 = vmov 0  ;;  %1153 = vst.msk [vmem:[#allocation2 + $0x8] sm:$0xf] %vm1151_vm4, %v962_v24 }
  0x9c   :  { %8151 = vst [vmem:[#allocation125_spill] sm:$0xff] %v5683_v49  ;;  %v8153_v61 = vsel %vm5685_vm7, 4294967295, %v8152_v61  ;;  %v1317_v15 = vrot.slane %v4633_v7, 5  ;;  %v1320_v50 = vrot.slane %v4555_v48, 5  ;;  %v953_v29 = vrot.slane %v952_v51, 4  ;;  %1081 = vrot.lane.b32.xlu1 %v5683_v49, %s4579_s11  ;;  %v970_v27 = vpop.permute.xlu1 %969 }
  0x9d   :  { %8154 = vst [vmem:[#allocation126_spill] sm:$0xff] %v8153_v61  ;;  %v942_v60 = vor.u32 %v941_v21, %v938_v6  ;;  %v4310_v10 = vrot.slane %v4623_v5, 9  ;;  %v1324_v45 = vrot.slane %v4615_v1, 5  ;;  %v5701_v7 = vsel %vm4661_vm3, %v919_v14, %v923_v12  ;;  %v4556_v35 = vld [vmem:[%s7731_s0 + $0x14] sm:$0x1] }
  0x9e   :  { %8155 = vst [vmem:[#allocation127_spill] sm:$0xff] %v5701_v7  ;;  %v1319_v54 = vrot.slane %v1317_v15, 4  ;;  %v1327_v34 = vrot.slane %v4556_v35, 5  ;;  %v4311_v6 = vrot.slane %v4610_v0, 9  ;;  %1079 = vrot.lane.b32.xlu0 %v5701_v7, %s4579_s11  ;;  %v5711_v5 = vsel %vm4661_vm3, %v953_v29, %v957_v40  ;;  %v4557_v40 = vld [vmem:[%s7731_s0 + $0x20] sm:$0x1] }
  0x9f   :  { %8156 = vst [vmem:[#allocation128_spill] sm:$0xff] %v5711_v5  ;;  %v943_v21 = vrot.slane %v942_v60, 4  ;;  %v1318_v12 = vsel %vm5685_vm7, %v4310_v10, %v1317_v15  ;;  %v1326_v51 = vrot.slane %v1324_v45, 4  ;;  %v1331_v24 = vrot.slane %v4651_v20, 5  ;;  %1157 = vst.msk [vmem:[#allocation2 + $0x28] sm:$0xf] %vm1151_vm4, %v970_v27  ;;  %v968_v60 = vpop.permute.xlu0 %967 }
  0xa0   :  { %v1321_v14 = vsel %vm5685_vm7, %v1319_v54, %v1320_v50  ;;  %v5719_v48 = vsel %vm5685_vm7, %v4311_v6, %v1324_v45  ;;  %v1334_v29 = vrot.slane %v4557_v40, 5  ;;  %v4312_v10 = vrot.slane %v4669_v31, 9  ;;  %1156 = vst.msk [vmem:[#allocation2 + $0x20] sm:$0xf] %vm1151_vm4, %v968_v60  ;;  %1085 = vrot.lane.b32.xlu1 %v5711_v5, %s4579_s11  ;;  %v4558_v35 = vld [vmem:[%s7731_s0 + $0x2c] sm:$0x1] }
  0xa1   :  { %8157 = vst [vmem:[#allocation129_spill] sm:$0xff] %v5719_v48  ;;  %v5728_v15 = vsel %vm4661_vm3, %v943_v21, %v947_v42  ;;  %v5732_v50 = vsel %vm5685_vm7, %v1326_v51, %v1327_v34  ;;  %v1338_v45 = vrot.slane %v4674_v32, 5  ;;  %v1333_v54 = vrot.slane %v1331_v24, 4  ;;  %v4559_v27 = vld [vmem:[%s7731_s0 + $0x38] sm:$0x1] }
  0xa2   :  { %8158 = vst [vmem:[#allocation130_spill] sm:$0xff] %v5728_v15  ;;  %8159 = vst [vmem:[#allocation131_spill] sm:$0xff] %v5732_v50  ;;  %v1341_v42 = vrot.slane %v4558_v35, 5  ;;  %v4313_v6 = vrot.slane %v4686_v41, 9  ;;  %v1345_v34 = vrot.slane %v4699_v47, 5  ;;  %1083 = vrot.lane.b32.xlu0 %v5728_v15, %s4579_s11  ;;  %v5748_v21 = vsel %vm5685_vm7, %v4312_v10, %v1331_v24  ;;  %v974_v35 = vpop.permute.xlu1 %973  ;;  %s4581_s11 = smov 48  }
  0xa3   :  { %8160 = vst [vmem:[#allocation132_spill] sm:$0xff] %v5748_v21  ;;  %v1340_v51 = vrot.slane %v1338_v45, 4  ;;  %v1348_v40 = vrot.slane %v4559_v27, 5  ;;  %v4314_v60 = vrot.slane %v4715_v52, 9  ;;  %v5756_v5 = vsel %vm5685_vm7, %v1333_v54, %v1334_v29  ;;  %3281 = vst.msk [vmem:[#allocation2 + $0x4] sm:$0xf] %vm123_vm1, %v5748_v21  ;;  %v972_v27 = vpop.permute.xlu0 %971 }
  0xa4   :  { %8161 = vst [vmem:[#allocation133_spill] sm:$0xff] %v5756_v5  ;;  %v5762_v24 = vsel %vm5685_vm7, %v4313_v6, %v1338_v45  ;;  %v1347_v10 = vrot.slane %v1345_v34, 4  ;;  %v1352_v15 = vrot.slane %v4720_v53, 5  ;;  %1159 = vst.msk [vmem:[#allocation2 + $0x38] sm:$0xf] %vm1151_vm4, %v974_v35  ;;  %v4315_v35 = vrot.slane %v4739_v63, 9  ;;  %1541 = vrot.lane.b32.xlu1 %v1321_v14, %s4580_s6 }
  0xa5   :  { %8162 = vst [vmem:[#allocation134_spill] sm:$0xff] %v5762_v24  ;;  %3282 = vst.msk [vmem:[#allocation2 + $0xc] sm:$0xf] %vm123_vm1, %v5756_v5  ;;  %v5770_v29 = vsel %vm5685_vm7, %v1340_v51, %v1341_v42  ;;  %v5776_v45 = vsel %vm5685_vm7, %v4314_v60, %v1345_v34  ;;  %v4560_v54 = vld [vmem:[%s7731_s0 + $0x44] sm:$0x1]  ;;  %v1359_v51 = vrot.slane %v4747_v8, 5 }
  0xa6   :  { %8163 = vst [vmem:[#allocation135_spill] sm:$0xff] %v5770_v29  ;;  %3283 = vst.msk [vmem:[#allocation2 + $0x14] sm:$0xf] %vm123_vm1, %v5762_v24  ;;  %v1355_v6 = vrot.slane %v4560_v54, 5  ;;  %v5788_v42 = vsel %vm5685_vm7, %v1347_v10, %v1348_v40  ;;  %v1354_v34 = vrot.slane %v1352_v15, 4  ;;  %1539 = vrot.lane.b32.xlu0 %v1318_v12, %s4580_s6  ;;  %v5801_v14 = vsel %vm5685_vm7, %v4315_v35, %v1352_v15  ;;  %v978_v49 = vpop.permute.xlu1 %977  ;;  %v8205_v52 = vld [vmem:[#allocation58_spill] sm:$0xff] }
  0xa7   :  { %8164 = vst [vmem:[#allocation136_spill] sm:$0xff] %v5776_v45  ;;  %1158 = vst.msk [vmem:[#allocation2 + $0x30] sm:$0xf] %vm1151_vm4, %v972_v27  ;;  %v4561_v60 = vld [vmem:[%s7731_s0 + $0x50] sm:$0x1]  ;;  %v4316_v40 = vrot.slane %v4765_v17, 9  ;;  %v976_v30 = vpop.permute.xlu0 %975 }
  0xa8   :  { %3284 = vst.msk [vmem:[#allocation2 + $0x1c] sm:$0xf] %vm123_vm1, %v5770_v29  ;;  %8165 = vst [vmem:[#allocation137_spill] sm:$0xff] %v5788_v42  ;;  %v1362_v27 = vrot.slane %v4561_v60, 5  ;;  %v1366_v10 = vrot.slane %v4771_v23, 5  ;;  %v5810_v12 = vsel %vm5685_vm7, %v1354_v34, %v1355_v6  ;;  %v1361_v60 = vrot.slane %v1359_v51, 4  ;;  %1545 = vrot.lane.b32.xlu1 %v5732_v50, %s4580_s6 }
  0xa9   :  { %3285 = vst.msk [vmem:[#allocation2 + $0x24] sm:$0xf] %vm123_vm1, %v5776_v45  ;;  %3286 = vst.msk [vmem:[#allocation2 + $0x2c] sm:$0xf] %vm123_vm1, %v5788_v42  ;;  %v4562_v54 = vld [vmem:[%s7731_s0 + $0x5c] sm:$0x1] }
  0xaa   :  { %8166 = vst [vmem:[#allocation138_spill] sm:$0xff] %v5801_v14  ;;  %v1369_v7 = vrot.slane %v4562_v54, 5  ;;  %8167 = vst [vmem:[#allocation139_spill] sm:$0xff] %v5810_v12  ;;  %v4317_v15 = vrot.slane %v4791_v36, 9  ;;  %v1373_v35 = vrot.slane %v4799_v39, 5  ;;  %v5821_v54 = vsel %vm5685_vm7, %v4316_v40, %v1359_v51  ;;  %1543 = vrot.lane.b32.xlu0 %v5719_v48, %s4580_s6  ;;  %v982_v50 = vpop.permute.xlu1 %981 }
  0xab   :  { %3287 = vst.msk [vmem:[#allocation2 + $0x34] sm:$0xf] %vm123_vm1, %v5801_v14  ;;  %3288 = vst.msk [vmem:[#allocation2 + $0x3c] sm:$0xf] %vm123_vm1, %v5810_v12  ;;  %v1368_v6 = vrot.slane %v1366_v10, 4  ;;  %v4318_v26 = vrot.slane %v4821_v57, 9 }
  0xac   :  { %1161 = vst.msk [vmem:[#allocation2 + $0x48] sm:$0xf] %vm1151_vm4, %v978_v49  ;;  %8168 = vst [vmem:[#allocation140_spill] sm:$0xff] %v5821_v54  ;;  %v4563_v34 = vld [vmem:[%s7731_s0 + $0x68] sm:$0x1]  ;;  %v5832_v49 = vsel %vm5685_vm7, %v1361_v60, %v1362_v27  ;;  %v5838_v51 = vsel %vm5685_vm7, %v4317_v15, %v1366_v10  ;;  %v1375_v40 = vrot.slane %v1373_v35, 4  ;;  %1549 = vrot.lane.b32.xlu1 %v5756_v5, %s4580_s6 }
  0xad   :  { %v1376_v38 = vrot.slane %v4563_v34, 5  ;;  %1160 = vst.msk [vmem:[#allocation2 + $0x40] sm:$0xf] %vm1151_vm4, %v976_v30  ;;  %8169 = vst [vmem:[#allocation141_spill] sm:$0xff] %v5832_v49  ;;  %v1380_v34 = vrot.slane %v4826_v58, 5  ;;  %v5847_v30 = vsel %vm5685_vm7, %v1368_v6, %v1369_v7  ;;  %v5853_v27 = vsel %vm5685_vm7, %v4318_v26, %v1373_v35  ;;  %v8174_v35 = vld [vmem:[#allocation25_spill] sm:$0xff] }
  0xae   :  { %3289 = vst.msk [vmem:[#allocation2 + $0x44] sm:$0xf] %vm123_vm1, %v5821_v54  ;;  %8170 = vst [vmem:[#allocation142_spill] sm:$0xff] %v5838_v51  ;;  %v4564_v10 = vld [vmem:[%s7731_s0 + $0x74] sm:$0x1]  ;;  %v4319_v15 = vrot.slane %v4846_v9, 9  ;;  %v980_v9 = vpop.permute.xlu0 %979  ;;  %1547 = vrot.lane.b32.xlu0 %v5748_v21, %s4580_s6  ;;  %v986_v23 = vpop.permute.xlu1 %985 }
  0xaf   :  { %3290 = vst.msk [vmem:[#allocation2 + $0x4c] sm:$0xf] %vm123_vm1, %v5832_v49  ;;  %8171 = vst [vmem:[#allocation143_spill] sm:$0xff] %v5847_v30  ;;  %v1383_v60 = vrot.slane %v4564_v10, 5  ;;  %v5863_v7 = vsel %vm5685_vm7, %v1375_v40, %v1376_v38  ;;  %v1382_v26 = vrot.slane %v1380_v34, 4  ;;  %v1387_v6 = vrot.slane %v8174_v35, 5 }
  0xb0   :  { %3291 = vst.msk [vmem:[#allocation2 + $0x54] sm:$0xf] %vm123_vm1, %v5838_v51  ;;  %8172 = vst [vmem:[#allocation144_spill] sm:$0xff] %v5853_v27  ;;  %v4565_v10 = vld [vmem:[%s7731_s0 + $0x80] sm:$0x1]  ;;  %v5876_v38 = vsel %vm5685_vm7, %v4319_v15, %v1380_v34  ;;  %v8177_v57 = vld [vmem:[#allocation28_spill] sm:$0xff]  ;;  %1553 = vrot.lane.b32.xlu1 %v5770_v29, %s4580_s6 }
  0xb1   :  { %3292 = vst.msk [vmem:[#allocation2 + $0x5c] sm:$0xf] %vm123_vm1, %v5847_v30  ;;  %8173 = vst [vmem:[#allocation145_spill] sm:$0xff] %v5863_v7  ;;  %v1390_v48 = vrot.slane %v4565_v10, 5  ;;  %v8176_v40 = vld [vmem:[#allocation27_spill] sm:$0xff]  ;;  %v1394_v39 = vrot.slane %v8177_v57, 5 }
  0xb2   :  { %3293 = vst.msk [vmem:[#allocation2 + $0x64] sm:$0xf] %vm123_vm1, %v5853_v27  ;;  %3294 = vst.msk [vmem:[#allocation2 + $0x6c] sm:$0xf] %vm123_vm1, %v5863_v7  ;;  %v4320_v58 = vrot.slane %v8176_v40, 9  ;;  %v1389_v34 = vrot.slane %v1387_v6, 4  ;;  %1551 = vrot.lane.b32.xlu0 %v5762_v24, %s4580_s6 }
  0xb3   :  { %1163 = vst.msk [vmem:[#allocation2 + $0x58] sm:$0xf] %vm1151_vm4, %v982_v50  ;;  %8175 = vst [vmem:[#allocation146_spill] sm:$0xff] %v5876_v38  ;;  %v4566_v35 = vld [vmem:[%s7731_s0 + $0x8c] sm:$0x1]  ;;  %v5888_v50 = vsel %vm5685_vm7, %v1382_v26, %v1383_v60  ;;  %v8179_v15 = vld [vmem:[#allocation30_spill] sm:$0xff] }
  0xb4   :  { %v1397_v36 = vrot.slane %v4566_v35, 5  ;;  %1162 = vst.msk [vmem:[#allocation2 + $0x50] sm:$0xf] %vm1151_vm4, %v980_v9  ;;  %8178 = vst [vmem:[#allocation147_spill] sm:$0xff] %v5888_v50  ;;  %v4321_v10 = vrot.slane %v8179_v15, 9  ;;  %v8180_v57 = vld [vmem:[#allocation32_spill] sm:$0xff]  ;;  %v5900_v9 = vsel %vm5685_vm7, %v4320_v58, %v1387_v6  ;;  %1557 = vrot.lane.b32.xlu1 %v5788_v42, %s4580_s6 }
  0xb5   :  { %3295 = vst.msk [vmem:[#allocation2 + $0x74] sm:$0xf] %vm123_vm1, %v5876_v38  ;;  %v1401_v40 = vrot.slane %v8180_v57, 5  ;;  %3296 = vst.msk [vmem:[#allocation2 + $0x7c] sm:$0xf] %vm123_vm1, %v5888_v50  ;;  %v1396_v60 = vrot.slane %v1394_v39, 4  ;;  %v5908_v57 = vsel %vm5685_vm7, %v1389_v34, %v1390_v48 }
  0xb6   :  { %8181 = vst [vmem:[#allocation148_spill] sm:$0xff] %v5900_v9  ;;  %v4567_v26 = vld [vmem:[%s7731_s0 + $0x98] sm:$0x1]  ;;  %8183 = vst [vmem:[#allocation149_spill] sm:$0xff] %v5908_v57  ;;  %v5914_v58 = vsel %vm5685_vm7, %v4321_v10, %v1394_v39  ;;  %v8185_v21 = vld [vmem:[#allocation35_spill] sm:$0xff]  ;;  %1555 = vrot.lane.b32.xlu0 %v5776_v45, %s4580_s6  ;;  %v4329_v47 = vrot.slane %v8205_v52, 9 }
  0xb7   :  { %v1404_v35 = vrot.slane %v4567_v26, 5  ;;  %v8182_v5 = vld [vmem:[#allocation34_spill] sm:$0xff]  ;;  %3297 = vst.msk [vmem:[#allocation2 + $0x84] sm:$0xf] %vm123_vm1, %v5900_v9  ;;  %8184 = vst [vmem:[#allocation150_spill] sm:$0xff] %v5914_v58  ;;  %v1403_v6 = vrot.slane %v1401_v40, 4  ;;  %v984_v26 = vpop.permute.xlu0 %983  ;;  %v5922_v48 = vsel %vm5685_vm7, %v1396_v60, %v1397_v36 }
  0xb8   :  { %v4322_v15 = vrot.slane %v8182_v5, 9  ;;  %v1408_v17 = vrot.slane %v8185_v21, 5  ;;  %1165 = vst.msk [vmem:[#allocation2 + $0x68] sm:$0xf] %vm1151_vm4, %v986_v23  ;;  %8186 = vst [vmem:[#allocation151_spill] sm:$0xff] %v5922_v48  ;;  %v8188_v10 = vld [vmem:[#allocation37_spill] sm:$0xff]  ;;  %1561 = vrot.lane.b32.xlu1 %v5810_v12, %s4580_s6 }
  0xb9   :  { %3298 = vst.msk [vmem:[#allocation2 + $0x8c] sm:$0xf] %vm123_vm1, %v5908_v57  ;;  %3299 = vst.msk [vmem:[#allocation2 + $0x94] sm:$0xf] %vm123_vm1, %v5914_v58  ;;  %v4568_v34 = vld [vmem:[%s7731_s0 + $0xa4] sm:$0x1]  ;;  %v5941_v36 = vsel %vm5685_vm7, %v1403_v6, %v1404_v35 }
  0xba   :  { %v5928_v39 = vsel %vm5685_vm7, %v4322_v15, %v1401_v40  ;;  %v1411_v23 = vrot.slane %v4568_v34, 5  ;;  %v4323_v21 = vrot.slane %v8188_v10, 9  ;;  %1164 = vst.msk [vmem:[#allocation2 + $0x60] sm:$0xf] %vm1151_vm4, %v984_v26  ;;  %8189 = vst [vmem:[#allocation153_spill] sm:$0xff] %v5941_v36  ;;  %v1410_v40 = vrot.slane %v1408_v17, 4  ;;  %1559 = vrot.lane.b32.xlu0 %v5801_v14, %s4580_s6 }
  0xbb   :  { %8187 = vst [vmem:[#allocation152_spill] sm:$0xff] %v5928_v39  ;;  %3300 = vst.msk [vmem:[#allocation2 + $0x9c] sm:$0xf] %vm123_vm1, %v5922_v48  ;;  %v8190_v15 = vld [vmem:[#allocation39_spill] sm:$0xff]  ;;  %v4569_v26 = vld [vmem:[%s7731_s0 + $0xb0] sm:$0x1] }
  0xbc   :  { %3301 = vst.msk [vmem:[#allocation2 + $0xa4] sm:$0xf] %vm123_vm1, %v5928_v39  ;;  %v1415_v60 = vrot.slane %v8190_v15, 5  ;;  %v1418_v34 = vrot.slane %v4569_v26, 5  ;;  %3302 = vst.msk [vmem:[#allocation2 + $0xac] sm:$0xf] %vm123_vm1, %v5941_v36  ;;  %v5955_v35 = vsel %vm5685_vm7, %v4323_v21, %v1408_v17  ;;  %v990_v26 = vpop.permute.xlu1 %989  ;;  %v5964_v24 = vsel %vm5685_vm7, %v1410_v40, %v1411_v23  ;;  %1565 = vrot.lane.b32.xlu1 %v5832_v49, %s4580_s6 }
  0xbd   :  { %8191 = vst [vmem:[#allocation154_spill] sm:$0xff] %v5955_v35  ;;  %v8192_v6 = vld [vmem:[#allocation40_spill] sm:$0xff]  ;;  %v8193_v10 = vld [vmem:[#allocation42_spill] sm:$0xff]  ;;  %8194 = vst [vmem:[#allocation155_spill] sm:$0xff] %v5964_v24  ;;  %vm1731_vm8 = vcmask 388352   ;;  %vm1992_vm9 = vcmask 519552  }
  0xbe   :  { %v4324_v29 = vrot.slane %v8192_v6, 9  ;;  %v1422_v5 = vrot.slane %v8193_v10, 5  ;;  %v4570_v15 = vld [vmem:[%s7731_s0 + $0xbc] sm:$0x1]  ;;  %3303 = vst.msk [vmem:[#allocation2 + $0xb4] sm:$0xf] %vm123_vm1, %v5955_v35  ;;  %v988_v6 = vpop.permute.xlu0 %987  ;;  %1563 = vrot.lane.b32.xlu0 %v5821_v54, %s4580_s6 }
  0xbf   :  { %v1425_v8 = vrot.slane %v4570_v15, 5  ;;  %v1417_v63 = vrot.slane %v1415_v60, 4  ;;  %v8195_v17 = vld [vmem:[#allocation44_spill] sm:$0xff]  ;;  %1167 = vst.msk [vmem:[#allocation2 + $0x78] sm:$0xf] %vm1151_vm4, %v990_v26  ;;  %v8203_v45 = vld [vmem:[#allocation55_spill] sm:$0xff] }
  0xc0   :  { %v4325_v21 = vrot.slane %v8195_v17, 9  ;;  %3304 = vst.msk [vmem:[#allocation2 + $0xbc] sm:$0xf] %vm123_vm1, %v5964_v24  ;;  %v5974_v15 = vsel %vm5685_vm7, %v4324_v29, %v1415_v60  ;;  %v1424_v10 = vrot.slane %v1422_v5, 4  ;;  %v8200_v60 = vld [vmem:[#allocation52_spill] sm:$0xff]  ;;  %v1450_v17 = vrot.slane %v8203_v45, 5  ;;  %1569 = vrot.lane.b32.xlu1 %v5847_v30, %s4580_s6 }
  0xc1   :  { %8196 = vst [vmem:[#allocation156_spill] sm:$0xff] %v5974_v15  ;;  %1166 = vst.msk [vmem:[#allocation2 + $0x70] sm:$0xf] %vm1151_vm4, %v988_v6  ;;  %v5981_v23 = vsel %vm5685_vm7, %v1417_v63, %v1418_v34  ;;  %v994_v63 = vpop.permute.xlu1 %993  ;;  %v8201_v34 = vld [vmem:[#allocation79_spill] sm:$0xff]  ;;  %v8207_v45 = vld [vmem:[#allocation89_spill] sm:$0xff]  ;;  %vm2297_vm10 = vcmask 650752  }
  0xc2   :  { %8197 = vst [vmem:[#allocation157_spill] sm:$0xff] %v5981_v23  ;;  %3305 = vst.msk [vmem:[#allocation2 + $0xc4] sm:$0xf] %vm123_vm1, %v5974_v15  ;;  %v5987_v40 = vsel %vm5685_vm7, %v4325_v21, %v1422_v5  ;;  %v5995_v29 = vsel %vm5685_vm7, %v1424_v10, %v1425_v8  ;;  %v1443_v5 = vrot.slane %v8200_v60, 5  ;;  %v1446_v6 = vrot.slane %v8201_v34, 5  ;;  %v992_v26 = vpop.permute.xlu0 %991  ;;  %v8202_v21 = vld [vmem:[#allocation54_spill] sm:$0xff]  ;;  %1567 = vrot.lane.b32.xlu0 %v5838_v51, %s4580_s6 }
  0xc3   :  { %8198 = vst [vmem:[#allocation158_spill] sm:$0xff] %v5987_v40  ;;  %3306 = vst.msk [vmem:[#allocation2 + $0xcc] sm:$0xf] %vm123_vm1, %v5981_v23  ;;  %v4328_v42 = vrot.slane %v8202_v21, 9  ;;  %v8204_v8 = vld [vmem:[#allocation82_spill] sm:$0xff]  ;;  %v8206_v60 = vld [vmem:[#allocation59_spill] sm:$0xff]  ;;  %v6028_v14 = vsel %vm5685_vm7, %v4329_v47, %v1450_v17 }
  0xc4   :  { %8199 = vst [vmem:[#allocation159_spill] sm:$0xff] %v5995_v29  ;;  %3307 = vst.msk [vmem:[#allocation2 + $0xd4] sm:$0xf] %vm123_vm1, %v5987_v40  ;;  %v1453_v10 = vrot.slane %v8204_v8, 5  ;;  %v1445_v53 = vrot.slane %v1443_v5, 4  ;;  %v1457_v41 = vrot.slane %v8206_v60, 5  ;;  %1573 = vrot.lane.b32.xlu1 %v5863_v7, %s4580_s6 }
  0xc5   :  { %3308 = vst.msk [vmem:[#allocation2 + $0xdc] sm:$0xf] %vm123_vm1, %v5995_v29  ;;  %v1452_v34 = vrot.slane %v1450_v17, 4  ;;  %v1460_v8 = vrot.slane %v8207_v45, 5  ;;  %v8208_v21 = vld [vmem:[#allocation61_spill] sm:$0xff]  ;;  %v998_v32 = vpop.permute.xlu1 %997  ;;  %v8210_v17 = vld [vmem:[#allocation94_spill] sm:$0xff] }
  0xc6   :  { %1169 = vst.msk [vmem:[#allocation2 + $0x88] sm:$0xf] %vm1151_vm4, %v994_v63  ;;  %1168 = vst.msk [vmem:[#allocation2 + $0x80] sm:$0xf] %vm1151_vm4, %v992_v26  ;;  %v6016_v63 = vsel %vm5685_vm7, %v4328_v42, %v1443_v5  ;;  %v4330_v26 = vrot.slane %v8208_v21, 9  ;;  %v6022_v12 = vsel %vm5685_vm7, %v1445_v53, %v1446_v6  ;;  %v1459_v60 = vrot.slane %v1457_v41, 4  ;;  %v996_v45 = vpop.permute.xlu0 %995  ;;  %1571 = vrot.lane.b32.xlu0 %v5853_v27, %s4580_s6 }
  0xc7   :  { %3313 = vst.msk [vmem:[#allocation2 + $0x104] sm:$0xf] %vm123_vm1, %v6016_v63  ;;  %v8209_v42 = vld [vmem:[#allocation62_spill] sm:$0xff]  ;;  %3314 = vst.msk [vmem:[#allocation2 + $0x10c] sm:$0xf] %vm123_vm1, %v6022_v12  ;;  %v6036_v53 = vsel %vm5685_vm7, %v1452_v34, %v1453_v10  ;;  %v1467_v6 = vrot.slane %v8210_v17, 5 }
  0xc8   :  { %v1464_v5 = vrot.slane %v8209_v42, 5  ;;  %1171 = vst.msk [vmem:[#allocation2 + $0x98] sm:$0xf] %vm1151_vm4, %v998_v32  ;;  %v6042_v47 = vsel %vm5685_vm7, %v4330_v26, %v1457_v41  ;;  %v8211_v42 = vld [vmem:[#allocation64_spill] sm:$0xff]  ;;  %1170 = vst.msk [vmem:[#allocation2 + $0x90] sm:$0xf] %vm1151_vm4, %v996_v45  ;;  %v6053_v32 = vsel %vm5685_vm7, %v1459_v60, %v1460_v8  ;;  %1577 = vrot.lane.b32.xlu1 %v5888_v50, %s4580_s6 }
  0xc9   :  { %3315 = vst.msk [vmem:[#allocation2 + $0x114] sm:$0xf] %vm123_vm1, %v6028_v14  ;;  %v4331_v21 = vrot.slane %v8211_v42, 9  ;;  %3316 = vst.msk [vmem:[#allocation2 + $0x11c] sm:$0xf] %vm123_vm1, %v6036_v53  ;;  %v1471_v10 = vrot.slane %v5176_v18, 5  ;;  %v1002_v49 = vpop.permute.xlu1 %1001 }
  0xca   :  { %3317 = vst.msk [vmem:[#allocation2 + $0x124] sm:$0xf] %vm123_vm1, %v6042_v47  ;;  %v1466_v41 = vrot.slane %v1464_v5, 4  ;;  %v1474_v34 = vrot.slane %v5458_v4, 5  ;;  %3318 = vst.msk [vmem:[#allocation2 + $0x12c] sm:$0xf] %vm123_vm1, %v6053_v32  ;;  %1575 = vrot.lane.b32.xlu0 %v5876_v38, %s4580_s6 }
  0xcb   :  { %v6065_v26 = vsel %vm5685_vm7, %v4331_v21, %v1464_v5  ;;  %v4332_v60 = vrot.slane %v5194_v55, 9  ;;  %v1478_v8 = vrot.slane %v5205_v3, 5  ;;  %v8212_v45 = vld [vmem:[#allocation102_spill] sm:$0xff]  ;;  %v1473_v54 = vrot.slane %v1471_v10, 4  ;;  %1173 = vst.msk [vmem:[#allocation2 + $0xa8] sm:$0xf] %vm1151_vm4, %v1002_v49  ;;  %v1000_v5 = vpop.permute.xlu0 %999 }
  0xcc   :  { %v1481_v17 = vrot.slane %v8212_v45, 5  ;;  %v6072_v4 = vsel %vm5685_vm7, %v1466_v41, %v1467_v6  ;;  %3319 = vst.msk [vmem:[#allocation2 + $0x134] sm:$0xf] %vm123_vm1, %v6065_v26  ;;  %v8213_v18 = vld [vmem:[#allocation70_spill] sm:$0xff]  ;;  %v1485_v21 = vrot.slane %v5229_v44, 5  ;;  %v1488_v41 = vrot.slane %v5502_v59, 5  ;;  %1581 = vrot.lane.b32.xlu1 %v5908_v57, %s4580_s6 }
  0xcd   :  { %v4333_v42 = vrot.slane %v8213_v18, 9  ;;  %3320 = vst.msk [vmem:[#allocation2 + $0x13c] sm:$0xf] %vm123_vm1, %v6072_v4  ;;  %v6083_v45 = vsel %vm5685_vm7, %v4332_v60, %v1471_v10  ;;  %v1480_v6 = vrot.slane %v1478_v8, 4  ;;  %v4334_v3 = vrot.slane %v5250_v28, 9  ;;  %v8225_v7 = vld [vmem:[#allocation87_spill] sm:$0xff] }
  0xce   :  { %1172 = vst.msk [vmem:[#allocation2 + $0xa0] sm:$0xf] %vm1151_vm4, %v1000_v5  ;;  %v6092_v49 = vsel %vm5685_vm7, %v1473_v54, %v1474_v34  ;;  %v1487_v60 = vrot.slane %v1485_v21, 4  ;;  %v1492_v59 = vrot.slane %v5260_v2, 5  ;;  %v1495_v34 = vrot.slane %v5520_v22, 5  ;;  %v1006_v5 = vpop.permute.xlu1 %1005  ;;  %1579 = vrot.lane.b32.xlu0 %v5900_v9, %s4580_s6  ;;  %v8283_v9 = vld [vmem:[#allocation83_spill] sm:$0xff] }
  0xcf   :  { %3321 = vst.msk [vmem:[#allocation2 + $0x144] sm:$0xf] %vm123_vm1, %v6083_v45  ;;  %v6098_v10 = vsel %vm5685_vm7, %v4333_v42, %v1478_v8  ;;  %3322 = vst.msk [vmem:[#allocation2 + $0x14c] sm:$0xf] %vm123_vm1, %v6092_v49  ;;  %v6107_v54 = vsel %vm5685_vm7, %v1480_v6, %v1481_v17  ;;  %v6113_v42 = vsel %vm5685_vm7, %v4334_v3, %v1485_v21  ;;  %v4335_v8 = vrot.slane %v5275_v11, 9  ;;  %v8218_v6 = vld [vmem:[#allocation78_spill] sm:$0xff]  ;;  %v1004_v22 = vpop.permute.xlu0 %1003 }
  0xd0   :  { %8214 = vst [vmem:[#allocation79_spill] sm:$0xff] %v6098_v10  ;;  %8215 = vst [vmem:[#allocation82_spill] sm:$0xff] %v6107_v54  ;;  %v6121_v30 = vsel %vm5685_vm7, %v1487_v60, %v1488_v41  ;;  %v1494_v17 = vrot.slane %v1492_v59, 4  ;;  %v1499_v51 = vrot.slane %v8218_v6, 5  ;;  %v8219_v3 = vld [vmem:[#allocation110_spill] sm:$0xff]  ;;  %v8221_v41 = vld [vmem:[#allocation81_spill] sm:$0xff]  ;;  %1585 = vrot.lane.b32.xlu1 %v5922_v48, %s4580_s6 }
  0xd1   :  { %3323 = vst.msk [vmem:[#allocation2 + $0x154] sm:$0xf] %vm123_vm1, %v6098_v10  ;;  %8216 = vst [vmem:[#allocation58_spill] sm:$0xff] %v6113_v42  ;;  %v1502_v21 = vrot.slane %v8219_v3, 5  ;;  %v6132_v11 = vsel %vm5685_vm7, %v4335_v8, %v1492_v59  ;;  %v4336_v60 = vrot.slane %v8221_v41, 9  ;;  %v1506_v2 = vrot.slane %v5321_v13, 5 }
  0xd2   :  { %3324 = vst.msk [vmem:[#allocation2 + $0x15c] sm:$0xf] %vm123_vm1, %v6107_v54  ;;  %8217 = vst [vmem:[#allocation89_spill] sm:$0xff] %v6121_v30  ;;  %v1509_v28 = vrot.slane %v5568_v25, 5  ;;  %v1501_v59 = vrot.slane %v1499_v51, 4  ;;  %v4337_v8 = vrot.slane %v5331_v33, 9  ;;  %v1010_v41 = vpop.permute.xlu1 %1009  ;;  %1583 = vrot.lane.b32.xlu0 %v5914_v58, %s4580_s6 }
  0xd3   :  { %3325 = vst.msk [vmem:[#allocation2 + $0x164] sm:$0xf] %vm123_vm1, %v6113_v42  ;;  %3326 = vst.msk [vmem:[#allocation2 + $0x16c] sm:$0xf] %vm123_vm1, %v6121_v30  ;;  %v1513_v3 = vrot.slane %v5341_v56, 5  ;;  %v6154_v25 = vsel %vm5685_vm7, %v4336_v60, %v1499_v51  ;;  %v4338_v13 = vrot.slane %v8225_v7, 9  ;;  %v1008_v51 = vpop.permute.xlu0 %1007 }
  0xd4   :  { %1175 = vst.msk [vmem:[#allocation2 + $0xb8] sm:$0xf] %vm1151_vm4, %v1006_v5  ;;  %8220 = vst [vmem:[#allocation94_spill] sm:$0xff] %v6132_v11  ;;  %v6142_v5 = vsel %vm5685_vm7, %v1494_v17, %v1495_v34  ;;  %v1508_v34 = vrot.slane %v1506_v2, 4  ;;  %v8224_v17 = vld [vmem:[#allocation114_spill] sm:$0xff]  ;;  %v6160_v33 = vsel %vm5685_vm7, %v1501_v59, %v1502_v21  ;;  %v6166_v27 = vsel %vm5685_vm7, %v4337_v8, %v1506_v2  ;;  %v8277_v48 = vld [vmem:[#allocation65_spill] sm:$0xff] }
  0xd5   :  { %1174 = vst.msk [vmem:[#allocation2 + $0xb0] sm:$0xf] %vm1151_vm4, %v1004_v22  ;;  %8222 = vst [vmem:[#allocation102_spill] sm:$0xff] %v6142_v5  ;;  %v1516_v22 = vrot.slane %v8224_v17, 5  ;;  %v1515_v56 = vrot.slane %v1513_v3, 4  ;;  %v6179_v21 = vsel %vm5685_vm7, %v4338_v13, %v1513_v3  ;;  %v1520_v2 = vrot.slane %v5367_v46, 5  ;;  %1589 = vrot.lane.b32.xlu1 %v5941_v36, %s4580_s6 }
  0xd6   :  { %3327 = vst.msk [vmem:[#allocation2 + $0x174] sm:$0xf] %vm123_vm1, %v6132_v11  ;;  %3328 = vst.msk [vmem:[#allocation2 + $0x17c] sm:$0xf] %vm123_vm1, %v6142_v5  ;;  %v6173_v60 = vsel %vm5685_vm7, %v1508_v34, %v1509_v28  ;;  %v1523_v59 = vrot.slane %v5612_v19, 5  ;;  %v4339_v13 = vrot.slane %v5386_v37, 9  ;;  %v1014_v50 = vpop.permute.xlu1 %1013  ;;  %1587 = vrot.lane.b32.xlu0 %v5928_v39, %s4580_s6 }
  0xd7   :  { %8223 = vst [vmem:[#allocation70_spill] sm:$0xff] %v6154_v25  ;;  %8226 = vst [vmem:[#allocation110_spill] sm:$0xff] %v6160_v33  ;;  %v6190_v28 = vsel %vm5685_vm7, %v1515_v56, %v1516_v22  ;;  %v1530_v19 = vrot.slane %v5630_v62, 5  ;;  %v1522_v8 = vrot.slane %v1520_v2, 4  ;;  %v8231_v3 = vld [vmem:[#allocation96_spill] sm:$0xff]  ;;  %v8232_v56 = vld [vmem:[#allocation97_spill] sm:$0xff]  ;;  %v1012_v38 = vpop.permute.xlu0 %1011 }
  0xd8   :  { %3329 = vst.msk [vmem:[#allocation2 + $0x184] sm:$0xf] %vm123_vm1, %v6154_v25  ;;  %8227 = vst [vmem:[#allocation114_spill] sm:$0xff] %v6166_v27  ;;  %v4340_v34 = vrot.slane %v8231_v3, 9  ;;  %v1534_v17 = vrot.slane %v8232_v56, 5  ;;  %v8233_v22 = vld [vmem:[#allocation122_spill] sm:$0xff]  ;;  %v6206_v37 = vsel %vm5685_vm7, %v4339_v13, %v1520_v2 }
  0xd9   :  { %1177 = vst.msk [vmem:[#allocation2 + $0xc8] sm:$0xf] %vm1151_vm4, %v1010_v41  ;;  %8228 = vst [vmem:[#allocation160_spill] sm:$0xff] %v6173_v60  ;;  %v1527_v41 = vrot.slane %v5396_v16, 5  ;;  %v4341_v62 = vrot.slane %v5444_v43, 9  ;;  %v6212_v46 = vsel %vm5685_vm7, %v1522_v8, %v1523_v59  ;;  %1593 = vrot.lane.b32.xlu1 %v5964_v24, %s4580_s6  ;;  %v8260_v24 = vld [vmem:[#allocation28_spill] sm:$0xff] }
  0xda   :  { %3330 = vst.msk [vmem:[#allocation2 + $0x18c] sm:$0xf] %vm123_vm1, %v6160_v33  ;;  %3331 = vst.msk [vmem:[#allocation2 + $0x194] sm:$0xf] %vm123_vm1, %v6166_v27  ;;  %v1536_v56 = vrot.slane %v1534_v17, 4  ;;  %1591 = vrot.lane.b32.xlu0 %v5955_v35, %s4580_s6  ;;  %v8264_v36 = vld [vmem:[#allocation35_spill] sm:$0xff] }
  0xdb   :  { %8229 = vst [vmem:[#allocation161_spill] sm:$0xff] %v6179_v21  ;;  %1176 = vst.msk [vmem:[#allocation2 + $0xc0] sm:$0xf] %vm1151_vm4, %v1008_v51  ;;  %v1537_v51 = vrot.slane %v8233_v22, 5  ;;  %v1529_v16 = vrot.slane %v1527_v41, 4  ;;  %v6218_v22 = vsel %vm5685_vm7, %v4340_v34, %v1527_v41  ;;  %v6233_v2 = vsel %vm5685_vm7, %v4341_v62, %v1534_v17  ;;  %v1016_v59 = vpop.permute.xlu0 %1015  ;;  %v8240_v34 = vld [vmem:[#allocation46_spill] sm:$0xff] }
  0xdc   :  { %3332 = vst.msk [vmem:[#allocation2 + $0x19c] sm:$0xf] %vm123_vm1, %v6173_v60  ;;  %8230 = vst [vmem:[#allocation162_spill] sm:$0xff] %v6190_v28  ;;  %vm2570_vm11 = vcmask 781952   ;;  %vm2831_vm12 = vcmask 913152   ;;  %vm3136_vm13 = vcmask 1044352  }
  0xdd   :  { %3333 = vst.msk [vmem:[#allocation2 + $0x1a4] sm:$0xf] %vm123_vm1, %v6179_v21  ;;  %3334 = vst.msk [vmem:[#allocation2 + $0x1ac] sm:$0xf] %vm123_vm1, %v6190_v28  ;;  %1597 = vrot.lane.b32.xlu1 %v5981_v23, %s4580_s6  ;;  %vm3776_vm14 = vcmask 130048   ;;  %vm4302_vm15 = vcmask 1041409  }
  0xde   :  { %8234 = vst [vmem:[#allocation122_spill] sm:$0xff] %v6206_v37  ;;  %1179 = vst.msk [vmem:[#allocation2 + $0xd8] sm:$0xf] %vm1151_vm4, %v1014_v50  ;;  %v6227_v50 = vsel %vm5685_vm7, %v1529_v16, %v1530_v19  ;;  %v1018_v16 = vpop.permute.xlu1 %1017  ;;  %1595 = vrot.lane.b32.xlu0 %v5974_v15, %s4580_s6  ;;  %v4572_v15 = vld [vmem:[%s7731_s0 + $0xec] sm:$0x1] }
  0xdf   :  { %8235 = vst [vmem:[#allocation163_spill] sm:$0xff] %v6212_v46  ;;  %3335 = vst.msk [vmem:[#allocation2 + $0x1b4] sm:$0xf] %vm123_vm1, %v6206_v37  ;;  %v1020_v41 = vpop.permute.xlu0 %1019 }
  0xe0   :  { %8236 = vst [vmem:[#allocation164_spill] sm:$0xff] %v6218_v22  ;;  %1178 = vst.msk [vmem:[#allocation2 + $0xd0] sm:$0xf] %vm1151_vm4, %v1012_v38  ;;  %v6241_v38 = vsel %vm5685_vm7, %v1536_v56, %v1537_v51  ;;  %v1429_v56 = vrot.slane %v8240_v34, 5 }
  0xe1   :  { %3336 = vst.msk [vmem:[#allocation2 + $0x1bc] sm:$0xf] %vm123_vm1, %v6212_v46  ;;  %8237 = vst [vmem:[#allocation165_spill] sm:$0xff] %v6227_v50  ;;  %1601 = vrot.lane.b32.xlu1 %v5995_v29, %s4580_s6 }
  0xe2   :  { %3337 = vst.msk [vmem:[#allocation2 + $0x1c4] sm:$0xf] %vm123_vm1, %v6218_v22  ;;  %8238 = vst [vmem:[#allocation166_spill] sm:$0xff] %v6233_v2  ;;  %v1022_v13 = vpop.permute.xlu1 %1021  ;;  %v1431_v62 = vrot.slane %v1429_v56, 4  ;;  %1599 = vrot.lane.b32.xlu0 %v5987_v40, %s4580_s6 }
  0xe3   :  { %3338 = vst.msk [vmem:[#allocation2 + $0x1cc] sm:$0xf] %vm123_vm1, %v6227_v50  ;;  %8239 = vst [vmem:[#allocation167_spill] sm:$0xff] %v6241_v38  ;;  %v1024_v8 = vpop.permute.xlu0 %1023 }
  0xe4   :  { %3339 = vst.msk [vmem:[#allocation2 + $0x1d4] sm:$0xf] %vm123_vm1, %v6233_v2  ;;  %3340 = vst.msk [vmem:[#allocation2 + $0x1dc] sm:$0xf] %vm123_vm1, %v6241_v38 }
  0xe5   :  { %1181 = vst.msk [vmem:[#allocation2 + $0xe8] sm:$0xf] %vm1151_vm4, %v1018_v16  ;;  %1180 = vst.msk [vmem:[#allocation2 + $0xe0] sm:$0xf] %vm1151_vm4, %v1016_v59  ;;  %v4571_v16 = vld [vmem:[%s7731_s0 + $0xe0] sm:$0x1] }
  0xe6   :  { %1183 = vst.msk [vmem:[#allocation2 + $0xf8] sm:$0xf] %vm1151_vm4, %v1022_v13  ;;  %1182 = vst.msk [vmem:[#allocation2 + $0xf0] sm:$0xf] %vm1151_vm4, %v1020_v41  ;;  %v1026_v19 = vpop.permute.xlu1 %1025  ;;  %v1432_v59 = vrot.slane %v4571_v16, 5  ;;  %v8241_v13 = vld [vmem:[#allocation49_spill] sm:$0xff] }
  0xe7   :  { %1185 = vst.msk [vmem:[#allocation2 + $0x108] sm:$0xf] %vm1151_vm4, %v1026_v19  ;;  %1184 = vst.msk [vmem:[#allocation2 + $0x100] sm:$0xf] %vm1151_vm4, %v1024_v8  ;;  %v1028_v51 = vpop.permute.xlu0 %1027  ;;  %v1436_v41 = vrot.slane %v8241_v13, 5  ;;  %v8242_v8 = vld [vmem:[#allocation47_spill] sm:$0xff] }
  0xe8   :  { %1186 = vst.msk [vmem:[#allocation2 + $0x110] sm:$0xf] %vm1151_vm4, %v1028_v51  ;;  %v4326_v34 = vrot.slane %v8242_v8, 9  ;;  %v1433_v51 = vsel %vm5685_vm7, %v1431_v62, %v1432_v59  ;;  %v1439_v8 = vrot.slane %v4572_v15, 5 }
  0xe9   :  { %v1438_v16 = vrot.slane %v1436_v41, 4  ;;  %1605 = vrot.lane.b32.xlu1 %v1433_v51, %s4580_s6 }
  0xea   :  { %v1030_v17 = vpop.permute.xlu1 %1029 }
  0xeb   :  { %1187 = vst.msk [vmem:[#allocation2 + $0x118] sm:$0xf] %vm1151_vm4, %v1030_v17  ;;  %v1032_v17 = vpop.permute.xlu0 %1031  ;;  %v6297_v62 = vsel %vm5685_vm7, %v1438_v16, %v1439_v8 }
  0xec   :  { %1188 = vst.msk [vmem:[#allocation2 + $0x120] sm:$0xf] %vm1151_vm4, %v1032_v17  ;;  %v8243_v17 = vld [vmem:[#allocation51_spill] sm:$0xff] }
  0xed   :  { %v4327_v35 = vrot.slane %v8243_v17, 9  ;;  %1609 = vrot.lane.b32.xlu1 %v6297_v62, %s4580_s6 }
  0xee   :  { %v1034_v19 = vpop.permute.xlu1 %1033 }
  0xef   :  { %1189 = vst.msk [vmem:[#allocation2 + $0x128] sm:$0xf] %vm1151_vm4, %v1034_v19  ;;  %v1430_v19 = vsel %vm5685_vm7, %v4326_v34, %v1429_v56  ;;  %v1036_v29 = vpop.permute.xlu0 %1035  ;;  %v6301_v59 = vsel %vm5685_vm7, %v4327_v35, %v1436_v41 }
  0xf0   :  { %1190 = vst.msk [vmem:[#allocation2 + $0x130] sm:$0xf] %vm1151_vm4, %v1036_v29  ;;  %1603 = vrot.lane.b32.xlu0 %v1430_v19, %s4580_s6 }
  0xf1   :  { %1613 = vrot.lane.b32.xlu1 %v6022_v12, %s4580_s6 }
  0xf2   :  { %v1038_v23 = vpop.permute.xlu1 %1037 }
  0xf3   :  { %1191 = vst.msk [vmem:[#allocation2 + $0x138] sm:$0xf] %vm1151_vm4, %v1038_v23  ;;  %v1040_v56 = vpop.permute.xlu0 %1039 }
  0xf4   :  { %1192 = vst.msk [vmem:[#allocation2 + $0x140] sm:$0xf] %vm1151_vm4, %v1040_v56  ;;  %1607 = vrot.lane.b32.xlu0 %v6301_v59, %s4580_s6 }
  0xf5   :  { %1617 = vrot.lane.b32.xlu1 %v6036_v53, %s4580_s6 }
  0xf6   :  { %v1042_v15 = vpop.permute.xlu1 %1041 }
  0xf7   :  { %1193 = vst.msk [vmem:[#allocation2 + $0x148] sm:$0xf] %vm1151_vm4, %v1042_v15  ;;  %v1044_v29 = vpop.permute.xlu0 %1043 }
  0xf8   :  { %1194 = vst.msk [vmem:[#allocation2 + $0x150] sm:$0xf] %vm1151_vm4, %v1044_v29  ;;  %1611 = vrot.lane.b32.xlu0 %v6016_v63, %s4580_s6 }
  0xf9   :  { %1621 = vrot.lane.b32.xlu1 %v6053_v32, %s4580_s6 }
  0xfa   :  { %v1046_v23 = vpop.permute.xlu1 %1045 }
  0xfb   :  { %1195 = vst.msk [vmem:[#allocation2 + $0x158] sm:$0xf] %vm1151_vm4, %v1046_v23  ;;  %v1048_v41 = vpop.permute.xlu0 %1047 }
  0xfc   :  { %1196 = vst.msk [vmem:[#allocation2 + $0x160] sm:$0xf] %vm1151_vm4, %v1048_v41  ;;  %1615 = vrot.lane.b32.xlu0 %v6028_v14, %s4580_s6 }
  0xfd   :  { %1625 = vrot.lane.b32.xlu1 %v6072_v4, %s4580_s6 }
  0xfe   :  { %v1050_v35 = vpop.permute.xlu1 %1049 }
  0xff   :  { %1197 = vst.msk [vmem:[#allocation2 + $0x168] sm:$0xf] %vm1151_vm4, %v1050_v35  ;;  %v1052_v51 = vpop.permute.xlu0 %1051 }
 0x100   :  { %1198 = vst.msk [vmem:[#allocation2 + $0x170] sm:$0xf] %vm1151_vm4, %v1052_v51  ;;  %1619 = vrot.lane.b32.xlu0 %v6042_v47, %s4580_s6 }
 0x101   :  { %1629 = vrot.lane.b32.xlu1 %v6092_v49, %s4580_s6 }
 0x102   :  { %v1054_v34 = vpop.permute.xlu1 %1053 }
 0x103   :  { %1199 = vst.msk [vmem:[#allocation2 + $0x178] sm:$0xf] %vm1151_vm4, %v1054_v34  ;;  %v1056_v8 = vpop.permute.xlu0 %1055 }
 0x104   :  { %1200 = vst.msk [vmem:[#allocation2 + $0x180] sm:$0xf] %vm1151_vm4, %v1056_v8  ;;  %1623 = vrot.lane.b32.xlu0 %v6065_v26, %s4580_s6 }
 0x105   :  { %1633 = vrot.lane.b32.xlu1 %v6107_v54, %s4580_s6 }
 0x106   :  { %v1058_v16 = vpop.permute.xlu1 %1057 }
 0x107   :  { %1201 = vst.msk [vmem:[#allocation2 + $0x188] sm:$0xf] %vm1151_vm4, %v1058_v16  ;;  %v1060_v15 = vpop.permute.xlu0 %1059 }
 0x108   :  { %1202 = vst.msk [vmem:[#allocation2 + $0x190] sm:$0xf] %vm1151_vm4, %v1060_v15  ;;  %1627 = vrot.lane.b32.xlu0 %v6083_v45, %s4580_s6 }
 0x109   :  { %1637 = vrot.lane.b32.xlu1 %v6121_v30, %s4580_s6 }
 0x10a   :  { %v1062_v19 = vpop.permute.xlu1 %1061 }
 0x10b   :  { %1203 = vst.msk [vmem:[#allocation2 + $0x198] sm:$0xf] %vm1151_vm4, %v1062_v19  ;;  %v1064_v23 = vpop.permute.xlu0 %1063 }
 0x10c   :  { %1204 = vst.msk [vmem:[#allocation2 + $0x1a0] sm:$0xf] %vm1151_vm4, %v1064_v23  ;;  %1631 = vrot.lane.b32.xlu0 %v6098_v10, %s4580_s6 }
 0x10d   :  { %1641 = vrot.lane.b32.xlu1 %v6142_v5, %s4580_s6 }
 0x10e   :  { %v1066_v56 = vpop.permute.xlu1 %1065 }
 0x10f   :  { %1205 = vst.msk [vmem:[#allocation2 + $0x1a8] sm:$0xf] %vm1151_vm4, %v1066_v56  ;;  %v1068_v35 = vpop.permute.xlu0 %1067 }
 0x110   :  { %1206 = vst.msk [vmem:[#allocation2 + $0x1b0] sm:$0xf] %vm1151_vm4, %v1068_v35  ;;  %1635 = vrot.lane.b32.xlu0 %v6113_v42, %s4580_s6 }
 0x111   :  { %1645 = vrot.lane.b32.xlu1 %v6160_v33, %s4580_s6 }
 0x112   :  { %v1070_v29 = vpop.permute.xlu1 %1069 }
 0x113   :  { %1207 = vst.msk [vmem:[#allocation2 + $0x1b8] sm:$0xf] %vm1151_vm4, %v1070_v29  ;;  %v1072_v34 = vpop.permute.xlu0 %1071 }
 0x114   :  { %1208 = vst.msk [vmem:[#allocation2 + $0x1c0] sm:$0xf] %vm1151_vm4, %v1072_v34  ;;  %1639 = vrot.lane.b32.xlu0 %v6132_v11, %s4580_s6 }
 0x115   :  { %1649 = vrot.lane.b32.xlu1 %v6173_v60, %s4580_s6  ;;  %v8275_v60 = vld [vmem:[#allocation62_spill] sm:$0xff] }
 0x116   :  { %v1074_v41 = vpop.permute.xlu1 %1073 }
 0x117   :  { %1209 = vst.msk [vmem:[#allocation2 + $0x1c8] sm:$0xf] %vm1151_vm4, %v1074_v41  ;;  %v1076_v16 = vpop.permute.xlu0 %1075 }
 0x118   :  { %1210 = vst.msk [vmem:[#allocation2 + $0x1d0] sm:$0xf] %vm1151_vm4, %v1076_v16  ;;  %1643 = vrot.lane.b32.xlu0 %v6154_v25, %s4580_s6 }
 0x119   :  { %1653 = vrot.lane.b32.xlu1 %v6190_v28, %s4580_s6  ;;  %v8262_v28 = vld [vmem:[#allocation32_spill] sm:$0xff] }
 0x11a   :  { %v1078_v51 = vpop.permute.xlu1 %1077 }
 0x11b   :  { %1211 = vst.msk [vmem:[#allocation2 + $0x1d8] sm:$0xf] %vm1151_vm4, %v1078_v51  ;;  %v1080_v19 = vpop.permute.xlu0 %1079 }
 0x11c   :  { %1212 = vst.msk [vmem:[#allocation2 + $0x1e0] sm:$0xf] %vm1151_vm4, %v1080_v19  ;;  %1647 = vrot.lane.b32.xlu0 %v6166_v27, %s4580_s6 }
 0x11d   :  { %1657 = vrot.lane.b32.xlu1 %v6212_v46, %s4580_s6 }
 0x11e   :  { %v1082_v8 = vpop.permute.xlu1 %1081 }
 0x11f   :  { %1213 = vst.msk [vmem:[#allocation2 + $0x1e8] sm:$0xf] %vm1151_vm4, %v1082_v8  ;;  %v1084_v56 = vpop.permute.xlu0 %1083 }
 0x120   :  { %1214 = vst.msk [vmem:[#allocation2 + $0x1f0] sm:$0xf] %vm1151_vm4, %v1084_v56  ;;  %1651 = vrot.lane.b32.xlu0 %v6179_v21, %s4580_s6 }
 0x121   :  { %1661 = vrot.lane.b32.xlu1 %v6227_v50, %s4580_s6 }
 0x122   :  { %v1086_v15 = vpop.permute.xlu1 %1085 }
 0x123   :  { %1215 = vst.msk [vmem:[#allocation2 + $0x1f8] sm:$0xf] %vm1151_vm4, %v1086_v15  ;;  %v1540_v29 = vpop.permute.xlu0 %1539 }
 0x124   :  { %1732 = vst.msk [vmem:[#allocation2] sm:$0xf] %vm1731_vm8, %v1540_v29  ;;  %1655 = vrot.lane.b32.xlu0 %v6206_v37, %s4580_s6  ;;  %v8258_v37 = vld [vmem:[#allocation25_spill] sm:$0xff] }
 0x125   :  { %1665 = vrot.lane.b32.xlu1 %v6241_v38, %s4580_s6  ;;  %v8254_v38 = vld [vmem:[#allocation18_spill] sm:$0xff] }
 0x126   :  { %v1542_v23 = vpop.permute.xlu1 %1541 }
 0x127   :  { %1733 = vst.msk [vmem:[#allocation2 + $0x8] sm:$0xf] %vm1731_vm8, %v1542_v23  ;;  %v1544_v41 = vpop.permute.xlu0 %1543 }
 0x128   :  { %1734 = vst.msk [vmem:[#allocation2 + $0x10] sm:$0xf] %vm1731_vm8, %v1544_v41  ;;  %1659 = vrot.lane.b32.xlu0 %v6218_v22, %s4580_s6  ;;  %v8246_v41 = vld [vmem:[#allocation7_spill] sm:$0xff]  ;;  %v8256_v22 = vld [vmem:[#allocation22_spill] sm:$0xff] }
 0x129   :  { %1802 = vrot.lane.b32.xlu1 %v4615_v1, %s4581_s11  ;;  %v8245_v1 = vld [vmem:[#allocation5_spill] sm:$0xff] }
 0x12a   :  { %v1546_v35 = vpop.permute.xlu1 %1545 }
 0x12b   :  { %1735 = vst.msk [vmem:[#allocation2 + $0x18] sm:$0xf] %vm1731_vm8, %v1546_v35  ;;  %v1548_v51 = vpop.permute.xlu0 %1547 }
 0x12c   :  { %1736 = vst.msk [vmem:[#allocation2 + $0x20] sm:$0xf] %vm1731_vm8, %v1548_v51  ;;  %1663 = vrot.lane.b32.xlu0 %v6233_v2, %s4580_s6 }
 0x12d   :  { %1806 = vrot.lane.b32.xlu1 %v4651_v20, %s4581_s11 }
 0x12e   :  { %v1550_v34 = vpop.permute.xlu1 %1549 }
 0x12f   :  { %1737 = vst.msk [vmem:[#allocation2 + $0x28] sm:$0xf] %vm1731_vm8, %v1550_v34  ;;  %v1552_v8 = vpop.permute.xlu0 %1551  ;;  %v8247_v34 = vld [vmem:[#allocation9_spill] sm:$0xff] }
 0x130   :  { %1738 = vst.msk [vmem:[#allocation2 + $0x30] sm:$0xf] %vm1731_vm8, %v1552_v8  ;;  %1800 = vrot.lane.b32.xlu0 %v4610_v0, %s4581_s11  ;;  %v8244_v0 = vld [vmem:[#allocation4_spill] sm:$0xff]  ;;  %v8248_v8 = vld [vmem:[#allocation10_spill] sm:$0xff] }
 0x131   :  { %1810 = vrot.lane.b32.xlu1 %v8244_v0, %s4581_s11 }
 0x132   :  { %v1554_v16 = vpop.permute.xlu1 %1553 }
 0x133   :  { %1739 = vst.msk [vmem:[#allocation2 + $0x38] sm:$0xf] %vm1731_vm8, %v1554_v16  ;;  %v1556_v15 = vpop.permute.xlu0 %1555 }
 0x134   :  { %1740 = vst.msk [vmem:[#allocation2 + $0x40] sm:$0xf] %vm1731_vm8, %v1556_v15  ;;  %1804 = vrot.lane.b32.xlu0 %v4669_v31, %s4581_s11 }
 0x135   :  { %1814 = vrot.lane.b32.xlu1 %v8246_v41, %s4581_s11 }
 0x136   :  { %v1558_v19 = vpop.permute.xlu1 %1557 }
 0x137   :  { %1741 = vst.msk [vmem:[#allocation2 + $0x48] sm:$0xf] %vm1731_vm8, %v1558_v19  ;;  %v1560_v23 = vpop.permute.xlu0 %1559  ;;  %v8249_v19 = vld [vmem:[#allocation11_spill] sm:$0xff] }
 0x138   :  { %1742 = vst.msk [vmem:[#allocation2 + $0x50] sm:$0xf] %vm1731_vm8, %v1560_v23  ;;  %1808 = vrot.lane.b32.xlu0 %v8245_v1, %s4581_s11  ;;  %v8250_v23 = vld [vmem:[#allocation12_spill] sm:$0xff] }
 0x139   :  { %1818 = vrot.lane.b32.xlu1 %v8248_v8, %s4581_s11 }
 0x13a   :  { %v1562_v56 = vpop.permute.xlu1 %1561 }
 0x13b   :  { %1743 = vst.msk [vmem:[#allocation2 + $0x58] sm:$0xf] %vm1731_vm8, %v1562_v56  ;;  %v1564_v35 = vpop.permute.xlu0 %1563 }
 0x13c   :  { %1744 = vst.msk [vmem:[#allocation2 + $0x60] sm:$0xf] %vm1731_vm8, %v1564_v35  ;;  %1812 = vrot.lane.b32.xlu0 %v8247_v34, %s4581_s11 }
 0x13d   :  { %1822 = vrot.lane.b32.xlu1 %v8250_v23, %s4581_s11 }
 0x13e   :  { %v1566_v29 = vpop.permute.xlu1 %1565 }
 0x13f   :  { %1745 = vst.msk [vmem:[#allocation2 + $0x68] sm:$0xf] %vm1731_vm8, %v1566_v29  ;;  %v1568_v16 = vpop.permute.xlu0 %1567  ;;  %v8251_v29 = vld [vmem:[#allocation14_spill] sm:$0xff] }
 0x140   :  { %1746 = vst.msk [vmem:[#allocation2 + $0x70] sm:$0xf] %vm1731_vm8, %v1568_v16  ;;  %1816 = vrot.lane.b32.xlu0 %v8249_v19, %s4581_s11  ;;  %v8252_v16 = vld [vmem:[#allocation15_spill] sm:$0xff] }
 0x141   :  { %1826 = vrot.lane.b32.xlu1 %v8252_v16, %s4581_s11 }
 0x142   :  { %v1570_v51 = vpop.permute.xlu1 %1569 }
 0x143   :  { %1747 = vst.msk [vmem:[#allocation2 + $0x78] sm:$0xf] %vm1731_vm8, %v1570_v51  ;;  %v1572_v56 = vpop.permute.xlu0 %1571 }
 0x144   :  { %1748 = vst.msk [vmem:[#allocation2 + $0x80] sm:$0xf] %vm1731_vm8, %v1572_v56  ;;  %1820 = vrot.lane.b32.xlu0 %v8251_v29, %s4581_s11 }
 0x145   :  { %1830 = vrot.lane.b32.xlu1 %v8254_v38, %s4581_s11 }
 0x146   :  { %v1574_v15 = vpop.permute.xlu1 %1573 }
 0x147   :  { %1749 = vst.msk [vmem:[#allocation2 + $0x88] sm:$0xf] %vm1731_vm8, %v1574_v15  ;;  %v1576_v51 = vpop.permute.xlu0 %1575  ;;  %v8253_v15 = vld [vmem:[#allocation17_spill] sm:$0xff] }
 0x148   :  { %1750 = vst.msk [vmem:[#allocation2 + $0x90] sm:$0xf] %vm1731_vm8, %v1576_v51  ;;  %1824 = vrot.lane.b32.xlu0 %v8253_v15, %s4581_s11 }
 0x149   :  { %1834 = vrot.lane.b32.xlu1 %v8256_v22, %s4581_s11 }
 0x14a   :  { %v1578_v35 = vpop.permute.xlu1 %1577 }
 0x14b   :  { %1751 = vst.msk [vmem:[#allocation2 + $0x98] sm:$0xf] %vm1731_vm8, %v1578_v35  ;;  %v1580_v56 = vpop.permute.xlu0 %1579  ;;  %v8255_v35 = vld [vmem:[#allocation21_spill] sm:$0xff] }
 0x14c   :  { %1752 = vst.msk [vmem:[#allocation2 + $0xa0] sm:$0xf] %vm1731_vm8, %v1580_v56  ;;  %1828 = vrot.lane.b32.xlu0 %v8255_v35, %s4581_s11 }
 0x14d   :  { %1838 = vrot.lane.b32.xlu1 %v8258_v37, %s4581_s11 }
 0x14e   :  { %v1582_v2 = vpop.permute.xlu1 %1581 }
 0x14f   :  { %1753 = vst.msk [vmem:[#allocation2 + $0xa8] sm:$0xf] %vm1731_vm8, %v1582_v2  ;;  %v1584_v51 = vpop.permute.xlu0 %1583  ;;  %v8257_v2 = vld [vmem:[#allocation24_spill] sm:$0xff] }
 0x150   :  { %1754 = vst.msk [vmem:[#allocation2 + $0xb0] sm:$0xf] %vm1731_vm8, %v1584_v51  ;;  %1832 = vrot.lane.b32.xlu0 %v8257_v2, %s4581_s11  ;;  %v8306_v2 = vld [vmem:[#allocation48_spill] sm:$0xff] }
 0x151   :  { %1842 = vrot.lane.b32.xlu1 %v8260_v24, %s4581_s11  ;;  %v8278_v24 = vld [vmem:[#allocation68_spill] sm:$0xff] }
 0x152   :  { %v1586_v40 = vpop.permute.xlu1 %1585 }
 0x153   :  { %1755 = vst.msk [vmem:[#allocation2 + $0xb8] sm:$0xf] %vm1731_vm8, %v1586_v40  ;;  %v1588_v56 = vpop.permute.xlu0 %1587  ;;  %v8259_v40 = vld [vmem:[#allocation27_spill] sm:$0xff] }
 0x154   :  { %1756 = vst.msk [vmem:[#allocation2 + $0xc0] sm:$0xf] %vm1731_vm8, %v1588_v56  ;;  %1836 = vrot.lane.b32.xlu0 %v8259_v40, %s4581_s11  ;;  %v8300_v40 = vld [vmem:[#allocation33_spill] sm:$0xff] }
 0x155   :  { %1846 = vrot.lane.b32.xlu1 %v8262_v28, %s4581_s11 }
 0x156   :  { %v1590_v50 = vpop.permute.xlu1 %1589 }
 0x157   :  { %1757 = vst.msk [vmem:[#allocation2 + $0xc8] sm:$0xf] %vm1731_vm8, %v1590_v50  ;;  %v1592_v51 = vpop.permute.xlu0 %1591  ;;  %v8261_v50 = vld [vmem:[#allocation30_spill] sm:$0xff] }
 0x158   :  { %1758 = vst.msk [vmem:[#allocation2 + $0xd0] sm:$0xf] %vm1731_vm8, %v1592_v51  ;;  %1840 = vrot.lane.b32.xlu0 %v8261_v50, %s4581_s11  ;;  %v8280_v50 = vld [vmem:[#allocation75_spill] sm:$0xff] }
 0x159   :  { %1850 = vrot.lane.b32.xlu1 %v8264_v36, %s4581_s11 }
 0x15a   :  { %v1594_v46 = vpop.permute.xlu1 %1593 }
 0x15b   :  { %1759 = vst.msk [vmem:[#allocation2 + $0xd8] sm:$0xf] %vm1731_vm8, %v1594_v46  ;;  %v1596_v56 = vpop.permute.xlu0 %1595  ;;  %v8263_v46 = vld [vmem:[#allocation34_spill] sm:$0xff] }
 0x15c   :  { %1760 = vst.msk [vmem:[#allocation2 + $0xe0] sm:$0xf] %vm1731_vm8, %v1596_v56  ;;  %1844 = vrot.lane.b32.xlu0 %v8263_v46, %s4581_s11  ;;  %v8266_v46 = vld [vmem:[#allocation39_spill] sm:$0xff] }
 0x15d   :  { %1854 = vrot.lane.b32.xlu1 %v8266_v46, %s4581_s11 }
 0x15e   :  { %v1598_v21 = vpop.permute.xlu1 %1597 }
 0x15f   :  { %1761 = vst.msk [vmem:[#allocation2 + $0xe8] sm:$0xf] %vm1731_vm8, %v1598_v21  ;;  %v1600_v51 = vpop.permute.xlu0 %1599  ;;  %v8265_v21 = vld [vmem:[#allocation37_spill] sm:$0xff] }
 0x160   :  { %1762 = vst.msk [vmem:[#allocation2 + $0xf0] sm:$0xf] %vm1731_vm8, %v1600_v51  ;;  %1848 = vrot.lane.b32.xlu0 %v8265_v21, %s4581_s11  ;;  %v8268_v21 = vld [vmem:[#allocation42_spill] sm:$0xff] }
 0x161   :  { %1858 = vrot.lane.b32.xlu1 %v8268_v21, %s4581_s11  ;;  %v8270_v21 = vld [vmem:[#allocation52_spill] sm:$0xff] }
 0x162   :  { %v1602_v39 = vpop.permute.xlu1 %1601 }
 0x163   :  { %1763 = vst.msk [vmem:[#allocation2 + $0xf8] sm:$0xf] %vm1731_vm8, %v1602_v39  ;;  %v1604_v56 = vpop.permute.xlu0 %1603  ;;  %v8267_v39 = vld [vmem:[#allocation40_spill] sm:$0xff] }
 0x164   :  { %1764 = vst.msk [vmem:[#allocation2 + $0x100] sm:$0xf] %vm1731_vm8, %v1604_v56  ;;  %1852 = vrot.lane.b32.xlu0 %v8267_v39, %s4581_s11  ;;  %v6486_v56 = vld [vmem:[%s7731_s0 + $0xc4] sm:$0xf]  ;;  %v6491_v39 = vld [vmem:[%s7731_s0 + $0xc0] sm:$0xf] }
 0x165   :  { %1862 = vrot.lane.b32.xlu1 %v6486_v56, %s4581_s11 }
 0x166   :  { %v1606_v61 = vpop.permute.xlu1 %1605 }
 0x167   :  { %1765 = vst.msk [vmem:[#allocation2 + $0x108] sm:$0xf] %vm1731_vm8, %v1606_v61  ;;  %v1608_v51 = vpop.permute.xlu0 %1607  ;;  %v8269_v61 = vld [vmem:[#allocation44_spill] sm:$0xff] }
 0x168   :  { %1766 = vst.msk [vmem:[#allocation2 + $0x110] sm:$0xf] %vm1731_vm8, %v1608_v51  ;;  %1856 = vrot.lane.b32.xlu0 %v8269_v61, %s4581_s11 }
 0x169   :  { %1866 = vrot.lane.b32.xlu1 %v8241_v13, %s4581_s11  ;;  %v8272_v13 = vld [vmem:[#allocation55_spill] sm:$0xff] }
 0x16a   :  { %v1610_v28 = vpop.permute.xlu1 %1609 }
 0x16b   :  { %1767 = vst.msk [vmem:[#allocation2 + $0x118] sm:$0xf] %vm1731_vm8, %v1610_v28  ;;  %v1612_v28 = vpop.permute.xlu0 %1611 }
 0x16c   :  { %1768 = vst.msk [vmem:[#allocation2 + $0x120] sm:$0xf] %vm1731_vm8, %v1612_v28  ;;  %1860 = vrot.lane.b32.xlu0 %v6491_v39, %s4581_s11 }
 0x16d   :  { %1870 = vrot.lane.b32.xlu1 %v8270_v21, %s4581_s11 }
 0x16e   :  { %v1614_v46 = vpop.permute.xlu1 %1613 }
 0x16f   :  { %1769 = vst.msk [vmem:[#allocation2 + $0x128] sm:$0xf] %vm1731_vm8, %v1614_v46  ;;  %v1616_v61 = vpop.permute.xlu0 %1615 }
 0x170   :  { %1770 = vst.msk [vmem:[#allocation2 + $0x130] sm:$0xf] %vm1731_vm8, %v1616_v61  ;;  %1864 = vrot.lane.b32.xlu0 %v8243_v17, %s4581_s11 }
 0x171   :  { %1874 = vrot.lane.b32.xlu1 %v8272_v13, %s4581_s11 }
 0x172   :  { %v1618_v51 = vpop.permute.xlu1 %1617 }
 0x173   :  { %1771 = vst.msk [vmem:[#allocation2 + $0x138] sm:$0xf] %vm1731_vm8, %v1618_v51  ;;  %v1620_v28 = vpop.permute.xlu0 %1619  ;;  %v8271_v51 = vld [vmem:[#allocation54_spill] sm:$0xff] }
 0x174   :  { %1772 = vst.msk [vmem:[#allocation2 + $0x140] sm:$0xf] %vm1731_vm8, %v1620_v28  ;;  %1868 = vrot.lane.b32.xlu0 %v8271_v51, %s4581_s11  ;;  %v8273_v28 = vld [vmem:[#allocation59_spill] sm:$0xff] }
 0x175   :  { %1878 = vrot.lane.b32.xlu1 %v8273_v28, %s4581_s11 }
 0x176   :  { %v1622_v46 = vpop.permute.xlu1 %1621 }
 0x177   :  { %1773 = vst.msk [vmem:[#allocation2 + $0x148] sm:$0xf] %vm1731_vm8, %v1622_v46  ;;  %v1624_v61 = vpop.permute.xlu0 %1623 }
 0x178   :  { %1774 = vst.msk [vmem:[#allocation2 + $0x150] sm:$0xf] %vm1731_vm8, %v1624_v61  ;;  %1872 = vrot.lane.b32.xlu0 %v8205_v52, %s4581_s11 }
 0x179   :  { %1882 = vrot.lane.b32.xlu1 %v8275_v60, %s4581_s11 }
 0x17a   :  { %v1626_v36 = vpop.permute.xlu1 %1625 }
 0x17b   :  { %1775 = vst.msk [vmem:[#allocation2 + $0x158] sm:$0xf] %vm1731_vm8, %v1626_v36  ;;  %v1628_v46 = vpop.permute.xlu0 %1627  ;;  %v8274_v36 = vld [vmem:[#allocation61_spill] sm:$0xff] }
 0x17c   :  { %1776 = vst.msk [vmem:[#allocation2 + $0x160] sm:$0xf] %vm1731_vm8, %v1628_v46  ;;  %1876 = vrot.lane.b32.xlu0 %v8274_v36, %s4581_s11 }
 0x17d   :  { %1886 = vrot.lane.b32.xlu1 %v8277_v48, %s4581_s11 }
 0x17e   :  { %v1630_v17 = vpop.permute.xlu1 %1629 }
 0x17f   :  { %1777 = vst.msk [vmem:[#allocation2 + $0x168] sm:$0xf] %vm1731_vm8, %v1630_v17  ;;  %v1632_v61 = vpop.permute.xlu0 %1631  ;;  %v8276_v17 = vld [vmem:[#allocation64_spill] sm:$0xff] }
 0x180   :  { %1778 = vst.msk [vmem:[#allocation2 + $0x170] sm:$0xf] %vm1731_vm8, %v1632_v61  ;;  %1880 = vrot.lane.b32.xlu0 %v8276_v17, %s4581_s11 }
 0x181   :  { %1890 = vrot.lane.b32.xlu1 %v8278_v24, %s4581_s11 }
 0x182   :  { %v1634_v27 = vpop.permute.xlu1 %1633 }
 0x183   :  { %1779 = vst.msk [vmem:[#allocation2 + $0x178] sm:$0xf] %vm1731_vm8, %v1634_v27  ;;  %v1636_v46 = vpop.permute.xlu0 %1635 }
 0x184   :  { %1780 = vst.msk [vmem:[#allocation2 + $0x180] sm:$0xf] %vm1731_vm8, %v1636_v46  ;;  %1884 = vrot.lane.b32.xlu0 %v5194_v55, %s4581_s11 }
 0x185   :  { %1894 = vrot.lane.b32.xlu1 %v5229_v44, %s4581_s11 }
 0x186   :  { %v1638_v58 = vpop.permute.xlu1 %1637 }
 0x187   :  { %1781 = vst.msk [vmem:[#allocation2 + $0x188] sm:$0xf] %vm1731_vm8, %v1638_v58  ;;  %v1640_v61 = vpop.permute.xlu0 %1639 }
 0x188   :  { %1782 = vst.msk [vmem:[#allocation2 + $0x190] sm:$0xf] %vm1731_vm8, %v1640_v61  ;;  %1888 = vrot.lane.b32.xlu0 %v8213_v18, %s4581_s11 }
 0x189   :  { %1898 = vrot.lane.b32.xlu1 %v8280_v50, %s4581_s11  ;;  %v8302_v50 = vld [vmem:[#allocation38_spill] sm:$0xff] }
 0x18a   :  { %v1642_v27 = vpop.permute.xlu1 %1641 }
 0x18b   :  { %1783 = vst.msk [vmem:[#allocation2 + $0x198] sm:$0xf] %vm1731_vm8, %v1642_v27  ;;  %v1644_v46 = vpop.permute.xlu0 %1643  ;;  %v8279_v27 = vld [vmem:[#allocation73_spill] sm:$0xff] }
 0x18c   :  { %1784 = vst.msk [vmem:[#allocation2 + $0x1a0] sm:$0xf] %vm1731_vm8, %v1644_v46  ;;  %1892 = vrot.lane.b32.xlu0 %v8279_v27, %s4581_s11 }
 0x18d   :  { %1902 = vrot.lane.b32.xlu1 %v8218_v6, %s4581_s11  ;;  %v8285_v6 = vld [vmem:[#allocation85_spill] sm:$0xff] }
 0x18e   :  { %v1646_v58 = vpop.permute.xlu1 %1645 }
 0x18f   :  { %1785 = vst.msk [vmem:[#allocation2 + $0x1a8] sm:$0xf] %vm1731_vm8, %v1646_v58  ;;  %v1648_v61 = vpop.permute.xlu0 %1647  ;;  %v8281_v58 = vld [vmem:[#allocation76_spill] sm:$0xff] }
 0x190   :  { %1786 = vst.msk [vmem:[#allocation2 + $0x1b0] sm:$0xf] %vm1731_vm8, %v1648_v61  ;;  %1896 = vrot.lane.b32.xlu0 %v8281_v58, %s4581_s11  ;;  %v8304_v58 = vld [vmem:[#allocation43_spill] sm:$0xff] }
 0x191   :  { %1906 = vrot.lane.b32.xlu1 %v8283_v9, %s4581_s11  ;;  %v8286_v9 = vld [vmem:[#allocation88_spill] sm:$0xff] }
 0x192   :  { %v1650_v33 = vpop.permute.xlu1 %1649 }
 0x193   :  { %1787 = vst.msk [vmem:[#allocation2 + $0x1b8] sm:$0xf] %vm1731_vm8, %v1650_v33  ;;  %v1652_v46 = vpop.permute.xlu0 %1651  ;;  %v8282_v33 = vld [vmem:[#allocation81_spill] sm:$0xff] }
 0x194   :  { %1788 = vst.msk [vmem:[#allocation2 + $0x1c0] sm:$0xf] %vm1731_vm8, %v1652_v46  ;;  %1900 = vrot.lane.b32.xlu0 %v8282_v33, %s4581_s11  ;;  %v8298_v33 = vld [vmem:[#allocation29_spill] sm:$0xff] }
 0x195   :  { %1910 = vrot.lane.b32.xlu1 %v8285_v6, %s4581_s11 }
 0x196   :  { %v1654_v57 = vpop.permute.xlu1 %1653 }
 0x197   :  { %1789 = vst.msk [vmem:[#allocation2 + $0x1c8] sm:$0xf] %vm1731_vm8, %v1654_v57  ;;  %v1656_v61 = vpop.permute.xlu0 %1655  ;;  %v8284_v57 = vld [vmem:[#allocation84_spill] sm:$0xff] }
 0x198   :  { %1790 = vst.msk [vmem:[#allocation2 + $0x1d0] sm:$0xf] %vm1731_vm8, %v1656_v61  ;;  %1904 = vrot.lane.b32.xlu0 %v8284_v57, %s4581_s11 }
 0x199   :  { %1914 = vrot.lane.b32.xlu1 %v8286_v9, %s4581_s11  ;;  %v8296_v9 = vld [vmem:[#allocation23_spill] sm:$0xff] }
 0x19a   :  { %v1658_v25 = vpop.permute.xlu1 %1657 }
 0x19b   :  { %1791 = vst.msk [vmem:[#allocation2 + $0x1d8] sm:$0xf] %vm1731_vm8, %v1658_v25  ;;  %v1660_v46 = vpop.permute.xlu0 %1659 }
 0x19c   :  { %1792 = vst.msk [vmem:[#allocation2 + $0x1e0] sm:$0xf] %vm1731_vm8, %v1660_v46  ;;  %1908 = vrot.lane.b32.xlu0 %v8225_v7, %s4581_s11  ;;  %v8288_v7 = vld [vmem:[#allocation92_spill] sm:$0xff] }
 0x19d   :  { %1918 = vrot.lane.b32.xlu1 %v8288_v7, %s4581_s11  ;;  %v8291_v7 = vld [vmem:[#allocation6_spill] sm:$0xff] }
 0x19e   :  { %v1662_v37 = vpop.permute.xlu1 %1661 }
 0x19f   :  { %1793 = vst.msk [vmem:[#allocation2 + $0x1e8] sm:$0xf] %vm1731_vm8, %v1662_v37  ;;  %v1664_v61 = vpop.permute.xlu0 %1663  ;;  %v8287_v37 = vld [vmem:[#allocation91_spill] sm:$0xff] }
 0x1a0   :  { %1794 = vst.msk [vmem:[#allocation2 + $0x1f0] sm:$0xf] %vm1731_vm8, %v1664_v61  ;;  %1912 = vrot.lane.b32.xlu0 %v8287_v37, %s4581_s11  ;;  %v8289_v37 = vld [vmem:[#allocation97_spill] sm:$0xff] }
 0x1a1   :  { %1922 = vrot.lane.b32.xlu1 %v8289_v37, %s4581_s11  ;;  %v8290_v37 = vld [vmem:[#allocation8_spill] sm:$0xff] }
 0x1a2   :  { %v1666_v25 = vpop.permute.xlu1 %1665 }
 0x1a3   :  { %1795 = vst.msk [vmem:[#allocation2 + $0x1f8] sm:$0xf] %vm1731_vm8, %v1666_v25  ;;  %v1801_v6 = vpop.permute.xlu0 %1800 }
 0x1a4   :  { %1993 = vst.msk [vmem:[#allocation2] sm:$0xf] %vm1992_vm9, %v1801_v6  ;;  %1916 = vrot.lane.b32.xlu0 %v8231_v3, %s4581_s11  ;;  %v118_v6 = vld [vmem:[%s7731_s0 + $0x19c] sm:$0xf]  ;;  %v117_v3 = vld [vmem:[%s7731_s0 + $0x198] sm:$0xf] }
 0x1a5   :  { %1926 = vrot.lane.b32.xlu1 %v118_v6, %s4581_s11  ;;  %v8293_v6 = vld [vmem:[#allocation16_spill] sm:$0xff] }
 0x1a6   :  { %v1803_v46 = vpop.permute.xlu1 %1802 }
 0x1a7   :  { %1994 = vst.msk [vmem:[#allocation2 + $0x8] sm:$0xf] %vm1992_vm9, %v1803_v46  ;;  %v1805_v61 = vpop.permute.xlu0 %1804 }
 0x1a8   :  { %1995 = vst.msk [vmem:[#allocation2 + $0x10] sm:$0xf] %vm1992_vm9, %v1805_v61  ;;  %1920 = vrot.lane.b32.xlu0 %v5444_v43, %s4581_s11 }
 0x1a9   :  { %2107 = vrot.lane.b32.xlu1 %v8290_v37, %s4582_s14  ;;  %v8295_v37 = vld [vmem:[#allocation20_spill] sm:$0xff] }
 0x1aa   :  { %v1807_v25 = vpop.permute.xlu1 %1806 }
 0x1ab   :  { %1996 = vst.msk [vmem:[#allocation2 + $0x18] sm:$0xf] %vm1992_vm9, %v1807_v25  ;;  %v1809_v25 = vpop.permute.xlu0 %1808 }
 0x1ac   :  { %1997 = vst.msk [vmem:[#allocation2 + $0x20] sm:$0xf] %vm1992_vm9, %v1809_v25  ;;  %1924 = vrot.lane.b32.xlu0 %v117_v3, %s4581_s11  ;;  %v8292_v3 = vld [vmem:[#allocation13_spill] sm:$0xff]  ;;  %s4585_s11 = smov 96  }
 0x1ad   :  { %2111 = vrot.lane.b32.xlu1 %v8292_v3, %s4582_s14 }
 0x1ae   :  { %v1811_v46 = vpop.permute.xlu1 %1810 }
 0x1af   :  { %1998 = vst.msk [vmem:[#allocation2 + $0x28] sm:$0xf] %vm1992_vm9, %v1811_v46  ;;  %v1813_v43 = vpop.permute.xlu0 %1812 }
 0x1b0   :  { %1999 = vst.msk [vmem:[#allocation2 + $0x30] sm:$0xf] %vm1992_vm9, %v1813_v43  ;;  %2105 = vrot.lane.b32.xlu0 %v8291_v7, %s4582_s14  ;;  %v8294_v7 = vld [vmem:[#allocation19_spill] sm:$0xff] }
 0x1b1   :  { %2115 = vrot.lane.b32.xlu1 %v8294_v7, %s4582_s14 }
 0x1b2   :  { %v1815_v61 = vpop.permute.xlu1 %1814 }
 0x1b3   :  { %2000 = vst.msk [vmem:[#allocation2 + $0x38] sm:$0xf] %vm1992_vm9, %v1815_v61  ;;  %v1817_v25 = vpop.permute.xlu0 %1816 }
 0x1b4   :  { %2001 = vst.msk [vmem:[#allocation2 + $0x40] sm:$0xf] %vm1992_vm9, %v1817_v25  ;;  %2109 = vrot.lane.b32.xlu0 %v8293_v6, %s4582_s14 }
 0x1b5   :  { %2119 = vrot.lane.b32.xlu1 %v8296_v9, %s4582_s14 }
 0x1b6   :  { %v1819_v46 = vpop.permute.xlu1 %1818 }
 0x1b7   :  { %2002 = vst.msk [vmem:[#allocation2 + $0x48] sm:$0xf] %vm1992_vm9, %v1819_v46  ;;  %v1821_v61 = vpop.permute.xlu0 %1820 }
 0x1b8   :  { %2003 = vst.msk [vmem:[#allocation2 + $0x50] sm:$0xf] %vm1992_vm9, %v1821_v61  ;;  %2113 = vrot.lane.b32.xlu0 %v8295_v37, %s4582_s14 }
 0x1b9   :  { %2123 = vrot.lane.b32.xlu1 %v8298_v33, %s4582_s14 }
 0x1ba   :  { %v1823_v43 = vpop.permute.xlu1 %1822 }
 0x1bb   :  { %2004 = vst.msk [vmem:[#allocation2 + $0x58] sm:$0xf] %vm1992_vm9, %v1823_v43  ;;  %v1825_v25 = vpop.permute.xlu0 %1824  ;;  %v8297_v43 = vld [vmem:[#allocation26_spill] sm:$0xff] }
 0x1bc   :  { %2005 = vst.msk [vmem:[#allocation2 + $0x60] sm:$0xf] %vm1992_vm9, %v1825_v25  ;;  %2117 = vrot.lane.b32.xlu0 %v8297_v43, %s4582_s14 }
 0x1bd   :  { %2127 = vrot.lane.b32.xlu1 %v8300_v40, %s4582_s14 }
 0x1be   :  { %v1827_v46 = vpop.permute.xlu1 %1826 }
 0x1bf   :  { %2006 = vst.msk [vmem:[#allocation2 + $0x68] sm:$0xf] %vm1992_vm9, %v1827_v46  ;;  %v1829_v61 = vpop.permute.xlu0 %1828  ;;  %v8299_v46 = vld [vmem:[#allocation31_spill] sm:$0xff] }
 0x1c0   :  { %2007 = vst.msk [vmem:[#allocation2 + $0x70] sm:$0xf] %vm1992_vm9, %v1829_v61  ;;  %2121 = vrot.lane.b32.xlu0 %v8299_v46, %s4582_s14 }
 0x1c1   :  { %2131 = vrot.lane.b32.xlu1 %v8302_v50, %s4582_s14 }
 0x1c2   :  { %v1831_v57 = vpop.permute.xlu1 %1830 }
 0x1c3   :  { %2008 = vst.msk [vmem:[#allocation2 + $0x78] sm:$0xf] %vm1992_vm9, %v1831_v57  ;;  %v1833_v25 = vpop.permute.xlu0 %1832  ;;  %v8301_v57 = vld [vmem:[#allocation36_spill] sm:$0xff] }
 0x1c4   :  { %2009 = vst.msk [vmem:[#allocation2 + $0x80] sm:$0xf] %vm1992_vm9, %v1833_v25  ;;  %2125 = vrot.lane.b32.xlu0 %v8301_v57, %s4582_s14 }
 0x1c5   :  { %2135 = vrot.lane.b32.xlu1 %v8304_v58, %s4582_s14  ;;  %v8308_v58 = vld [vmem:[#allocation53_spill] sm:$0xff] }
 0x1c6   :  { %v1835_v5 = vpop.permute.xlu1 %1834 }
 0x1c7   :  { %2010 = vst.msk [vmem:[#allocation2 + $0x88] sm:$0xf] %vm1992_vm9, %v1835_v5  ;;  %v1837_v61 = vpop.permute.xlu0 %1836  ;;  %v8303_v5 = vld [vmem:[#allocation41_spill] sm:$0xff] }
 0x1c8   :  { %2011 = vst.msk [vmem:[#allocation2 + $0x90] sm:$0xf] %vm1992_vm9, %v1837_v61  ;;  %2129 = vrot.lane.b32.xlu0 %v8303_v5, %s4582_s14 }
 0x1c9   :  { %2139 = vrot.lane.b32.xlu1 %v8306_v2, %s4582_s14  ;;  %v8310_v2 = vld [vmem:[#allocation57_spill] sm:$0xff] }
 0x1ca   :  { %v1839_v11 = vpop.permute.xlu1 %1838 }
 0x1cb   :  { %2012 = vst.msk [vmem:[#allocation2 + $0x98] sm:$0xf] %vm1992_vm9, %v1839_v11  ;;  %v1841_v25 = vpop.permute.xlu0 %1840  ;;  %v8305_v11 = vld [vmem:[#allocation45_spill] sm:$0xff] }
 0x1cc   :  { %2013 = vst.msk [vmem:[#allocation2 + $0xa0] sm:$0xf] %vm1992_vm9, %v1841_v25  ;;  %2133 = vrot.lane.b32.xlu0 %v8305_v11, %s4582_s14  ;;  %v2058_v11 = vshrl.u32 %v6491_v39, 16 }
 0x1cd   :  { %2143 = vrot.lane.b32.xlu1 %v8308_v58, %s4582_s14 }
 0x1ce   :  { %v1843_v22 = vpop.permute.xlu1 %1842  ;;  %v2060_v54 = vrot.slane %v2058_v11, 4  ;;  %v8317_v11 = vld [vmem:[#allocation74_spill] sm:$0xff] }
 0x1cf   :  { %2014 = vst.msk [vmem:[#allocation2 + $0xa8] sm:$0xf] %vm1992_vm9, %v1843_v22  ;;  %v1845_v61 = vpop.permute.xlu0 %1844  ;;  %v8307_v22 = vld [vmem:[#allocation50_spill] sm:$0xff] }
 0x1d0   :  { %2015 = vst.msk [vmem:[#allocation2 + $0xb0] sm:$0xf] %vm1992_vm9, %v1845_v61  ;;  %2137 = vrot.lane.b32.xlu0 %v8307_v22, %s4582_s14  ;;  %v2071_v22 = vshrl.u32 %v6486_v56, 16 }
 0x1d1   :  { %2147 = vrot.lane.b32.xlu1 %v8310_v2, %s4582_s14  ;;  %v8313_v2 = vld [vmem:[#allocation66_spill] sm:$0xff] }
 0x1d2   :  { %v1847_v30 = vpop.permute.xlu1 %1846  ;;  %v2073_v38 = vrot.slane %v2071_v22, 4 }
 0x1d3   :  { %2016 = vst.msk [vmem:[#allocation2 + $0xb8] sm:$0xf] %vm1992_vm9, %v1847_v30  ;;  %v1849_v25 = vpop.permute.xlu0 %1848  ;;  %v8309_v30 = vld [vmem:[#allocation56_spill] sm:$0xff] }
 0x1d4   :  { %2017 = vst.msk [vmem:[#allocation2 + $0xc0] sm:$0xf] %vm1992_vm9, %v1849_v25  ;;  %2141 = vrot.lane.b32.xlu0 %v8309_v30, %s4582_s14  ;;  %v2067_v25 = vshll.u32 %v6486_v56, 16  ;;  %v2061_v30 = vshll.u32 %v6491_v39, 16  ;;  %v65_v56 = vld [vmem:[%s7731_s0 + $0xc8] sm:$0x1] }
 0x1d5   :  { %v2077_v22 = vshll.u32 %v65_v56, 16 }
 0x1d6   :  { %v1851_v42 = vpop.permute.xlu1 %1850  ;;  %v2063_v39 = vrot.slane %v2061_v30, 5 }
 0x1d7   :  { %2018 = vst.msk [vmem:[#allocation2 + $0xc8] sm:$0xf] %vm1992_vm9, %v1851_v42  ;;  %v1853_v61 = vpop.permute.xlu0 %1852  ;;  %v8311_v42 = vld [vmem:[#allocation60_spill] sm:$0xff] }
 0x1d8   :  { %2019 = vst.msk [vmem:[#allocation2 + $0xd0] sm:$0xf] %vm1992_vm9, %v1853_v61  ;;  %2145 = vrot.lane.b32.xlu0 %v8311_v42, %s4582_s14  ;;  %v8312_v61 = vld [vmem:[#allocation63_spill] sm:$0xff]  ;;  %v2069_v42 = vrot.slane %v2067_v25, 5  ;;  %v2064_v35 = vor.u32 %v2063_v39, %v2060_v54  ;;  %v8318_v54 = vld [vmem:[#allocation77_spill] sm:$0xff] }
 0x1d9   :  { %2151 = vrot.lane.b32.xlu1 %v8312_v61, %s4582_s14  ;;  %v8315_v61 = vld [vmem:[#allocation69_spill] sm:$0xff] }
 0x1da   :  { %v1855_v44 = vpop.permute.xlu1 %1854  ;;  %v2074_v25 = vor.u32 %v2073_v38, %v2069_v42  ;;  %v2065_v50 = vrot.slane %v2064_v35, 4 }
 0x1db   :  { %2020 = vst.msk [vmem:[#allocation2 + $0xd8] sm:$0xf] %vm1992_vm9, %v1855_v44  ;;  %v1857_v44 = vpop.permute.xlu0 %1856 }
 0x1dc   :  { %2021 = vst.msk [vmem:[#allocation2 + $0xe0] sm:$0xf] %vm1992_vm9, %v1857_v44  ;;  %2149 = vrot.lane.b32.xlu0 %v8313_v2, %s4582_s14  ;;  %v8314_v44 = vld [vmem:[#allocation67_spill] sm:$0xff]  ;;  %v2075_v30 = vrot.slane %v2074_v25, 4  ;;  %v6702_v25 = vsel %vm4661_vm3, %v2065_v50, %v2069_v42  ;;  %v8323_v50 = vld [vmem:[#allocation86_spill] sm:$0xff] }
 0x1dd   :  { %2155 = vrot.lane.b32.xlu1 %v8314_v44, %s4582_s14  ;;  %8322 = vst [vmem:[#allocation49_spill] sm:$0xff] %v6702_v25  ;;  %v8324_v42 = vld [vmem:[#allocation90_spill] sm:$0xff] }
 0x1de   :  { %v1859_v58 = vpop.permute.xlu1 %1858 }
 0x1df   :  { %2022 = vst.msk [vmem:[#allocation2 + $0xe8] sm:$0xf] %vm1992_vm9, %v1859_v58  ;;  %v1861_v58 = vpop.permute.xlu0 %1860 }
 0x1e0   :  { %2023 = vst.msk [vmem:[#allocation2 + $0xf0] sm:$0xf] %vm1992_vm9, %v1861_v58  ;;  %2153 = vrot.lane.b32.xlu0 %v8315_v61, %s4582_s14  ;;  %v2079_v58 = vrot.slane %v2077_v22, 5  ;;  %v4479_v61 = vld [vmem:[%s7732_s1 + $0x30] sm:$0xff]  }
 0x1e2   :  { %v1863_v27 = vpop.permute.xlu1 %1862  ;;  %v6698_v56 = vsel %vm4661_vm3, %v2075_v30, %v2079_v58 }
 0x1e3   :  { %2024 = vst.msk [vmem:[#allocation2 + $0xf8] sm:$0xf] %vm1992_vm9, %v1863_v27  ;;  %v1865_v10 = vpop.permute.xlu0 %1864  ;;  %v8316_v27 = vld [vmem:[#allocation72_spill] sm:$0xff]  ;;  %8321 = vst [vmem:[#allocation46_spill] sm:$0xff] %v6698_v56 }
 0x1e4   :  { %2025 = vst.msk [vmem:[#allocation2 + $0x100] sm:$0xf] %vm1992_vm9, %v1865_v10  ;;  %2159 = vrot.lane.b32.xlu1 %v8316_v27, %s4582_s14  ;;  %2157 = vrot.lane.b32.xlu0 %v8317_v11, %s4582_s14  ;;  %v8319_v10 = vld [vmem:[#allocation80_spill] sm:$0xff]  ;;  %v4583_v11 = vmov 0   ;;  %v8336_v27 = vld [vmem:[#allocation109_spill] sm:$0xff] }
 0x1e5   :  { %3873 = vmatprep.subr.bf16.mxu0 %v4583_v11  ;;  %4452 = vmatprep.subr.bf16.mxu1 %v4583_v11 }
 0x1e6   :  { %v1867_v2 = vpop.permute.xlu1 %1866 }
 0x1e7   :  { %2026 = vst.msk [vmem:[#allocation2 + $0x108] sm:$0xf] %vm1992_vm9, %v1867_v2  ;;  %v1869_v38 = vpop.permute.xlu0 %1868 }
 0x1e8   :  { %2027 = vst.msk [vmem:[#allocation2 + $0x110] sm:$0xf] %vm1992_vm9, %v1869_v38  ;;  %2163 = vrot.lane.b32.xlu1 %v8318_v54, %s4582_s14  ;;  %2161 = vrot.lane.b32.xlu0 %v8319_v10, %s4582_s14  ;;  %v8325_v38 = vld [vmem:[#allocation93_spill] sm:$0xff]  ;;  %v8333_v10 = vld [vmem:[#allocation106_spill] sm:$0xff] }
 0x1ea   :  { %v1871_v44 = vpop.permute.xlu1 %1870 }
 0x1eb   :  { %2028 = vst.msk [vmem:[#allocation2 + $0x118] sm:$0xf] %vm1992_vm9, %v1871_v44  ;;  %v1873_v35 = vpop.permute.xlu0 %1872 }
 0x1ec   :  { %2029 = vst.msk [vmem:[#allocation2 + $0x120] sm:$0xf] %vm1992_vm9, %v1873_v35  ;;  %2167 = vrot.lane.b32.xlu1 %v6698_v56, %s4582_s14  ;;  %2165 = vrot.lane.b32.xlu0 %v6702_v25, %s4582_s14  ;;  %v8331_v25 = vld [vmem:[#allocation104_spill] sm:$0xff] }
 0x1ee   :  { %v1875_v39 = vpop.permute.xlu1 %1874 }
 0x1ef   :  { %2030 = vst.msk [vmem:[#allocation2 + $0x128] sm:$0xf] %vm1992_vm9, %v1875_v39  ;;  %v1877_v22 = vpop.permute.xlu0 %1876  ;;  %v8326_v39 = vld [vmem:[#allocation95_spill] sm:$0xff] }
 0x1f0   :  { %2031 = vst.msk [vmem:[#allocation2 + $0x130] sm:$0xf] %vm1992_vm9, %v1877_v22  ;;  %2171 = vrot.lane.b32.xlu1 %v8323_v50, %s4582_s14  ;;  %2169 = vrot.lane.b32.xlu0 %v8324_v42, %s4582_s14  ;;  %v8327_v22 = vld [vmem:[#allocation98_spill] sm:$0xff]  ;;  %v8328_v50 = vld [vmem:[#allocation100_spill] sm:$0xff] }
 0x1f2   :  { %v1879_v44 = vpop.permute.xlu1 %1878 }
 0x1f3   :  { %2032 = vst.msk [vmem:[#allocation2 + $0x138] sm:$0xf] %vm1992_vm9, %v1879_v44  ;;  %v1881_v58 = vpop.permute.xlu0 %1880 }
 0x1f4   :  { %2033 = vst.msk [vmem:[#allocation2 + $0x140] sm:$0xf] %vm1992_vm9, %v1881_v58  ;;  %2175 = vrot.lane.b32.xlu1 %v8325_v38, %s4582_s14  ;;  %2173 = vrot.lane.b32.xlu0 %v8326_v39, %s4582_s14  ;;  %v8329_v58 = vld [vmem:[#allocation101_spill] sm:$0xff] }
 0x1f6   :  { %v1883_v30 = vpop.permute.xlu1 %1882 }
 0x1f7   :  { %2034 = vst.msk [vmem:[#allocation2 + $0x148] sm:$0xf] %vm1992_vm9, %v1883_v30  ;;  %v1885_v44 = vpop.permute.xlu0 %1884 }
 0x1f8   :  { %2035 = vst.msk [vmem:[#allocation2 + $0x150] sm:$0xf] %vm1992_vm9, %v1885_v44  ;;  %2179 = vrot.lane.b32.xlu1 %v8327_v22, %s4582_s14  ;;  %2177 = vrot.lane.b32.xlu0 %v8328_v50, %s4582_s14 }
 0x1fa   :  { %v1887_v35 = vpop.permute.xlu1 %1886 }
 0x1fb   :  { %2036 = vst.msk [vmem:[#allocation2 + $0x158] sm:$0xf] %vm1992_vm9, %v1887_v35  ;;  %v1889_v30 = vpop.permute.xlu0 %1888  ;;  %v8330_v35 = vld [vmem:[#allocation103_spill] sm:$0xff] }
 0x1fc   :  { %2037 = vst.msk [vmem:[#allocation2 + $0x160] sm:$0xf] %vm1992_vm9, %v1889_v30  ;;  %2183 = vrot.lane.b32.xlu1 %v8329_v58, %s4582_s14  ;;  %2181 = vrot.lane.b32.xlu0 %v8330_v35, %s4582_s14 }
 0x1fe   :  { %v1891_v42 = vpop.permute.xlu1 %1890 }
 0x1ff   :  { %2038 = vst.msk [vmem:[#allocation2 + $0x168] sm:$0xf] %vm1992_vm9, %v1891_v42  ;;  %v1893_v44 = vpop.permute.xlu0 %1892  ;;  %v8332_v42 = vld [vmem:[#allocation105_spill] sm:$0xff] }
 0x200   :  { %2039 = vst.msk [vmem:[#allocation2 + $0x170] sm:$0xf] %vm1992_vm9, %v1893_v44  ;;  %2187 = vrot.lane.b32.xlu1 %v8331_v25, %s4582_s14  ;;  %2185 = vrot.lane.b32.xlu0 %v8332_v42, %s4582_s14  ;;  %v4478_v44 = vld [vmem:[%s7732_s1 + $0x38] sm:$0xff]  }
 0x201   :  { %3874 = vmatpush1.bf16.msra.mxu0 %v4478_v44  ;;  %4461 = vmatpush1.bf16.msra.mxu1 %v4478_v44 }
 0x202   :  { %v1895_v2 = vpop.permute.xlu1 %1894  ;;  %3875 = vmatprep.subr.bf16.mxu0 %v4583_v11  ;;  %4453 = vmatprep.subr.bf16.mxu1 %v4583_v11 }
 0x203   :  { %2040 = vst.msk [vmem:[#allocation2 + $0x178] sm:$0xf] %vm1992_vm9, %v1895_v2  ;;  %v1897_v30 = vpop.permute.xlu0 %1896  ;;  %v8334_v2 = vld [vmem:[#allocation107_spill] sm:$0xff] }
 0x204   :  { %2041 = vst.msk [vmem:[#allocation2 + $0x180] sm:$0xf] %vm1992_vm9, %v1897_v30  ;;  %2191 = vrot.lane.b32.xlu1 %v8333_v10, %s4582_s14  ;;  %2189 = vrot.lane.b32.xlu0 %v8334_v2, %s4582_s14  ;;  %v8335_v30 = vld [vmem:[#allocation108_spill] sm:$0xff] }
 0x205   :  { %3876 = vmatpush1.bf16.msra.mxu0 %v4479_v61  ;;  %4462 = vmatpush1.bf16.msra.mxu1 %v4479_v61 }
 0x206   :  { %v1899_v56 = vpop.permute.xlu1 %1898  ;;  %3877 = vmatprep.subr.bf16.mxu0 %v4583_v11  ;;  %4454 = vmatprep.subr.bf16.mxu1 %v4583_v11 }
 0x207   :  { %2042 = vst.msk [vmem:[#allocation2 + $0x188] sm:$0xf] %vm1992_vm9, %v1899_v56  ;;  %v1901_v56 = vpop.permute.xlu0 %1900 }
 0x208   :  { %2043 = vst.msk [vmem:[#allocation2 + $0x190] sm:$0xf] %vm1992_vm9, %v1901_v56  ;;  %2195 = vrot.lane.b32.xlu1 %v8335_v30, %s4582_s14  ;;  %2193 = vrot.lane.b32.xlu0 %v8336_v27, %s4582_s14  ;;  %v8337_v56 = vld [vmem:[#allocation111_spill] sm:$0xff]  ;;  %v8338_v30 = vld [vmem:[#allocation112_spill] sm:$0xff] }
 0x209   :  { %v4480_v27 = vld [vmem:[%s7732_s1 + $0x28] sm:$0xff]  }
 0x20a   :  { %v1903_v54 = vpop.permute.xlu1 %1902  ;;  %3878 = vmatpush1.bf16.msra.mxu0 %v4480_v27  ;;  %4463 = vmatpush1.bf16.msra.mxu1 %v4480_v27 }
 0x20b   :  { %2044 = vst.msk [vmem:[#allocation2 + $0x198] sm:$0xf] %vm1992_vm9, %v1903_v54  ;;  %v1905_v44 = vpop.permute.xlu0 %1904  ;;  %3879 = vmatprep.subr.bf16.mxu0 %v4583_v11  ;;  %4455 = vmatprep.subr.bf16.mxu1 %v4583_v11 }
 0x20c   :  { %2045 = vst.msk [vmem:[#allocation2 + $0x1a0] sm:$0xf] %vm1992_vm9, %v1905_v44  ;;  %2199 = vrot.lane.b32.xlu1 %v8337_v56, %s4582_s14  ;;  %2197 = vrot.lane.b32.xlu0 %v8338_v30, %s4582_s14  ;;  %v8339_v44 = vld [vmem:[#allocation113_spill] sm:$0xff]  ;;  %v8340_v56 = vld [vmem:[#allocation115_spill] sm:$0xff] }
 0x20d   :  { %v4481_v30 = vld [vmem:[%s7732_s1 + $0x20] sm:$0xff]  }
 0x20e   :  { %v1907_v54 = vpop.permute.xlu1 %1906  ;;  %3880 = vmatpush1.bf16.msra.mxu0 %v4481_v30  ;;  %4464 = vmatpush1.bf16.msra.mxu1 %v4481_v30 }
 0x20f   :  { %2046 = vst.msk [vmem:[#allocation2 + $0x1a8] sm:$0xf] %vm1992_vm9, %v1907_v54  ;;  %v1909_v61 = vpop.permute.xlu0 %1908  ;;  %3881 = vmatprep.subr.bf16.mxu0 %v4583_v11  ;;  %4456 = vmatprep.subr.bf16.mxu1 %v4583_v11 }
 0x210   :  { %2047 = vst.msk [vmem:[#allocation2 + $0x1b0] sm:$0xf] %vm1992_vm9, %v1909_v61  ;;  %2203 = vrot.lane.b32.xlu1 %v8339_v44, %s4582_s14  ;;  %2201 = vrot.lane.b32.xlu0 %v8340_v56, %s4582_s14  ;;  %v8341_v61 = vld [vmem:[#allocation116_spill] sm:$0xff]  ;;  %v8342_v44 = vld [vmem:[#allocation117_spill] sm:$0xff]  ;;  %v4482_v56 = vld [vmem:[%s7732_s1 + $0x18] sm:$0xff]  }
 0x212   :  { %v1911_v54 = vpop.permute.xlu1 %1910  ;;  %3882 = vmatpush1.bf16.msra.mxu0 %v4482_v56  ;;  %4465 = vmatpush1.bf16.msra.mxu1 %v4482_v56 }
 0x213   :  { %2048 = vst.msk [vmem:[#allocation2 + $0x1b8] sm:$0xf] %vm1992_vm9, %v1911_v54  ;;  %v1913_v27 = vpop.permute.xlu0 %1912  ;;  %3883 = vmatprep.subr.bf16.mxu0 %v4583_v11  ;;  %4457 = vmatprep.subr.bf16.mxu1 %v4583_v11 }
 0x214   :  { %2049 = vst.msk [vmem:[#allocation2 + $0x1c0] sm:$0xf] %vm1992_vm9, %v1913_v27  ;;  %2207 = vrot.lane.b32.xlu1 %v8341_v61, %s4582_s14  ;;  %2205 = vrot.lane.b32.xlu0 %v8342_v44, %s4582_s14  ;;  %v8343_v27 = vld [vmem:[#allocation129_spill] sm:$0xff]  ;;  %v8344_v61 = vld [vmem:[#allocation119_spill] sm:$0xff] }
 0x215   :  { %v4483_v44 = vld [vmem:[%s7732_s1 + $0x10] sm:$0xff]  }
 0x216   :  { %v1915_v54 = vpop.permute.xlu1 %1914  ;;  %3884 = vmatpush1.bf16.msra.mxu0 %v4483_v44  ;;  %4466 = vmatpush1.bf16.msra.mxu1 %v4483_v44 }
 0x217   :  { %2050 = vst.msk [vmem:[#allocation2 + $0x1c8] sm:$0xf] %vm1992_vm9, %v1915_v54  ;;  %v1917_v30 = vpop.permute.xlu0 %1916  ;;  %3885 = vmatprep.subr.bf16.mxu0 %v4583_v11  ;;  %4458 = vmatprep.subr.bf16.mxu1 %v4583_v11 }
 0x218   :  { %2051 = vst.msk [vmem:[#allocation2 + $0x1d0] sm:$0xf] %vm1992_vm9, %v1917_v30  ;;  %2378 = vrot.lane.b32.xlu1 %v8343_v27, %s4584_s27  ;;  %2209 = vrot.lane.b32.xlu0 %v8344_v61, %s4582_s14  ;;  %v8345_v30 = vld [vmem:[#allocation131_spill] sm:$0xff]  ;;  %v4484_v27 = vld [vmem:[%s7732_s1 + $0x8] sm:$0xff]  }
 0x21a   :  { %v1919_v54 = vpop.permute.xlu1 %1918  ;;  %3886 = vmatpush1.bf16.msra.mxu0 %v4484_v27  ;;  %4467 = vmatpush1.bf16.msra.mxu1 %v4484_v27 }
 0x21b   :  { %2052 = vst.msk [vmem:[#allocation2 + $0x1d8] sm:$0xf] %vm1992_vm9, %v1919_v54  ;;  %v1921_v56 = vpop.permute.xlu0 %1920  ;;  %3887 = vmatprep.subr.bf16.mxu0 %v4583_v11  ;;  %4459 = vmatprep.subr.bf16.mxu1 %v4583_v11 }
 0x21c   :  { %2053 = vst.msk [vmem:[#allocation2 + $0x1e0] sm:$0xf] %vm1992_vm9, %v1921_v56  ;;  %2442 = vrot.lane.b32.xlu1 %v6301_v59, %s4584_s27  ;;  %2380 = vrot.lane.b32.xlu0 %v8345_v30, %s4584_s27  ;;  %v4485_v59 = vld [vmem:[%s7732_s1] sm:$0xff]  }
 0x21e   :  { %v1923_v54 = vpop.permute.xlu1 %1922  ;;  %3888 = vmatpush1.bf16.msra.mxu0 %v4485_v59  ;;  %4468 = vmatpush1.bf16.msra.mxu1 %v4485_v59 }
 0x21f   :  { %2054 = vst.msk [vmem:[#allocation2 + $0x1e8] sm:$0xf] %vm1992_vm9, %v1923_v54  ;;  %v1925_v44 = vpop.permute.xlu0 %1924  ;;  %3903 = vmatprep.subr.bf16.mxu0 %v4583_v11  ;;  %4460 = vmatprep.subr.bf16.mxu1 %v4583_v11 }
 0x220   :  { %2055 = vst.msk [vmem:[#allocation2 + $0x1f0] sm:$0xf] %vm1992_vm9, %v1925_v44  ;;  %2639 = vrot.lane.b32.xlu1 %v4669_v31, %s4585_s11  ;;  %2444 = vrot.lane.b32.xlu0 %v6297_v62, %s4584_s27  ;;  %v4486_v31 = vld [vmem:[%s7732_s1 + $0x40] sm:$0xff]  }
 0x222   :  { %v1927_v54 = vpop.permute.xlu1 %1926  ;;  %3904 = vmatpush2.bf16.msra.mxu0 %v4486_v31  ;;  %4469 = vmatpush2.bf16.msra.mxu1 %v4486_v31 }
 0x223   :  { %2056 = vst.msk [vmem:[#allocation2 + $0x1f8] sm:$0xf] %vm1992_vm9, %v1927_v54  ;;  %v2106_v30 = vpop.permute.xlu0 %2105 }
 0x224   :  { %2298 = vst.msk [vmem:[#allocation2] sm:$0xf] %vm2297_vm10, %v2106_v30  ;;  %2703 = vrot.lane.b32.xlu1 %v8271_v51, %s4585_s11  ;;  %2641 = vrot.lane.b32.xlu0 %v4651_v20, %s4585_s11 }
 0x226   :  { %v2108_v56 = vpop.permute.xlu1 %2107 }
 0x227   :  { %2299 = vst.msk [vmem:[#allocation2 + $0x8] sm:$0xf] %vm2297_vm10, %v2108_v56  ;;  %v2110_v27 = vpop.permute.xlu0 %2109 }
 0x228   :  { %2300 = vst.msk [vmem:[#allocation2 + $0x10] sm:$0xf] %vm2297_vm10, %v2110_v27  ;;  %2944 = vrot.lane.b32.xlu1 %v8293_v6, %s4586_s9  ;;  %2705 = vrot.lane.b32.xlu0 %v8270_v21, %s4585_s11  ;;  %v8346_v21 = vld [vmem:[#allocation132_spill] sm:$0xff] }
 0x22a   :  { %v2112_v62 = vpop.permute.xlu1 %2111 }
 0x22b   :  { %2301 = vst.msk [vmem:[#allocation2 + $0x18] sm:$0xf] %vm2297_vm10, %v2112_v62  ;;  %v2114_v51 = vpop.permute.xlu0 %2113 }
 0x22c   :  { %2302 = vst.msk [vmem:[#allocation2 + $0x20] sm:$0xf] %vm2297_vm10, %v2114_v51  ;;  %3008 = vrot.lane.b32.xlu1 %v8326_v39, %s4586_s9  ;;  %2946 = vrot.lane.b32.xlu0 %v8292_v3, %s4586_s9  ;;  %v8347_v3 = vld [vmem:[#allocation133_spill] sm:$0xff] }
 0x22e   :  { %v2116_v20 = vpop.permute.xlu1 %2115 }
 0x22f   :  { %2303 = vst.msk [vmem:[#allocation2 + $0x28] sm:$0xf] %vm2297_vm10, %v2116_v20  ;;  %v2118_v54 = vpop.permute.xlu0 %2117 }
 0x230   :  { %2304 = vst.msk [vmem:[#allocation2 + $0x30] sm:$0xf] %vm2297_vm10, %v2118_v54  ;;  %2382 = vrot.lane.b32.xlu1 %v8346_v21, %s4584_s27  ;;  %3010 = vrot.lane.b32.xlu0 %v8325_v38, %s4586_s9 }
 0x232   :  { %v2120_v11 = vpop.permute.xlu1 %2119 }
 0x233   :  { %2305 = vst.msk [vmem:[#allocation2 + $0x38] sm:$0xf] %vm2297_vm10, %v2120_v11  ;;  %v2122_v44 = vpop.permute.xlu0 %2121 }
 0x234   :  { %2306 = vst.msk [vmem:[#allocation2 + $0x40] sm:$0xf] %vm2297_vm10, %v2122_v44  ;;  %2446 = vrot.lane.b32.xlu1 %v6016_v63, %s4584_s27  ;;  %2384 = vrot.lane.b32.xlu0 %v8347_v3, %s4584_s27 }
 0x236   :  { %v2124_v6 = vpop.permute.xlu1 %2123 }
 0x237   :  { %2307 = vst.msk [vmem:[#allocation2 + $0x48] sm:$0xf] %vm2297_vm10, %v2124_v6  ;;  %v2126_v59 = vpop.permute.xlu0 %2125 }
 0x238   :  { %2308 = vst.msk [vmem:[#allocation2 + $0x50] sm:$0xf] %vm2297_vm10, %v2126_v59  ;;  %2643 = vrot.lane.b32.xlu1 %v8245_v1, %s4585_s11  ;;  %2448 = vrot.lane.b32.xlu0 %v6022_v12, %s4584_s27 }
 0x23a   :  { %v2128_v39 = vpop.permute.xlu1 %2127 }
 0x23b   :  { %2309 = vst.msk [vmem:[#allocation2 + $0x58] sm:$0xf] %vm2297_vm10, %v2128_v39  ;;  %v2130_v56 = vpop.permute.xlu0 %2129 }
 0x23c   :  { %2310 = vst.msk [vmem:[#allocation2 + $0x60] sm:$0xf] %vm2297_vm10, %v2130_v56  ;;  %2707 = vrot.lane.b32.xlu1 %v8205_v52, %s4585_s11  ;;  %2645 = vrot.lane.b32.xlu0 %v8244_v0, %s4585_s11 }
 0x23e   :  { %v2132_v38 = vpop.permute.xlu1 %2131 }
 0x23f   :  { %2311 = vst.msk [vmem:[#allocation2 + $0x68] sm:$0xf] %vm2297_vm10, %v2132_v38  ;;  %v2134_v30 = vpop.permute.xlu0 %2133 }
 0x240   :  { %2312 = vst.msk [vmem:[#allocation2 + $0x70] sm:$0xf] %vm2297_vm10, %v2134_v30  ;;  %2948 = vrot.lane.b32.xlu1 %v8295_v37, %s4586_s9  ;;  %2709 = vrot.lane.b32.xlu0 %v8272_v13, %s4585_s11  ;;  %v8348_v13 = vld [vmem:[#allocation134_spill] sm:$0xff] }
 0x242   :  { %v2136_v63 = vpop.permute.xlu1 %2135 }
 0x243   :  { %2313 = vst.msk [vmem:[#allocation2 + $0x78] sm:$0xf] %vm2297_vm10, %v2136_v63  ;;  %v2138_v1 = vpop.permute.xlu0 %2137 }
 0x244   :  { %2314 = vst.msk [vmem:[#allocation2 + $0x80] sm:$0xf] %vm2297_vm10, %v2138_v1  ;;  %3012 = vrot.lane.b32.xlu1 %v8328_v50, %s4586_s9  ;;  %2950 = vrot.lane.b32.xlu0 %v8294_v7, %s4586_s9  ;;  %v8349_v7 = vld [vmem:[#allocation135_spill] sm:$0xff] }
 0x245   :  { %v4489_v1 = vld [vmem:[#allocation2 + $0x4] ss:$8 sps:$4 sm:$0xff]  }
 0x246   :  { %v2140_v12 = vpop.permute.xlu1 %2139  ;;  %4420 = vmatprep.mubr.msk.bf16.mxu0 %vm3776_vm14, %v4489_v1 }
 0x247   :  { %2315 = vst.msk [vmem:[#allocation2 + $0x88] sm:$0xf] %vm2297_vm10, %v2140_v12  ;;  %v2142_v0 = vpop.permute.xlu0 %2141 }
 0x248   :  { %2316 = vst.msk [vmem:[#allocation2 + $0x90] sm:$0xf] %vm2297_vm10, %v2142_v0  ;;  %2386 = vrot.lane.b32.xlu1 %v8348_v13, %s4584_s27  ;;  %3014 = vrot.lane.b32.xlu0 %v8327_v22, %s4586_s9 }
 0x24a   :  { %v2144_v52 = vpop.permute.xlu1 %2143 }
 0x24b   :  { %2317 = vst.msk [vmem:[#allocation2 + $0x98] sm:$0xf] %vm2297_vm10, %v2144_v52  ;;  %v2146_v31 = vpop.permute.xlu0 %2145  ;;  %v8359_v52 = vld [vmem:[#allocation108_spill] sm:$0xff] }
 0x24c   :  { %2318 = vst.msk [vmem:[#allocation2 + $0xa0] sm:$0xf] %vm2297_vm10, %v2146_v31  ;;  %2450 = vrot.lane.b32.xlu1 %v6028_v14, %s4584_s27  ;;  %2388 = vrot.lane.b32.xlu0 %v8349_v7, %s4584_s27  ;;  %v4492_v31 = vld [vmem:[#allocation2 + $0x104] ss:$8 sps:$4 sm:$0xff]  }
 0x24d   :  { %v8360_v7 = vld [vmem:[#allocation79_spill] sm:$0xff]  ;;  %4436 = vmatprep.mubr.msk.bf16.mxu1 %vm3776_vm14, %v4492_v31 }
 0x24e   :  { %v2148_v37 = vpop.permute.xlu1 %2147  ;;  %v4499_v31 = vld [vmem:[#allocation2 + $0x124] ss:$8 sps:$4 sm:$0xff]  }
 0x24f   :  { %2319 = vst.msk [vmem:[#allocation2 + $0xa8] sm:$0xf] %vm2297_vm10, %v2148_v37  ;;  %v2150_v62 = vpop.permute.xlu0 %2149 }
 0x250   :  { %2320 = vst.msk [vmem:[#allocation2 + $0xb0] sm:$0xf] %vm2297_vm10, %v2150_v62  ;;  %2647 = vrot.lane.b32.xlu1 %v8247_v34, %s4585_s11  ;;  %2452 = vrot.lane.b32.xlu0 %v6036_v53, %s4584_s27 }
 0x252   :  { %v2152_v50 = vpop.permute.xlu1 %2151 }
 0x253   :  { %2321 = vst.msk [vmem:[#allocation2 + $0xb8] sm:$0xf] %vm2297_vm10, %v2152_v50  ;;  %v2154_v27 = vpop.permute.xlu0 %2153  ;;  %v8361_v50 = vld [vmem:[#allocation143_spill] sm:$0xff] }
 0x254   :  { %2322 = vst.msk [vmem:[#allocation2 + $0xc0] sm:$0xf] %vm2297_vm10, %v2154_v27  ;;  %2711 = vrot.lane.b32.xlu1 %v8274_v36, %s4585_s11  ;;  %2649 = vrot.lane.b32.xlu0 %v8246_v41, %s4585_s11  ;;  %v8362_v27 = vld [vmem:[#allocation21_spill] sm:$0xff] }
 0x256   :  { %v2156_v22 = vpop.permute.xlu1 %2155 }
 0x257   :  { %2323 = vst.msk [vmem:[#allocation2 + $0xc8] sm:$0xf] %vm2297_vm10, %v2156_v22  ;;  %v2158_v20 = vpop.permute.xlu0 %2157 }
 0x258   :  { %2324 = vst.msk [vmem:[#allocation2 + $0xd0] sm:$0xf] %vm2297_vm10, %v2158_v20  ;;  %2952 = vrot.lane.b32.xlu1 %v8297_v43, %s4586_s9  ;;  %2713 = vrot.lane.b32.xlu0 %v8273_v28, %s4585_s11  ;;  %v8350_v28 = vld [vmem:[#allocation136_spill] sm:$0xff] }
 0x25a   :  { %v2160_v14 = vpop.permute.xlu1 %2159 }
 0x25b   :  { %2325 = vst.msk [vmem:[#allocation2 + $0xd8] sm:$0xf] %vm2297_vm10, %v2160_v14  ;;  %v2162_v34 = vpop.permute.xlu0 %2161  ;;  %v8363_v14 = vld [vmem:[#allocation82_spill] sm:$0xff] }
 0x25c   :  { %2326 = vst.msk [vmem:[#allocation2 + $0xe0] sm:$0xf] %vm2297_vm10, %v2162_v34  ;;  %3016 = vrot.lane.b32.xlu1 %v8330_v35, %s4586_s9  ;;  %2954 = vrot.lane.b32.xlu0 %v8296_v9, %s4586_s9  ;;  %v8351_v9 = vld [vmem:[#allocation137_spill] sm:$0xff] }
 0x25d   :  { %v8364_v34 = vld [vmem:[#allocation73_spill] sm:$0xff] }
 0x25e   :  { %v2164_v53 = vpop.permute.xlu1 %2163 }
 0x25f   :  { %2327 = vst.msk [vmem:[#allocation2 + $0xe8] sm:$0xf] %vm2297_vm10, %v2164_v53  ;;  %v2166_v36 = vpop.permute.xlu0 %2165 }
 0x260   :  { %2328 = vst.msk [vmem:[#allocation2 + $0xf0] sm:$0xf] %vm2297_vm10, %v2166_v36  ;;  %2390 = vrot.lane.b32.xlu1 %v8350_v28, %s4584_s27  ;;  %3018 = vrot.lane.b32.xlu0 %v8329_v58, %s4586_s9 }
 0x262   :  { %v2168_v41 = vpop.permute.xlu1 %2167 }
 0x263   :  { %2329 = vst.msk [vmem:[#allocation2 + $0xf8] sm:$0xf] %vm2297_vm10, %v2168_v41  ;;  %v2170_v51 = vpop.permute.xlu0 %2169  ;;  %v8365_v41 = vld [vmem:[#allocation18_spill] sm:$0xff] }
 0x264   :  { %2330 = vst.msk [vmem:[#allocation2 + $0x100] sm:$0xf] %vm2297_vm10, %v2170_v51  ;;  %2454 = vrot.lane.b32.xlu1 %v6042_v47, %s4584_s27  ;;  %2392 = vrot.lane.b32.xlu0 %v8351_v9, %s4584_s27  ;;  %v8367_v51 = vld [vmem:[#allocation71_spill] sm:$0xff] }
 0x266   :  { %v2172_v43 = vpop.permute.xlu1 %2171 }
 0x267   :  { %2331 = vst.msk [vmem:[#allocation2 + $0x108] sm:$0xf] %vm2297_vm10, %v2172_v43  ;;  %v2174_v11 = vpop.permute.xlu0 %2173  ;;  %v8366_v43 = vld [vmem:[#allocation45_spill] sm:$0xff] }
 0x268   :  { %2332 = vst.msk [vmem:[#allocation2 + $0x110] sm:$0xf] %vm2297_vm10, %v2174_v11  ;;  %2651 = vrot.lane.b32.xlu1 %v8249_v19, %s4585_s11  ;;  %2456 = vrot.lane.b32.xlu0 %v6053_v32, %s4584_s27  ;;  %v8368_v11 = vld [vmem:[#allocation112_spill] sm:$0xff] }
 0x26a   :  { %v2176_v35 = vpop.permute.xlu1 %2175 }
 0x26b   :  { %2333 = vst.msk [vmem:[#allocation2 + $0x118] sm:$0xf] %vm2297_vm10, %v2176_v35  ;;  %v2178_v54 = vpop.permute.xlu0 %2177 }
 0x26c   :  { %2334 = vst.msk [vmem:[#allocation2 + $0x120] sm:$0xf] %vm2297_vm10, %v2178_v54  ;;  %2715 = vrot.lane.b32.xlu1 %v8276_v17, %s4585_s11  ;;  %2653 = vrot.lane.b32.xlu0 %v8248_v8, %s4585_s11 }
 0x26e   :  { %v2180_v58 = vpop.permute.xlu1 %2179 }
 0x26f   :  { %2335 = vst.msk [vmem:[#allocation2 + $0x128] sm:$0xf] %vm2297_vm10, %v2180_v58  ;;  %v2182_v21 = vpop.permute.xlu0 %2181  ;;  %v8369_v58 = vld [vmem:[#allocation43_spill] sm:$0xff] }
 0x270   :  { %2336 = vst.msk [vmem:[#allocation2 + $0x130] sm:$0xf] %vm2297_vm10, %v2182_v21  ;;  %2956 = vrot.lane.b32.xlu1 %v8299_v46, %s4586_s9  ;;  %2717 = vrot.lane.b32.xlu0 %v8275_v60, %s4585_s11  ;;  %v8352_v60 = vld [vmem:[#allocation138_spill] sm:$0xff] }
 0x272   :  { %v2184_v47 = vpop.permute.xlu1 %2183 }
 0x273   :  { %2337 = vst.msk [vmem:[#allocation2 + $0x138] sm:$0xf] %vm2297_vm10, %v2184_v47  ;;  %v2186_v19 = vpop.permute.xlu0 %2185 }
 0x274   :  { %2338 = vst.msk [vmem:[#allocation2 + $0x140] sm:$0xf] %vm2297_vm10, %v2186_v19  ;;  %3020 = vrot.lane.b32.xlu1 %v8332_v42, %s4586_s9  ;;  %2958 = vrot.lane.b32.xlu0 %v8298_v33, %s4586_s9  ;;  %v8353_v33 = vld [vmem:[#allocation139_spill] sm:$0xff]  ;;  %v4493_v19 = vld [vmem:[#allocation2 + $0x14] ss:$8 sps:$4 sm:$0xff]  }
 0x276   :  { %v2188_v32 = vpop.permute.xlu1 %2187 }
 0x277   :  { %2339 = vst.msk [vmem:[#allocation2 + $0x148] sm:$0xf] %vm2297_vm10, %v2188_v32  ;;  %v2190_v17 = vpop.permute.xlu0 %2189 }
 0x278   :  { %2340 = vst.msk [vmem:[#allocation2 + $0x150] sm:$0xf] %vm2297_vm10, %v2190_v17  ;;  %2394 = vrot.lane.b32.xlu1 %v8352_v60, %s4584_s27  ;;  %3022 = vrot.lane.b32.xlu0 %v8331_v25, %s4586_s9  ;;  %v8371_v60 = vld [vmem:[#allocation111_spill] sm:$0xff] }
 0x27a   :  { %v2192_v8 = vpop.permute.xlu1 %2191 }
 0x27b   :  { %2341 = vst.msk [vmem:[#allocation2 + $0x158] sm:$0xf] %vm2297_vm10, %v2192_v8  ;;  %v2194_v6 = vpop.permute.xlu0 %2193  ;;  %v8370_v8 = vld [vmem:[#allocation144_spill] sm:$0xff] }
 0x27c   :  { %2342 = vst.msk [vmem:[#allocation2 + $0x160] sm:$0xf] %vm2297_vm10, %v2194_v6  ;;  %2458 = vrot.lane.b32.xlu1 %v6065_v26, %s4584_s27  ;;  %2396 = vrot.lane.b32.xlu0 %v8353_v33, %s4584_s27 }
 0x27e   :  { %v2196_v46 = vpop.permute.xlu1 %2195 }
 0x27f   :  { %2343 = vst.msk [vmem:[#allocation2 + $0x168] sm:$0xf] %vm2297_vm10, %v2196_v46  ;;  %v2198_v44 = vpop.permute.xlu0 %2197 }
 0x280   :  { %2344 = vst.msk [vmem:[#allocation2 + $0x170] sm:$0xf] %vm2297_vm10, %v2198_v44  ;;  %2655 = vrot.lane.b32.xlu1 %v8251_v29, %s4585_s11  ;;  %2460 = vrot.lane.b32.xlu0 %v6072_v4, %s4584_s27  ;;  %v4495_v44 = vld [vmem:[#allocation2 + $0x114] ss:$8 sps:$4 sm:$0xff]  }
 0x282   :  { %v2200_v42 = vpop.permute.xlu1 %2199 }
 0x283   :  { %2345 = vst.msk [vmem:[#allocation2 + $0x178] sm:$0xf] %vm2297_vm10, %v2200_v42  ;;  %v2202_v3 = vpop.permute.xlu0 %2201 }
 0x284   :  { %2346 = vst.msk [vmem:[#allocation2 + $0x180] sm:$0xf] %vm2297_vm10, %v2202_v3  ;;  %2719 = vrot.lane.b32.xlu1 %v5194_v55, %s4585_s11  ;;  %2657 = vrot.lane.b32.xlu0 %v8250_v23, %s4585_s11 }
 0x286   :  { %v2204_v25 = vpop.permute.xlu1 %2203 }
 0x287   :  { %2347 = vst.msk [vmem:[#allocation2 + $0x188] sm:$0xf] %vm2297_vm10, %v2204_v25  ;;  %v2206_v39 = vpop.permute.xlu0 %2205  ;;  %v8372_v25 = vld [vmem:[#allocation58_spill] sm:$0xff] }
 0x288   :  { %2348 = vst.msk [vmem:[#allocation2 + $0x190] sm:$0xf] %vm2297_vm10, %v2206_v39  ;;  %2960 = vrot.lane.b32.xlu1 %v8301_v57, %s4586_s9  ;;  %2721 = vrot.lane.b32.xlu0 %v8277_v48, %s4585_s11  ;;  %v8354_v48 = vld [vmem:[#allocation140_spill] sm:$0xff] }
 0x28a   :  { %v2208_v26 = vpop.permute.xlu1 %2207 }
 0x28b   :  { %2349 = vst.msk [vmem:[#allocation2 + $0x198] sm:$0xf] %vm2297_vm10, %v2208_v26  ;;  %v2210_v55 = vpop.permute.xlu0 %2209  ;;  %v8373_v26 = vld [vmem:[#allocation145_spill] sm:$0xff] }
 0x28c   :  { %2350 = vst.msk [vmem:[#allocation2 + $0x1a0] sm:$0xf] %vm2297_vm10, %v2210_v55  ;;  %3024 = vrot.lane.b32.xlu1 %v8334_v2, %s4586_s9  ;;  %2962 = vrot.lane.b32.xlu0 %v8300_v40, %s4586_s9  ;;  %v8355_v40 = vld [vmem:[#allocation141_spill] sm:$0xff]  ;;  %v8374_v55 = vld [vmem:[#allocation24_spill] sm:$0xff] }
 0x28e   :  { %v2379_v4 = vpop.permute.xlu1 %2378 }
 0x28f   :  { %2571 = vst.msk [vmem:[#allocation2] sm:$0xf] %vm2570_vm11, %v2379_v4  ;;  %v2381_v29 = vpop.permute.xlu0 %2380 }
 0x290   :  { %2572 = vst.msk [vmem:[#allocation2 + $0x8] sm:$0xf] %vm2570_vm11, %v2381_v29  ;;  %2398 = vrot.lane.b32.xlu1 %v8354_v48, %s4584_s27  ;;  %3026 = vrot.lane.b32.xlu0 %v8333_v10, %s4586_s9 }
 0x292   :  { %v2443_v23 = vpop.permute.xlu1 %2442 }
 0x293   :  { %2603 = vst.msk [vmem:[#allocation2 + $0x100] sm:$0xf] %vm2570_vm11, %v2443_v23  ;;  %v2445_v2 = vpop.permute.xlu0 %2444  ;;  %v8375_v23 = vld [vmem:[#allocation89_spill] sm:$0xff] }
 0x294   :  { %2604 = vst.msk [vmem:[#allocation2 + $0x108] sm:$0xf] %vm2570_vm11, %v2445_v2  ;;  %2462 = vrot.lane.b32.xlu1 %v6083_v45, %s4584_s27  ;;  %2400 = vrot.lane.b32.xlu0 %v8355_v40, %s4584_s27  ;;  %v8377_v2 = vld [vmem:[#allocation22_spill] sm:$0xff] }
 0x296   :  { %v2640_v57 = vpop.permute.xlu1 %2639 }
 0x297   :  { %2832 = vst.msk [vmem:[#allocation2] sm:$0xf] %vm2831_vm12, %v2640_v57  ;;  %v2642_v38 = vpop.permute.xlu0 %2641  ;;  %v8376_v57 = vld [vmem:[#allocation76_spill] sm:$0xff] }
 0x298   :  { %2833 = vst.msk [vmem:[#allocation2 + $0x8] sm:$0xf] %vm2831_vm12, %v2642_v38  ;;  %2659 = vrot.lane.b32.xlu1 %v8253_v15, %s4585_s11  ;;  %2464 = vrot.lane.b32.xlu0 %v6092_v49, %s4584_s27  ;;  %v8378_v38 = vld [vmem:[#allocation50_spill] sm:$0xff] }
 0x29a   :  { %v2704_v59 = vpop.permute.xlu1 %2703 }
 0x29b   :  { %2864 = vst.msk [vmem:[#allocation2 + $0x100] sm:$0xf] %vm2831_vm12, %v2704_v59  ;;  %v2706_v45 = vpop.permute.xlu0 %2705 }
 0x29c   :  { %2865 = vst.msk [vmem:[#allocation2 + $0x108] sm:$0xf] %vm2831_vm12, %v2706_v45  ;;  %2723 = vrot.lane.b32.xlu1 %v8213_v18, %s4585_s11  ;;  %2661 = vrot.lane.b32.xlu0 %v8252_v16, %s4585_s11  ;;  %v8356_v18 = vld [vmem:[#allocation109_spill] sm:$0xff]  ;;  %v8357_v16 = vld [vmem:[#allocation38_spill] sm:$0xff] }
 0x29e   :  { %v2945_v10 = vpop.permute.xlu1 %2944 }
 0x29f   :  { %3137 = vst.msk [vmem:[#allocation2] sm:$0xf] %vm3136_vm13, %v2945_v10  ;;  %v2947_v15 = vpop.permute.xlu0 %2946  ;;  %v8379_v10 = vld [vmem:[#allocation75_spill] sm:$0xff] }
 0x2a0   :  { %3138 = vst.msk [vmem:[#allocation2 + $0x8] sm:$0xf] %vm3136_vm13, %v2947_v15  ;;  %2964 = vrot.lane.b32.xlu1 %v8303_v5, %s4586_s9  ;;  %2725 = vrot.lane.b32.xlu0 %v8278_v24, %s4585_s11  ;;  %v8358_v24 = vld [vmem:[#allocation142_spill] sm:$0xff]  ;;  %v8380_v15 = vld [vmem:[#allocation115_spill] sm:$0xff] }
 0x2a2   :  { %v3009_v56 = vpop.permute.xlu1 %3008 }
 0x2a3   :  { %3169 = vst.msk [vmem:[#allocation2 + $0x100] sm:$0xf] %vm3136_vm13, %v3009_v56  ;;  %v3011_v63 = vpop.permute.xlu0 %3010 }
 0x2a4   :  { %3170 = vst.msk [vmem:[#allocation2 + $0x108] sm:$0xf] %vm3136_vm13, %v3011_v63  ;;  %3028 = vrot.lane.b32.xlu1 %v8356_v18, %s4586_s9  ;;  %2966 = vrot.lane.b32.xlu0 %v8357_v16, %s4586_s9 }
 0x2a6   :  { %v2383_v49 = vpop.permute.xlu1 %2382 }
 0x2a7   :  { %2573 = vst.msk [vmem:[#allocation2 + $0x10] sm:$0xf] %vm2570_vm11, %v2383_v49  ;;  %v2385_v5 = vpop.permute.xlu0 %2384  ;;  %v4487_v12 = vld [vmem:[#allocation2] ss:$8 sps:$4 sm:$0xff]  }
 0x2a8   :  { %2574 = vst.msk [vmem:[#allocation2 + $0x18] sm:$0xf] %vm2570_vm11, %v2385_v5  ;;  %2402 = vrot.lane.b32.xlu1 %v8358_v24, %s4584_s27  ;;  %3030 = vrot.lane.b32.xlu0 %v8359_v52, %s4586_s9  ;;  %v8381_v49 = vld [vmem:[#allocation48_spill] sm:$0xff]  ;;  %v8383_v24 = vld [vmem:[#allocation113_spill] sm:$0xff] }
 0x2a9   :  { %3906 = vmatmul.mubr.bf16.vlgmr.msra.gmra.mxu0 %v4487_v12  ;;  %v4497_v5 = vld [vmem:[#allocation2 + $0x24] ss:$8 sps:$4 sm:$0xff]   ;;  %v8382_v12 = vld [vmem:[#allocation146_spill] sm:$0xff] }
 0x2aa   :  { %v2447_v30 = vpop.permute.xlu1 %2446  ;;  %4421 = vmatprep.mubr.msk.bf16.mxu0 %vm3776_vm14, %v4493_v19 }
 0x2ab   :  { %2605 = vst.msk [vmem:[#allocation2 + $0x110] sm:$0xf] %vm2570_vm11, %v2447_v30  ;;  %v2449_v13 = vpop.permute.xlu0 %2448  ;;  %v4490_v37 = vld [vmem:[#allocation2 + $0x100] ss:$8 sps:$4 sm:$0xff]  }
 0x2ac   :  { %2606 = vst.msk [vmem:[#allocation2 + $0x118] sm:$0xf] %vm2570_vm11, %v2449_v13  ;;  %2466 = vrot.lane.b32.xlu1 %v8360_v7, %s4584_s27  ;;  %2404 = vrot.lane.b32.xlu0 %v8361_v50, %s4584_s27  ;;  %v8384_v7 = vld [vmem:[#allocation94_spill] sm:$0xff] }
 0x2ad   :  { %4034 = vmatmul.mubr.bf16.vlgmr.msra.gmra.mxu1 %v4490_v37 }
 0x2ae   :  { %v2644_v0 = vpop.permute.xlu1 %2643  ;;  %4437 = vmatprep.mubr.msk.bf16.mxu1 %vm3776_vm14, %v4495_v44 }
 0x2af   :  { %2834 = vst.msk [vmem:[#allocation2 + $0x10] sm:$0xf] %vm2831_vm12, %v2644_v0  ;;  %v2646_v22 = vpop.permute.xlu0 %2645 }
 0x2b0   :  { %2835 = vst.msk [vmem:[#allocation2 + $0x18] sm:$0xf] %vm2831_vm12, %v2646_v22  ;;  %2663 = vrot.lane.b32.xlu1 %v8362_v27, %s4585_s11  ;;  %2468 = vrot.lane.b32.xlu0 %v8363_v14, %s4584_s27  ;;  %v8386_v14 = vld [vmem:[#allocation27_spill] sm:$0xff] }
 0x2b2   :  { %v2708_v62 = vpop.permute.xlu1 %2707 }
 0x2b3   :  { %2866 = vst.msk [vmem:[#allocation2 + $0x110] sm:$0xf] %vm2831_vm12, %v2708_v62  ;;  %v2710_v53 = vpop.permute.xlu0 %2709  ;;  %v8385_v62 = vld [vmem:[#allocation147_spill] sm:$0xff] }
 0x2b4   :  { %2867 = vst.msk [vmem:[#allocation2 + $0x118] sm:$0xf] %vm2831_vm12, %v2710_v53  ;;  %2727 = vrot.lane.b32.xlu1 %v8364_v34, %s4585_s11  ;;  %2665 = vrot.lane.b32.xlu0 %v8365_v41, %s4585_s11  ;;  %v8388_v41 = vld [vmem:[#allocation81_spill] sm:$0xff] }
 0x2b6   :  { %v2949_v20 = vpop.permute.xlu1 %2948 }
 0x2b7   :  { %3139 = vst.msk [vmem:[#allocation2 + $0x10] sm:$0xf] %vm3136_vm13, %v2949_v20  ;;  %v2951_v28 = vpop.permute.xlu0 %2950  ;;  %v8387_v20 = vld [vmem:[#allocation102_spill] sm:$0xff] }
 0x2b8   :  { %3140 = vst.msk [vmem:[#allocation2 + $0x18] sm:$0xf] %vm3136_vm13, %v2951_v28  ;;  %2968 = vrot.lane.b32.xlu1 %v8366_v43, %s4586_s9  ;;  %2729 = vrot.lane.b32.xlu0 %v8367_v51, %s4585_s11  ;;  %v8390_v51 = vld [vmem:[#allocation56_spill] sm:$0xff] }
 0x2ba   :  { %v3013_v36 = vpop.permute.xlu1 %3012 }
 0x2bb   :  { %3171 = vst.msk [vmem:[#allocation2 + $0x110] sm:$0xf] %vm3136_vm13, %v3013_v36  ;;  %v3015_v35 = vpop.permute.xlu0 %3014  ;;  %v8389_v36 = vld [vmem:[#allocation25_spill] sm:$0xff] }
 0x2bc   :  { %3172 = vst.msk [vmem:[#allocation2 + $0x118] sm:$0xf] %vm3136_vm13, %v3015_v35  ;;  %3032 = vrot.lane.b32.xlu1 %v8368_v11, %s4586_s9  ;;  %2970 = vrot.lane.b32.xlu0 %v8369_v58, %s4586_s9  ;;  %v8392_v58 = vld [vmem:[#allocation117_spill] sm:$0xff] }
 0x2be   :  { %v2387_v9 = vpop.permute.xlu1 %2386  ;;  %v3347_v21 = vld [vmem:[#allocation2 + $0x10] sm:$0xff] }
 0x2bf   :  { %2575 = vst.msk [vmem:[#allocation2 + $0x20] sm:$0xf] %vm2570_vm11, %v2387_v9  ;;  %v2389_v47 = vpop.permute.xlu0 %2388  ;;  %v3348_v32 = vld [vmem:[#allocation2 + $0x18] sm:$0xff] }
 0x2c0   :  { %2576 = vst.msk [vmem:[#allocation2 + $0x28] sm:$0xf] %vm2570_vm11, %v2389_v47  ;;  %2406 = vrot.lane.b32.xlu1 %v8370_v8, %s4584_s27  ;;  %v4349_v17 = vcombine.low %v3347_v21, %v3348_v32  ;;  %3034 = vrot.lane.b32.xlu0 %v8371_v60, %s4586_s9  ;;  %v8391_v9 = vld [vmem:[#allocation78_spill] sm:$0xff] }
 0x2c1   :  { %v4501_v8 = vld [vmem:[#allocation2 + $0x34] ss:$8 sps:$4 sm:$0xff]  }
 0x2c2   :  { %v2451_v54 = vpop.permute.xlu1 %2450  ;;  %3914 = vmatmul.mubr.bf16.gmra.mxu0 %v4349_v17  ;;  %v3379_v33 = vld [vmem:[#allocation2 + $0x110] sm:$0xff]  ;;  %v8394_v17 = vld [vmem:[#allocation148_spill] sm:$0xff] }
 0x2c3   :  { %2607 = vst.msk [vmem:[#allocation2 + $0x120] sm:$0xf] %vm2570_vm11, %v2451_v54  ;;  %v2453_v6 = vpop.permute.xlu0 %2452  ;;  %v3380_v42 = vld [vmem:[#allocation2 + $0x118] sm:$0xff]  ;;  %4422 = vmatprep.mubr.msk.bf16.mxu0 %vm3776_vm14, %v4497_v5  ;;  %v8393_v54 = vld [vmem:[#allocation53_spill] sm:$0xff]  ;;  %v4505_v5 = vld [vmem:[#allocation2 + $0x44] ss:$8 sps:$4 sm:$0xff]  }
 0x2c4   :  { %2608 = vst.msk [vmem:[#allocation2 + $0x128] sm:$0xf] %vm2570_vm11, %v2453_v6  ;;  %2470 = vrot.lane.b32.xlu1 %v8372_v25, %s4584_s27  ;;  %v4381_v3 = vcombine.low %v3379_v33, %v3380_v42  ;;  %2408 = vrot.lane.b32.xlu0 %v8373_v26, %s4584_s27  ;;  %v4503_v25 = vld [vmem:[#allocation2 + $0x134] ss:$8 sps:$4 sm:$0xff]  }
 0x2c6   :  { %v2648_v46 = vpop.permute.xlu1 %2647  ;;  %4042 = vmatmul.mubr.bf16.gmra.mxu1 %v4381_v3  ;;  %v8396_v3 = vld [vmem:[#allocation70_spill] sm:$0xff] }
 0x2c7   :  { %2836 = vst.msk [vmem:[#allocation2 + $0x20] sm:$0xf] %vm2831_vm12, %v2648_v46  ;;  %v2650_v4 = vpop.permute.xlu0 %2649  ;;  %4438 = vmatprep.mubr.msk.bf16.mxu1 %vm3776_vm14, %v4499_v31  ;;  %v8395_v46 = vld [vmem:[#allocation116_spill] sm:$0xff] }
 0x2c8   :  { %2837 = vst.msk [vmem:[#allocation2 + $0x28] sm:$0xf] %vm2831_vm12, %v2650_v4  ;;  %2667 = vrot.lane.b32.xlu1 %v8374_v55, %s4585_s11  ;;  %2472 = vrot.lane.b32.xlu0 %v8375_v23, %s4584_s27  ;;  %v8398_v23 = vld [vmem:[#allocation30_spill] sm:$0xff] }
 0x2ca   :  { %v2712_v39 = vpop.permute.xlu1 %2711 }
 0x2cb   :  { %2868 = vst.msk [vmem:[#allocation2 + $0x120] sm:$0xf] %vm2831_vm12, %v2712_v39  ;;  %v2714_v48 = vpop.permute.xlu0 %2713  ;;  %v8397_v39 = vld [vmem:[#allocation149_spill] sm:$0xff] }
 0x2cc   :  { %2869 = vst.msk [vmem:[#allocation2 + $0x128] sm:$0xf] %vm2831_vm12, %v2714_v48  ;;  %2731 = vrot.lane.b32.xlu1 %v8376_v57, %s4585_s11  ;;  %2669 = vrot.lane.b32.xlu0 %v8377_v2, %s4585_s11  ;;  %v8400_v2 = vld [vmem:[#allocation84_spill] sm:$0xff] }
 0x2ce   :  { %v2953_v29 = vpop.permute.xlu1 %2952 }
 0x2cf   :  { %3141 = vst.msk [vmem:[#allocation2 + $0x20] sm:$0xf] %vm3136_vm13, %v2953_v29  ;;  %v2955_v59 = vpop.permute.xlu0 %2954  ;;  %v8399_v29 = vld [vmem:[#allocation110_spill] sm:$0xff] }
 0x2d0   :  { %3142 = vst.msk [vmem:[#allocation2 + $0x28] sm:$0xf] %vm3136_vm13, %v2955_v59  ;;  %2972 = vrot.lane.b32.xlu1 %v8378_v38, %s4586_s9  ;;  %2733 = vrot.lane.b32.xlu0 %v8379_v10, %s4585_s11  ;;  %v8402_v10 = vld [vmem:[#allocation60_spill] sm:$0xff] }
 0x2d2   :  { %v3017_v40 = vpop.permute.xlu1 %3016 }
 0x2d3   :  { %3173 = vst.msk [vmem:[#allocation2 + $0x120] sm:$0xf] %vm3136_vm13, %v3017_v40  ;;  %v3019_v56 = vpop.permute.xlu0 %3018  ;;  %v8401_v40 = vld [vmem:[#allocation28_spill] sm:$0xff] }
 0x2d4   :  { %3174 = vst.msk [vmem:[#allocation2 + $0x128] sm:$0xf] %vm3136_vm13, %v3019_v56  ;;  %3036 = vrot.lane.b32.xlu1 %v8380_v15, %s4586_s9  ;;  %2974 = vrot.lane.b32.xlu0 %v8381_v49, %s4586_s9  ;;  %v8404_v49 = vld [vmem:[#allocation57_spill] sm:$0xff] }
 0x2d6   :  { %v2391_v45 = vpop.permute.xlu1 %2390  ;;  %v3349_v16 = vld [vmem:[#allocation2 + $0x20] sm:$0xff] }
 0x2d7   :  { %2577 = vst.msk [vmem:[#allocation2 + $0x30] sm:$0xf] %vm2570_vm11, %v2391_v45  ;;  %v2393_v18 = vpop.permute.xlu0 %2392  ;;  %v3350_v30 = vld [vmem:[#allocation2 + $0x28] sm:$0xff]  ;;  %v8403_v45 = vld [vmem:[#allocation83_spill] sm:$0xff] }
 0x2d8   :  { %2578 = vst.msk [vmem:[#allocation2 + $0x38] sm:$0xf] %vm2570_vm11, %v2393_v18  ;;  %2410 = vrot.lane.b32.xlu1 %v8382_v12, %s4584_s27  ;;  %v4351_v1 = vcombine.low %v3349_v16, %v3350_v30  ;;  %3038 = vrot.lane.b32.xlu0 %v8383_v24, %s4586_s9  ;;  %v8405_v12 = vld [vmem:[#allocation118_spill] sm:$0xff] }
 0x2da   :  { %v2455_v63 = vpop.permute.xlu1 %2454  ;;  %3922 = vmatmul.mubr.bf16.gmra.mxu0 %v4351_v1  ;;  %v3381_v13 = vld [vmem:[#allocation2 + $0x120] sm:$0xff] }
 0x2db   :  { %2609 = vst.msk [vmem:[#allocation2 + $0x130] sm:$0xf] %vm2570_vm11, %v2455_v63  ;;  %v2457_v0 = vpop.permute.xlu0 %2456  ;;  %v3382_v37 = vld [vmem:[#allocation2 + $0x128] sm:$0xff]  ;;  %4423 = vmatprep.mubr.msk.bf16.mxu0 %vm3776_vm14, %v4501_v8  ;;  %v7241_v8 = vld [vmem:[%s7731_s0 + $0x19c] sm:$0xf] }
 0x2dc   :  { %2610 = vst.msk [vmem:[#allocation2 + $0x138] sm:$0xf] %vm2570_vm11, %v2457_v0  ;;  %2474 = vrot.lane.b32.xlu1 %v8384_v7, %s4584_s27  ;;  %v4383_v50 = vcombine.low %v3381_v13, %v3382_v37  ;;  %2412 = vrot.lane.b32.xlu0 %v8385_v62, %s4584_s27  ;;  %v4507_v13 = vld [vmem:[#allocation2 + $0x144] ss:$8 sps:$4 sm:$0xff]   ;;  %v8407_v7 = vld [vmem:[#allocation150_spill] sm:$0xff] }
 0x2dd   :  { %v8406_v37 = vld [vmem:[#allocation151_spill] sm:$0xff] }
 0x2de   :  { %v2652_v52 = vpop.permute.xlu1 %2651  ;;  %4050 = vmatmul.mubr.bf16.gmra.mxu1 %v4383_v50 }
 0x2df   :  { %2838 = vst.msk [vmem:[#allocation2 + $0x30] sm:$0xf] %vm2831_vm12, %v2652_v52  ;;  %v2654_v27 = vpop.permute.xlu0 %2653  ;;  %4439 = vmatprep.mubr.msk.bf16.mxu1 %vm3776_vm14, %v4503_v25 }
 0x2e0   :  { %2839 = vst.msk [vmem:[#allocation2 + $0x38] sm:$0xf] %vm2831_vm12, %v2654_v27  ;;  %2671 = vrot.lane.b32.xlu1 %v8386_v14, %s4585_s11  ;;  %2476 = vrot.lane.b32.xlu0 %v8387_v20, %s4584_s27  ;;  %v8409_v27 = vld [vmem:[#allocation114_spill] sm:$0xff] }
 0x2e2   :  { %v2716_v22 = vpop.permute.xlu1 %2715 }
 0x2e3   :  { %2870 = vst.msk [vmem:[#allocation2 + $0x130] sm:$0xf] %vm2831_vm12, %v2716_v22  ;;  %v2718_v34 = vpop.permute.xlu0 %2717  ;;  %v8408_v22 = vld [vmem:[#allocation160_spill] sm:$0xff] }
 0x2e4   :  { %2871 = vst.msk [vmem:[#allocation2 + $0x138] sm:$0xf] %vm2831_vm12, %v2718_v34  ;;  %2735 = vrot.lane.b32.xlu1 %v8388_v41, %s4585_s11  ;;  %2673 = vrot.lane.b32.xlu0 %v8389_v36, %s4585_s11  ;;  %v8411_v34 = vld [vmem:[#allocation34_spill] sm:$0xff]  ;;  %v7212_v41 = vld [vmem:[%s7731_s0 + $0xc4] sm:$0xf] }
 0x2e5   :  { %v2366_v36 = vrot.slane %v7212_v41, 5 }
 0x2e6   :  { %v2957_v53 = vpop.permute.xlu1 %2956 }
 0x2e7   :  { %3143 = vst.msk [vmem:[#allocation2 + $0x30] sm:$0xf] %vm3136_vm13, %v2957_v53  ;;  %v2959_v43 = vpop.permute.xlu0 %2958  ;;  %v8410_v53 = vld [vmem:[#allocation32_spill] sm:$0xff] }
 0x2e8   :  { %3144 = vst.msk [vmem:[#allocation2 + $0x38] sm:$0xf] %vm3136_vm13, %v2959_v43  ;;  %2976 = vrot.lane.b32.xlu1 %v8390_v51, %s4586_s9  ;;  %2737 = vrot.lane.b32.xlu0 %v8391_v9, %s4585_s11  ;;  %v2368_v51 = vrot.slane %v2366_v36, 4  ;;  %v4574_v9 = vld [vmem:[%s7731_s0 + $0xc8] sm:$0x1] }
 0x2ea   :  { %v3021_v28 = vpop.permute.xlu1 %3020 }
 0x2eb   :  { %3175 = vst.msk [vmem:[#allocation2 + $0x130] sm:$0xf] %vm3136_vm13, %v3021_v28  ;;  %v3023_v11 = vpop.permute.xlu0 %3022 }
 0x2ec   :  { %3176 = vst.msk [vmem:[#allocation2 + $0x138] sm:$0xf] %vm3136_vm13, %v3023_v11  ;;  %3040 = vrot.lane.b32.xlu1 %v8392_v58, %s4586_s9  ;;  %2978 = vrot.lane.b32.xlu0 %v8393_v54, %s4586_s9  ;;  %v7222_v11 = vld [vmem:[%s7731_s0 + $0xc0] sm:$0xf]  ;;  %v8412_v54 = vld [vmem:[#allocation85_spill] sm:$0xff] }
 0x2ed   :  { %v4342_v58 = vrot.slane %v7222_v11, 9 }
 0x2ee   :  { %v2395_v35 = vpop.permute.xlu1 %2394  ;;  %v3351_v32 = vld [vmem:[#allocation2 + $0x30] sm:$0xff] }
 0x2ef   :  { %2579 = vst.msk [vmem:[#allocation2 + $0x40] sm:$0xf] %vm2570_vm11, %v2395_v35  ;;  %v2397_v21 = vpop.permute.xlu0 %2396  ;;  %v3352_v19 = vld [vmem:[#allocation2 + $0x38] sm:$0xff]  ;;  %v2369_v35 = vrot.slane %v4574_v9, 5 }
 0x2f0   :  { %2580 = vst.msk [vmem:[#allocation2 + $0x48] sm:$0xf] %vm2570_vm11, %v2397_v21  ;;  %2414 = vrot.lane.b32.xlu1 %v8394_v17, %s4584_s27  ;;  %v4353_v60 = vcombine.low %v3351_v32, %v3352_v19  ;;  %3042 = vrot.lane.b32.xlu0 %v8395_v46, %s4586_s9  ;;  %v7236_v19 = vsel %vm5685_vm7, %v4342_v58, %v2366_v36  ;;  %v2373_v17 = vrot.slane %v7241_v8, 5  ;;  %v7247_v46 = vld [vmem:[%s7731_s0 + $0x1a0] sm:$0x1]  ;;  %v8424_v58 = vld [vmem:[#allocation37_spill] sm:$0xff] }
 0x2f1   :  { %v7232_v32 = vsel %vm5685_vm7, %v2368_v51, %v2369_v35  ;;  %3309 = vst.msk [vmem:[#allocation2 + $0xe4] sm:$0xf] %vm123_vm1, %v7236_v19  ;;  %v8423_v35 = vld [vmem:[#allocation35_spill] sm:$0xff]  ;;  %v8425_v21 = vld [vmem:[#allocation88_spill] sm:$0xff] }
 0x2f2   :  { %v2459_v47 = vpop.permute.xlu1 %2458  ;;  %3930 = vmatmul.mubr.bf16.gmra.mxu0 %v4353_v60  ;;  %v3383_v42 = vld [vmem:[#allocation2 + $0x130] sm:$0xff]  ;;  %3310 = vst.msk [vmem:[#allocation2 + $0xec] sm:$0xf] %vm123_vm1, %v7232_v32 }
 0x2f3   :  { %2611 = vst.msk [vmem:[#allocation2 + $0x140] sm:$0xf] %vm2570_vm11, %v2459_v47  ;;  %v2461_v33 = vpop.permute.xlu0 %2460  ;;  %v3384_v44 = vld [vmem:[#allocation2 + $0x138] sm:$0xff]  ;;  %4424 = vmatprep.mubr.msk.bf16.mxu0 %vm3776_vm14, %v4505_v5  ;;  %v8413_v47 = vld [vmem:[#allocation87_spill] sm:$0xff] }
 0x2f4   :  { %2612 = vst.msk [vmem:[#allocation2 + $0x148] sm:$0xf] %vm2570_vm11, %v2461_v33  ;;  %2478 = vrot.lane.b32.xlu1 %v8396_v3, %s4584_s27  ;;  %v4385_v26 = vcombine.low %v3383_v42, %v3384_v44  ;;  %2416 = vrot.lane.b32.xlu0 %v8397_v39, %s4584_s27  ;;  %v2375_v33 = vrot.slane %v2373_v17, 4  ;;  %v2376_v42 = vrot.slane %v7247_v46, 5  ;;  %v7258_v44 = vld [vmem:[%s7731_s0 + $0x198] sm:$0xf] }
 0x2f5   :  { %v4343_v25 = vrot.slane %v7258_v44, 9  ;;  %v8415_v3 = vld [vmem:[#allocation63_spill] sm:$0xff] }
 0x2f6   :  { %v2656_v6 = vpop.permute.xlu1 %2655  ;;  %4058 = vmatmul.mubr.bf16.gmra.mxu1 %v4385_v26  ;;  %v8416_v26 = vld [vmem:[#allocation66_spill] sm:$0xff]  ;;  %v7268_v39 = vsel %vm5685_vm7, %v2375_v33, %v2376_v42 }
 0x2f7   :  { %2840 = vst.msk [vmem:[#allocation2 + $0x40] sm:$0xf] %vm2831_vm12, %v2656_v6  ;;  %v2658_v55 = vpop.permute.xlu0 %2657  ;;  %4440 = vmatprep.mubr.msk.bf16.mxu1 %vm3776_vm14, %v4507_v13 }
 0x2f8   :  { %2841 = vst.msk [vmem:[#allocation2 + $0x48] sm:$0xf] %vm2831_vm12, %v2658_v55  ;;  %2675 = vrot.lane.b32.xlu1 %v8398_v23, %s4585_s11  ;;  %2480 = vrot.lane.b32.xlu0 %v8399_v29, %s4584_s27 }
 0x2f9   :  { %3342 = vst.msk [vmem:[#allocation2 + $0x1ec] sm:$0xf] %vm123_vm1, %v7268_v39 }
 0x2fa   :  { %v2720_v4 = vpop.permute.xlu1 %2719 }
 0x2fb   :  { %2872 = vst.msk [vmem:[#allocation2 + $0x140] sm:$0xf] %vm2831_vm12, %v2720_v4  ;;  %v2722_v57 = vpop.permute.xlu0 %2721  ;;  %v7272_v4 = vsel %vm5685_vm7, %v4343_v25, %v2373_v17  ;;  %v8426_v17 = vld [vmem:[#allocation91_spill] sm:$0xff] }
 0x2fc   :  { %2873 = vst.msk [vmem:[#allocation2 + $0x148] sm:$0xf] %vm2831_vm12, %v2722_v57  ;;  %2739 = vrot.lane.b32.xlu1 %v8400_v2, %s4585_s11  ;;  %2677 = vrot.lane.b32.xlu0 %v8401_v40, %s4585_s11  ;;  %v4509_v57 = vld [vmem:[#allocation2 + $0x54] ss:$8 sps:$4 sm:$0xff]   ;;  %v8417_v2 = vld [vmem:[#allocation120_spill] sm:$0xff] }
 0x2fd   :  { %3341 = vst.msk [vmem:[#allocation2 + $0x1e4] sm:$0xf] %vm123_vm1, %v7272_v4  ;;  %v4513_v25 = vld [vmem:[#allocation2 + $0x64] ss:$8 sps:$4 sm:$0xff]  }
 0x2fe   :  { %v2961_v48 = vpop.permute.xlu1 %2960 }
 0x2ff   :  { %3145 = vst.msk [vmem:[#allocation2 + $0x40] sm:$0xf] %vm3136_vm13, %v2961_v48  ;;  %v2963_v38 = vpop.permute.xlu0 %2962 }
 0x300   :  { %3146 = vst.msk [vmem:[#allocation2 + $0x48] sm:$0xf] %vm3136_vm13, %v2963_v38  ;;  %2980 = vrot.lane.b32.xlu1 %v8402_v10, %s4586_s9  ;;  %2741 = vrot.lane.b32.xlu0 %v8403_v45, %s4585_s11  ;;  %v7288_v45 = vld [vmem:[%s7731_s0 + $0xd0] sm:$0xf] }
 0x302   :  { %v3025_v59 = vpop.permute.xlu1 %3024 }
 0x303   :  { %3177 = vst.msk [vmem:[#allocation2 + $0x140] sm:$0xf] %vm3136_vm13, %v3025_v59  ;;  %v3027_v15 = vpop.permute.xlu0 %3026  ;;  %v8418_v59 = vld [vmem:[#allocation121_spill] sm:$0xff] }
 0x304   :  { %3178 = vst.msk [vmem:[#allocation2 + $0x148] sm:$0xf] %vm3136_vm13, %v3027_v15  ;;  %3044 = vrot.lane.b32.xlu1 %v8344_v61, %s4586_s9  ;;  %2982 = vrot.lane.b32.xlu0 %v8404_v49, %s4586_s9  ;;  %v4511_v49 = vld [vmem:[#allocation2 + $0x154] ss:$8 sps:$4 sm:$0xff]  }
 0x306   :  { %v2399_v56 = vpop.permute.xlu1 %2398  ;;  %v3353_v16 = vld [vmem:[#allocation2 + $0x40] sm:$0xff] }
 0x307   :  { %2581 = vst.msk [vmem:[#allocation2 + $0x50] sm:$0xf] %vm2570_vm11, %v2399_v56  ;;  %v2401_v18 = vpop.permute.xlu0 %2400  ;;  %v3354_v30 = vld [vmem:[#allocation2 + $0x48] sm:$0xff] }
 0x308   :  { %2582 = vst.msk [vmem:[#allocation2 + $0x58] sm:$0xf] %vm2570_vm11, %v2401_v18  ;;  %2211 = vrot.lane.b32.xlu1 %v8405_v12, %s4582_s14  ;;  %v4355_v1 = vcombine.low %v3353_v16, %v3354_v30  ;;  %3046 = vrot.lane.b32.xlu0 %v8405_v12, %s4586_s9  ;;  %v3205_v16 = vrot.slane %v7288_v45, 5 }
 0x30a   :  { %v2463_v63 = vpop.permute.xlu1 %2462  ;;  %3938 = vmatmul.mubr.bf16.gmra.mxu0 %v4355_v1  ;;  %v3385_v52 = vld [vmem:[#allocation2 + $0x140] sm:$0xff]  ;;  %v7309_v1 = vld [vmem:[%s7731_s0 + $0x1a8] sm:$0xf] }
 0x30b   :  { %2613 = vst.msk [vmem:[#allocation2 + $0x150] sm:$0xf] %vm2570_vm11, %v2463_v63  ;;  %v2465_v24 = vpop.permute.xlu0 %2464  ;;  %v3386_v0 = vld [vmem:[#allocation2 + $0x148] sm:$0xff]  ;;  %4425 = vmatprep.mubr.msk.bf16.mxu0 %vm3776_vm14, %v4509_v57 }
 0x30c   :  { %2614 = vst.msk [vmem:[#allocation2 + $0x158] sm:$0xf] %vm2570_vm11, %v2465_v24  ;;  %2420 = vrot.lane.b32.xlu1 %v8406_v37, %s4584_s27  ;;  %v4387_v31 = vcombine.low %v3385_v52, %v3386_v0  ;;  %2418 = vrot.lane.b32.xlu0 %v8407_v7, %s4584_s27  ;;  %v7294_v63 = vld [vmem:[%s7731_s0 + $0xcc] sm:$0xf]  ;;  %v3207_v52 = vrot.slane %v3205_v16, 4  ;;  %v3212_v0 = vrot.slane %v7309_v1, 5 }
 0x30d   :  { %v4344_v30 = vrot.slane %v7294_v63, 9  ;;  %v8419_v37 = vld [vmem:[#allocation153_spill] sm:$0xff]  ;;  %v8420_v7 = vld [vmem:[#allocation152_spill] sm:$0xff] }
 0x30e   :  { %v2660_v61 = vpop.permute.xlu1 %2659  ;;  %4066 = vmatmul.mubr.bf16.gmra.mxu1 %v4387_v31  ;;  %v7326_v31 = vld [vmem:[%s7731_s0 + $0xd4] sm:$0x1] }
 0x30f   :  { %2842 = vst.msk [vmem:[#allocation2 + $0x50] sm:$0xf] %vm2831_vm12, %v2660_v61  ;;  %v2662_v62 = vpop.permute.xlu0 %2661  ;;  %4441 = vmatprep.mubr.msk.bf16.mxu1 %vm3776_vm14, %v4511_v49  ;;  %v3206_v12 = vsel %vm5685_vm7, %v4344_v30, %v3205_v16  ;;  %v7314_v61 = vld [vmem:[%s7731_s0 + $0x1a4] sm:$0xf]  ;;  %v8432_v16 = vld [vmem:[#allocation154_spill] sm:$0xff] }
 0x310   :  { %2843 = vst.msk [vmem:[#allocation2 + $0x58] sm:$0xf] %vm2831_vm12, %v2662_v62  ;;  %2484 = vrot.lane.b32.xlu1 %v8408_v22, %s4584_s27  ;;  %2482 = vrot.lane.b32.xlu0 %v8409_v27, %s4584_s27  ;;  %v4345_v13 = vrot.slane %v7314_v61, 9  ;;  %v3208_v62 = vrot.slane %v7326_v31, 5  ;;  %v3214_v27 = vrot.slane %v3212_v0, 4 }
 0x311   :  { %3311 = vst.msk [vmem:[#allocation2 + $0xf4] sm:$0xf] %vm123_vm1, %v3206_v12  ;;  %v8433_v12 = vld [vmem:[#allocation163_spill] sm:$0xff] }
 0x312   :  { %v2724_v50 = vpop.permute.xlu1 %2723 }
 0x313   :  { %2874 = vst.msk [vmem:[#allocation2 + $0x150] sm:$0xf] %vm2831_vm12, %v2724_v50  ;;  %v2726_v20 = vpop.permute.xlu0 %2725  ;;  %v3213_v50 = vsel %vm5685_vm7, %v4345_v13, %v3212_v0  ;;  %v8435_v13 = vld [vmem:[#allocation39_spill] sm:$0xff] }
 0x314   :  { %2875 = vst.msk [vmem:[#allocation2 + $0x158] sm:$0xf] %vm2831_vm12, %v2726_v20  ;;  %2681 = vrot.lane.b32.xlu1 %v8410_v53, %s4585_s11  ;;  %2679 = vrot.lane.b32.xlu0 %v8411_v34, %s4585_s11  ;;  %v3209_v20 = vsel %vm5685_vm7, %v3207_v52, %v3208_v62  ;;  %v7340_v53 = vld [vmem:[%s7731_s0 + $0x1ac] sm:$0x1]  ;;  %v8421_v34 = vld [vmem:[#allocation162_spill] sm:$0xff] }
 0x315   :  { %3343 = vst.msk [vmem:[#allocation2 + $0x1f4] sm:$0xf] %vm123_vm1, %v3213_v50  ;;  %3312 = vst.msk [vmem:[#allocation2 + $0xfc] sm:$0xf] %vm123_vm1, %v3209_v20  ;;  %v3215_v36 = vrot.slane %v7340_v53, 5 }
 0x316   :  { %v2965_v14 = vpop.permute.xlu1 %2964 }
 0x317   :  { %3147 = vst.msk [vmem:[#allocation2 + $0x50] sm:$0xf] %vm3136_vm13, %v2965_v14  ;;  %v2967_v43 = vpop.permute.xlu0 %2966  ;;  %v3216_v51 = vsel %vm5685_vm7, %v3214_v27, %v3215_v36  ;;  %v4517_v27 = vld [vmem:[#allocation2 + $0x74] ss:$8 sps:$4 sm:$0xff]  }
 0x318   :  { %3148 = vst.msk [vmem:[#allocation2 + $0x58] sm:$0xf] %vm3136_vm13, %v2967_v43  ;;  %2745 = vrot.lane.b32.xlu1 %v8412_v54, %s4585_s11  ;;  %2743 = vrot.lane.b32.xlu0 %v8413_v47, %s4585_s11 }
 0x319   :  { %3344 = vst.msk [vmem:[#allocation2 + $0x1fc] sm:$0xf] %vm123_vm1, %v3216_v51 }
 0x31a   :  { %v3029_v28 = vpop.permute.xlu1 %3028 }
 0x31b   :  { %3179 = vst.msk [vmem:[#allocation2 + $0x150] sm:$0xf] %vm3136_vm13, %v3029_v28  ;;  %v3031_v6 = vpop.permute.xlu0 %3030  ;;  %v8422_v28 = vld [vmem:[#allocation161_spill] sm:$0xff] }
 0x31c   :  { %3180 = vst.msk [vmem:[#allocation2 + $0x158] sm:$0xf] %vm3136_vm13, %v3031_v6  ;;  %2986 = vrot.lane.b32.xlu1 %v8415_v3, %s4586_s9  ;;  %2984 = vrot.lane.b32.xlu0 %v8416_v26, %s4586_s9  ;;  %v8427_v3 = vld [vmem:[#allocation67_spill] sm:$0xff] }
 0x31e   :  { %v2403_v60 = vpop.permute.xlu1 %2402  ;;  %v3355_v29 = vld [vmem:[#allocation2 + $0x50] sm:$0xff] }
 0x31f   :  { %2583 = vst.msk [vmem:[#allocation2 + $0x60] sm:$0xf] %vm2570_vm11, %v2403_v60  ;;  %v2405_v23 = vpop.permute.xlu0 %2404  ;;  %v3356_v48 = vld [vmem:[#allocation2 + $0x58] sm:$0xff] }
 0x320   :  { %2584 = vst.msk [vmem:[#allocation2 + $0x68] sm:$0xf] %vm2570_vm11, %v2405_v23  ;;  %3050 = vrot.lane.b32.xlu1 %v8417_v2, %s4586_s9  ;;  %v4357_v40 = vcombine.low %v3355_v29, %v3356_v48  ;;  %3048 = vrot.lane.b32.xlu0 %v8418_v59, %s4586_s9 }
 0x322   :  { %v2467_v55 = vpop.permute.xlu1 %2466  ;;  %3946 = vmatmul.mubr.bf16.gmra.mxu0 %v4357_v40  ;;  %v3387_v10 = vld [vmem:[#allocation2 + $0x150] sm:$0xff]  ;;  %v8429_v40 = vld [vmem:[#allocation123_spill] sm:$0xff] }
 0x323   :  { %2615 = vst.msk [vmem:[#allocation2 + $0x160] sm:$0xf] %vm2570_vm11, %v2467_v55  ;;  %v2469_v56 = vpop.permute.xlu0 %2468  ;;  %v3388_v15 = vld [vmem:[#allocation2 + $0x158] sm:$0xff]  ;;  %v8428_v55 = vld [vmem:[#allocation69_spill] sm:$0xff]  ;;  %4426 = vmatprep.mubr.msk.bf16.mxu0 %vm3776_vm14, %v4513_v25 }
 0x324   :  { %2616 = vst.msk [vmem:[#allocation2 + $0x168] sm:$0xf] %vm2570_vm11, %v2469_v56  ;;  %2215 = vrot.lane.b32.xlu1 %v8417_v2, %s4582_s14  ;;  %v4389_v18 = vcombine.low %v3387_v10, %v3388_v15  ;;  %2213 = vrot.lane.b32.xlu0 %v8418_v59, %s4582_s14  ;;  %v4515_v2 = vld [vmem:[#allocation2 + $0x164] ss:$8 sps:$4 sm:$0xff]  }
 0x326   :  { %v2664_v38 = vpop.permute.xlu1 %2663  ;;  %4074 = vmatmul.mubr.bf16.gmra.mxu1 %v4389_v18  ;;  %v8431_v18 = vld [vmem:[#allocation155_spill] sm:$0xff] }
 0x327   :  { %2844 = vst.msk [vmem:[#allocation2 + $0x60] sm:$0xf] %vm2831_vm12, %v2664_v38  ;;  %v2666_v24 = vpop.permute.xlu0 %2665  ;;  %v8430_v38 = vld [vmem:[#allocation124_spill] sm:$0xff]  ;;  %4442 = vmatprep.mubr.msk.bf16.mxu1 %vm3776_vm14, %v4515_v2 }
 0x328   :  { %2845 = vst.msk [vmem:[#allocation2 + $0x68] sm:$0xf] %vm2831_vm12, %v2666_v24  ;;  %2424 = vrot.lane.b32.xlu1 %v8419_v37, %s4584_s27  ;;  %2422 = vrot.lane.b32.xlu0 %v8420_v7, %s4584_s27  ;;  %v8434_v24 = vld [vmem:[#allocation122_spill] sm:$0xff]  ;;  %v8436_v37 = vld [vmem:[#allocation40_spill] sm:$0xff] }
 0x32a   :  { %v2728_v5 = vpop.permute.xlu1 %2727 }
 0x32b   :  { %2876 = vst.msk [vmem:[#allocation2 + $0x160] sm:$0xf] %vm2831_vm12, %v2728_v5  ;;  %v2730_v14 = vpop.permute.xlu0 %2729 }
 0x32c   :  { %2877 = vst.msk [vmem:[#allocation2 + $0x168] sm:$0xf] %vm2831_vm12, %v2730_v14  ;;  %2488 = vrot.lane.b32.xlu1 %v8421_v34, %s4584_s27  ;;  %2486 = vrot.lane.b32.xlu0 %v8422_v28, %s4584_s27  ;;  %v8437_v14 = vld [vmem:[#allocation92_spill] sm:$0xff] }
 0x32d   :  { %v8438_v34 = vld [vmem:[#allocation96_spill] sm:$0xff] }
 0x32e   :  { %v2969_v22 = vpop.permute.xlu1 %2968 }
 0x32f   :  { %3149 = vst.msk [vmem:[#allocation2 + $0x60] sm:$0xf] %vm3136_vm13, %v2969_v22  ;;  %v2971_v9 = vpop.permute.xlu0 %2970 }
 0x330   :  { %3150 = vst.msk [vmem:[#allocation2 + $0x68] sm:$0xf] %vm3136_vm13, %v2971_v9  ;;  %2685 = vrot.lane.b32.xlu1 %v8423_v35, %s4585_s11  ;;  %2683 = vrot.lane.b32.xlu0 %v8424_v58, %s4585_s11  ;;  %v4519_v9 = vld [vmem:[#allocation2 + $0x174] ss:$8 sps:$4 sm:$0xff]   ;;  %v8439_v35 = vld [vmem:[#allocation72_spill] sm:$0xff] }
 0x332   :  { %v3033_v43 = vpop.permute.xlu1 %3032 }
 0x333   :  { %3181 = vst.msk [vmem:[#allocation2 + $0x160] sm:$0xf] %vm3136_vm13, %v3033_v43  ;;  %v3035_v47 = vpop.permute.xlu0 %3034 }
 0x334   :  { %3182 = vst.msk [vmem:[#allocation2 + $0x168] sm:$0xf] %vm3136_vm13, %v3035_v47  ;;  %2749 = vrot.lane.b32.xlu1 %v8425_v21, %s4585_s11  ;;  %2747 = vrot.lane.b32.xlu0 %v8426_v17, %s4585_s11  ;;  %v8441_v17 = vld [vmem:[#allocation125_spill] sm:$0xff] }
 0x336   :  { %v2407_v54 = vpop.permute.xlu1 %2406  ;;  %v3357_v33 = vld [vmem:[#allocation2 + $0x60] sm:$0xff] }
 0x337   :  { %2585 = vst.msk [vmem:[#allocation2 + $0x70] sm:$0xf] %vm2570_vm11, %v2407_v54  ;;  %v2409_v6 = vpop.permute.xlu0 %2408  ;;  %v3358_v42 = vld [vmem:[#allocation2 + $0x68] sm:$0xff]  ;;  %v8440_v54 = vld [vmem:[#allocation74_spill] sm:$0xff] }
 0x338   :  { %2586 = vst.msk [vmem:[#allocation2 + $0x78] sm:$0xf] %vm2570_vm11, %v2409_v6  ;;  %2990 = vrot.lane.b32.xlu1 %v8427_v3, %s4586_s9  ;;  %v4359_v26 = vcombine.low %v3357_v33, %v3358_v42  ;;  %2988 = vrot.lane.b32.xlu0 %v8428_v55, %s4586_s9  ;;  %v8443_v3 = vld [vmem:[#allocation157_spill] sm:$0xff] }
 0x33a   :  { %v2471_v60 = vpop.permute.xlu1 %2470  ;;  %3954 = vmatmul.mubr.bf16.gmra.mxu0 %v4359_v26  ;;  %v3389_v48 = vld [vmem:[#allocation2 + $0x160] sm:$0xff]  ;;  %v8444_v26 = vld [vmem:[#allocation156_spill] sm:$0xff] }
 0x33b   :  { %2617 = vst.msk [vmem:[#allocation2 + $0x170] sm:$0xf] %vm2570_vm11, %v2471_v60  ;;  %v2473_v29 = vpop.permute.xlu0 %2472  ;;  %v3390_v57 = vld [vmem:[#allocation2 + $0x168] sm:$0xff]  ;;  %4427 = vmatprep.mubr.msk.bf16.mxu0 %vm3776_vm14, %v4517_v27  ;;  %v8442_v60 = vld [vmem:[#allocation127_spill] sm:$0xff] }
 0x33c   :  { %2618 = vst.msk [vmem:[#allocation2 + $0x178] sm:$0xf] %vm2570_vm11, %v2473_v29  ;;  %3054 = vrot.lane.b32.xlu1 %v8429_v40, %s4586_s9  ;;  %v4391_v59 = vcombine.low %v3389_v48, %v3390_v57  ;;  %3052 = vrot.lane.b32.xlu0 %v8430_v38, %s4586_s9  ;;  %v8445_v29 = vld [vmem:[#allocation165_spill] sm:$0xff]  ;;  %v8446_v48 = vld [vmem:[#allocation164_spill] sm:$0xff] }
 0x33e   :  { %v2668_v23 = vpop.permute.xlu1 %2667  ;;  %4082 = vmatmul.mubr.bf16.gmra.mxu1 %v4391_v59 }
 0x33f   :  { %2846 = vst.msk [vmem:[#allocation2 + $0x70] sm:$0xf] %vm2831_vm12, %v2668_v23  ;;  %v2670_v56 = vpop.permute.xlu0 %2669  ;;  %4443 = vmatprep.mubr.msk.bf16.mxu1 %vm3776_vm14, %v4519_v9 }
 0x340   :  { %2847 = vst.msk [vmem:[#allocation2 + $0x78] sm:$0xf] %vm2831_vm12, %v2670_v56  ;;  %2219 = vrot.lane.b32.xlu1 %v8429_v40, %s4582_s14  ;;  %2217 = vrot.lane.b32.xlu0 %v8430_v38, %s4582_s14  ;;  %v4521_v38 = vld [vmem:[#allocation2 + $0x84] ss:$8 sps:$4 sm:$0xff]  }
 0x342   :  { %v2732_v10 = vpop.permute.xlu1 %2731 }
 0x343   :  { %2878 = vst.msk [vmem:[#allocation2 + $0x170] sm:$0xf] %vm2831_vm12, %v2732_v10  ;;  %v2734_v49 = vpop.permute.xlu0 %2733  ;;  %v8447_v10 = vld [vmem:[#allocation42_spill] sm:$0xff] }
 0x344   :  { %2879 = vst.msk [vmem:[#allocation2 + $0x178] sm:$0xf] %vm2831_vm12, %v2734_v49  ;;  %2428 = vrot.lane.b32.xlu1 %v8431_v18, %s4584_s27  ;;  %2426 = vrot.lane.b32.xlu0 %v8432_v16, %s4584_s27  ;;  %v7450_v18 = vld [vmem:[%s7733_s2] ss:$0 sm:$0xff] }
 0x346   :  { %v2973_v15 = vpop.permute.xlu1 %2972 }
 0x347   :  { %3151 = vst.msk [vmem:[#allocation2 + $0x70] sm:$0xf] %vm3136_vm13, %v2973_v15  ;;  %v2975_v5 = vpop.permute.xlu0 %2974  ;;  %v8448_v15 = vld [vmem:[#allocation44_spill] sm:$0xff] }
 0x348   :  { %3152 = vst.msk [vmem:[#allocation2 + $0x78] sm:$0xf] %vm3136_vm13, %v2975_v5  ;;  %2492 = vrot.lane.b32.xlu1 %v8433_v12, %s4584_s27  ;;  %2490 = vrot.lane.b32.xlu0 %v8434_v24, %s4584_s27  ;;  %v4523_v24 = vld [vmem:[#allocation2 + $0x184] ss:$8 sps:$4 sm:$0xff]  }
 0x34a   :  { %v3037_v30 = vpop.permute.xlu1 %3036 }
 0x34b   :  { %3183 = vst.msk [vmem:[#allocation2 + $0x170] sm:$0xf] %vm3136_vm13, %v3037_v30  ;;  %v3039_v0 = vpop.permute.xlu0 %3038 }
 0x34c   :  { %3184 = vst.msk [vmem:[#allocation2 + $0x178] sm:$0xf] %vm3136_vm13, %v3039_v0  ;;  %2689 = vrot.lane.b32.xlu1 %v8435_v13, %s4585_s11  ;;  %2687 = vrot.lane.b32.xlu0 %v8436_v37, %s4585_s11  ;;  %v8450_v37 = vld [vmem:[#allocation99_spill] sm:$0xff] }
 0x34e   :  { %v2411_v52 = vpop.permute.xlu1 %2410  ;;  %v3359_v62 = vld [vmem:[#allocation2 + $0x70] sm:$0xff] }
 0x34f   :  { %2587 = vst.msk [vmem:[#allocation2 + $0x80] sm:$0xf] %vm2570_vm11, %v2411_v52  ;;  %v2413_v50 = vpop.permute.xlu0 %2412  ;;  %v3360_v22 = vld [vmem:[#allocation2 + $0x78] sm:$0xff]  ;;  %v8449_v52 = vld [vmem:[#allocation97_spill] sm:$0xff] }
 0x350   :  { %2588 = vst.msk [vmem:[#allocation2 + $0x88] sm:$0xf] %vm2570_vm11, %v2413_v50  ;;  %2753 = vrot.lane.b32.xlu1 %v8437_v14, %s4585_s11  ;;  %v4361_v20 = vcombine.low %v3359_v62, %v3360_v22  ;;  %2751 = vrot.lane.b32.xlu0 %v8438_v34, %s4585_s11 }
 0x352   :  { %v2475_v7 = vpop.permute.xlu1 %2474  ;;  %3962 = vmatmul.mubr.bf16.gmra.mxu0 %v4361_v20  ;;  %v3391_v43 = vld [vmem:[#allocation2 + $0x170] sm:$0xff] }
 0x353   :  { %2619 = vst.msk [vmem:[#allocation2 + $0x180] sm:$0xf] %vm2570_vm11, %v2475_v7  ;;  %v2477_v28 = vpop.permute.xlu0 %2476  ;;  %v3392_v51 = vld [vmem:[#allocation2 + $0x178] sm:$0xff]  ;;  %4428 = vmatprep.mubr.msk.bf16.mxu0 %vm3776_vm14, %v4521_v38  ;;  %v8451_v20 = vld [vmem:[#allocation77_spill] sm:$0xff]  ;;  %v2085_v38 = vshll.u32 %v7258_v44, 16 }
 0x354   :  { %2620 = vst.msk [vmem:[#allocation2 + $0x188] sm:$0xf] %vm2570_vm11, %v2477_v28  ;;  %2994 = vrot.lane.b32.xlu1 %v8439_v35, %s4586_s9  ;;  %v4393_v58 = vcombine.low %v3391_v43, %v3392_v51  ;;  %2992 = vrot.lane.b32.xlu0 %v8440_v54, %s4586_s9  ;;  %v8452_v28 = vld [vmem:[#allocation80_spill] sm:$0xff] }
 0x356   :  { %v2672_v36 = vpop.permute.xlu1 %2671  ;;  %4090 = vmatmul.mubr.bf16.gmra.mxu1 %v4393_v58 }
 0x357   :  { %2848 = vst.msk [vmem:[#allocation2 + $0x80] sm:$0xf] %vm2831_vm12, %v2672_v36  ;;  %v2674_v21 = vpop.permute.xlu0 %2673  ;;  %4444 = vmatprep.mubr.msk.bf16.mxu1 %vm3776_vm14, %v4523_v24 }
 0x358   :  { %2849 = vst.msk [vmem:[#allocation2 + $0x88] sm:$0xf] %vm2831_vm12, %v2674_v21  ;;  %3058 = vrot.lane.b32.xlu1 %v8441_v17, %s4586_s9  ;;  %3056 = vrot.lane.b32.xlu0 %v8442_v60, %s4586_s9 }
 0x35a   :  { %v2736_v47 = vpop.permute.xlu1 %2735 }
 0x35b   :  { %2880 = vst.msk [vmem:[#allocation2 + $0x180] sm:$0xf] %vm2831_vm12, %v2736_v47  ;;  %v2738_v33 = vpop.permute.xlu0 %2737 }
 0x35c   :  { %2881 = vst.msk [vmem:[#allocation2 + $0x188] sm:$0xf] %vm2831_vm12, %v2738_v33  ;;  %2223 = vrot.lane.b32.xlu1 %v8441_v17, %s4582_s14  ;;  %2221 = vrot.lane.b32.xlu0 %v8442_v60, %s4582_s14  ;;  %v8453_v17 = vld [vmem:[#allocation128_spill] sm:$0xff] }
 0x35e   :  { %v2977_v6 = vpop.permute.xlu1 %2976 }
 0x35f   :  { %3153 = vst.msk [vmem:[#allocation2 + $0x80] sm:$0xf] %vm3136_vm13, %v2977_v6  ;;  %v2979_v25 = vpop.permute.xlu0 %2978 }
 0x360   :  { %3154 = vst.msk [vmem:[#allocation2 + $0x88] sm:$0xf] %vm3136_vm13, %v2979_v25  ;;  %2432 = vrot.lane.b32.xlu1 %v8443_v3, %s4584_s27  ;;  %2430 = vrot.lane.b32.xlu0 %v8444_v26, %s4584_s27 }
 0x362   :  { %v3041_v42 = vpop.permute.xlu1 %3040 }
 0x363   :  { %3185 = vst.msk [vmem:[#allocation2 + $0x180] sm:$0xf] %vm3136_vm13, %v3041_v42  ;;  %v3043_v23 = vpop.permute.xlu0 %3042  ;;  %v8454_v42 = vld [vmem:[#allocation130_spill] sm:$0xff] }
 0x364   :  { %3186 = vst.msk [vmem:[#allocation2 + $0x188] sm:$0xf] %vm3136_vm13, %v3043_v23  ;;  %2496 = vrot.lane.b32.xlu1 %v8445_v29, %s4584_s27  ;;  %2494 = vrot.lane.b32.xlu0 %v8446_v48, %s4584_s27  ;;  %v8455_v29 = vld [vmem:[#allocation159_spill] sm:$0xff]  ;;  %v8456_v48 = vld [vmem:[#allocation158_spill] sm:$0xff] }
 0x366   :  { %v2415_v55 = vpop.permute.xlu1 %2414  ;;  %v3361_v40 = vld [vmem:[#allocation2 + $0x80] sm:$0xff] }
 0x367   :  { %2589 = vst.msk [vmem:[#allocation2 + $0x90] sm:$0xf] %vm2570_vm11, %v2415_v55  ;;  %v2417_v2 = vpop.permute.xlu0 %2416  ;;  %v3362_v59 = vld [vmem:[#allocation2 + $0x88] sm:$0xff] }
 0x368   :  { %2590 = vst.msk [vmem:[#allocation2 + $0x98] sm:$0xf] %vm2570_vm11, %v2417_v2  ;;  %2693 = vrot.lane.b32.xlu1 %v8447_v10, %s4585_s11  ;;  %v4363_v56 = vcombine.low %v3361_v40, %v3362_v59  ;;  %2691 = vrot.lane.b32.xlu0 %v8448_v15, %s4585_s11  ;;  %v2095_v2 = vshrl.u32 %v7241_v8, 16  ;;  %v2082_v59 = vshrl.u32 %v7258_v44, 16 }
 0x369   :  { %v3907_v16 = vpop.f32.mrf.mxu0 }
 0x36a   :  { %v2479_v57 = vpop.permute.xlu1 %2478  ;;  %3970 = vmatmul.mubr.bf16.gmra.mxu0 %v4363_v56  ;;  %v3393_v5 = vld [vmem:[#allocation2 + $0x180] sm:$0xff]  ;;  %v3908_v7 = vadd.f32 %v7450_v18, %v3907_v16  ;;  %v2097_v24 = vrot.slane %v2095_v2, 4 }
 0x36b   :  { %2621 = vst.msk [vmem:[#allocation2 + $0x190] sm:$0xf] %vm2570_vm11, %v2479_v57  ;;  %v2481_v30 = vpop.permute.xlu0 %2480  ;;  %v3394_v12 = vld [vmem:[#allocation2 + $0x188] sm:$0xff]  ;;  %v3909_v0 = vpop.f32.mrf.mxu0  ;;  %v2091_v57 = vshll.u32 %v7241_v8, 16  ;;  %v8457_v16 = vld [vmem:[#allocation167_spill] sm:$0xff] }
 0x36c   :  { %2622 = vst.msk [vmem:[#allocation2 + $0x198] sm:$0xf] %vm2570_vm11, %v2481_v30  ;;  %2757 = vrot.lane.b32.xlu1 %v8449_v52, %s4585_s11  ;;  %v4395_v13 = vcombine.low %v3393_v5, %v3394_v12  ;;  %2755 = vrot.lane.b32.xlu0 %v8450_v37, %s4585_s11  ;;  %v4162_v51 = vmax.f32 %v3908_v7, 0.0  ;;  %v8458_v5 = vld [vmem:[#allocation166_spill] sm:$0xff]  ;;  %v2087_v37 = vrot.slane %v2085_v38, 5 }
 0x36d   :  { %v4035_v62 = vpop.f32.mrf.mxu1  ;;  %v3910_v27 = vpop.f32.mrf.mxu0  ;;  %v2093_v12 = vrot.slane %v2091_v57, 5  ;;  %v8460_v57 = vld [vmem:[#allocation49_spill] sm:$0xff] }
 0x36e   :  { %v2676_v49 = vpop.permute.xlu1 %2675  ;;  %4098 = vmatmul.mubr.bf16.gmra.mxu1 %v4395_v13  ;;  %v3911_v14 = vadd.f32 %v7450_v18, %v3910_v27  ;;  %v4036_v36 = vadd.f32 %v7450_v18, %v4035_v62  ;;  %v2084_v13 = vrot.slane %v2082_v59, 4  ;;  %v4527_v27 = vld [vmem:[#allocation2 + $0x194] ss:$8 sps:$4 sm:$0xff]  }
 0x36f   :  { %2850 = vst.msk [vmem:[#allocation2 + $0x90] sm:$0xf] %vm2831_vm12, %v2676_v49  ;;  %v2678_v22 = vpop.permute.xlu0 %2677  ;;  %v4037_v34 = vpop.f32.mrf.mxu1  ;;  %v4525_v49 = vld [vmem:[#allocation2 + $0x94] ss:$8 sps:$4 sm:$0xff]   ;;  %4445 = vmatprep.mubr.msk.bf16.mxu1 %vm3776_vm14, %v4527_v27 }
 0x370   :  { %2851 = vst.msk [vmem:[#allocation2 + $0x98] sm:$0xf] %vm2831_vm12, %v2678_v22  ;;  %2998 = vrot.lane.b32.xlu1 %v8451_v20, %s4586_s9  ;;  %2996 = vrot.lane.b32.xlu0 %v8452_v28, %s4586_s9  ;;  %v3912_v43 = vpop.f32.mrf.mxu0  ;;  %v4163_v9 = vmax.f32 %v3911_v14, 0.0  ;;  %v4194_v6 = vmax.f32 %v4036_v36, 0.0  ;;  %v2098_v36 = vor.u32 %v2097_v24, %v2093_v12  ;;  %v2101_v28 = vshll.u32 %v7247_v46, 16 }
 0x371   :  { %v4038_v58 = vpop.f32.mrf.mxu1  ;;  %4429 = vmatprep.mubr.msk.bf16.mxu0 %vm3776_vm14, %v4525_v49  ;;  %v2906_v49 = vshll.u32 %v7288_v45, 16  ;;  %v2900_v24 = vshll.u32 %v7294_v63, 16 }
 0x372   :  { %v2740_v50 = vpop.permute.xlu1 %2739  ;;  %v4039_v54 = vadd.f32 %v7450_v18, %v4038_v58  ;;  %v4226_v21 = vadd.f32 %v4163_v9, %v4162_v51  ;;  %v2088_v9 = vor.u32 %v2087_v37, %v2084_v13  ;;  %v4529_v13 = vld [vmem:[#allocation2 + $0xa4] ss:$8 sps:$4 sm:$0xff]  }
 0x373   :  { %2882 = vst.msk [vmem:[#allocation2 + $0x190] sm:$0xf] %vm2831_vm12, %v2740_v50  ;;  %v2742_v47 = vpop.permute.xlu0 %2741  ;;  %v4040_v60 = vpop.f32.mrf.mxu1 }
 0x374   :  { %2883 = vst.msk [vmem:[#allocation2 + $0x198] sm:$0xf] %vm2831_vm12, %v2742_v47  ;;  %3062 = vrot.lane.b32.xlu1 %v8453_v17, %s4586_s9  ;;  %v4195_v33 = vmax.f32 %v4039_v54, 0.0  ;;  %3060 = vrot.lane.b32.xlu0 %v8454_v42, %s4586_s9  ;;  %v2103_v60 = vrot.slane %v2101_v28, 5  ;;  %v2924_v28 = vshll.u32 %v7314_v61, 16 }
 0x376   :  { %v2981_v35 = vpop.permute.xlu1 %2980  ;;  %v7475_v3 = vadd.f32 %v4195_v33, %v4194_v6 }
 0x377   :  { %3155 = vst.msk [vmem:[#allocation2 + $0x90] sm:$0xf] %vm3136_vm13, %v2981_v35  ;;  %v2983_v26 = vpop.permute.xlu0 %2982 }
 0x378   :  { %3156 = vst.msk [vmem:[#allocation2 + $0x98] sm:$0xf] %vm3136_vm13, %v2983_v26  ;;  %2227 = vrot.lane.b32.xlu1 %v8453_v17, %s4582_s14  ;;  %2225 = vrot.lane.b32.xlu0 %v8454_v42, %s4582_s14 }
 0x37a   :  { %v3045_v25 = vpop.permute.xlu1 %3044 }
 0x37b   :  { %3187 = vst.msk [vmem:[#allocation2 + $0x190] sm:$0xf] %vm3136_vm13, %v3045_v25  ;;  %v3047_v23 = vpop.permute.xlu0 %3046  ;;  %v2089_v25 = vrot.slane %v2088_v9, 4  ;;  %v4531_v9 = vld [vmem:[#allocation2 + $0x1a4] ss:$8 sps:$4 sm:$0xff]  }
 0x37c   :  { %3188 = vst.msk [vmem:[#allocation2 + $0x198] sm:$0xf] %vm3136_vm13, %v3047_v23  ;;  %2436 = vrot.lane.b32.xlu1 %v8455_v29, %s4584_s27  ;;  %2434 = vrot.lane.b32.xlu0 %v8456_v48, %s4584_s27 }
 0x37d   :  { %v2094_v59 = vsel %vm4661_vm3, %v2089_v25, %v2093_v12  ;;  %v2897_v12 = vshrl.u32 %v7294_v63, 16 }
 0x37e   :  { %v2212_v55 = vpop.permute.xlu1 %2211  ;;  %v3363_v56 = vld [vmem:[#allocation2 + $0x90] sm:$0xff] }
 0x37f   :  { %2351 = vst.msk [vmem:[#allocation2 + $0x1a8] sm:$0xf] %vm2297_vm10, %v2212_v55  ;;  %v2419_v10 = vpop.permute.xlu0 %2418  ;;  %v3364_v15 = vld [vmem:[#allocation2 + $0x98] sm:$0xff] }
 0x380   :  { %2591 = vst.msk [vmem:[#allocation2 + $0xa0] sm:$0xf] %vm2570_vm11, %v2419_v10  ;;  %2500 = vrot.lane.b32.xlu1 %v8457_v16, %s4584_s27  ;;  %v4365_v30 = vcombine.low %v3363_v56, %v3364_v15  ;;  %2498 = vrot.lane.b32.xlu0 %v8458_v5, %s4584_s27  ;;  %v2910_v16 = vshrl.u32 %v7288_v45, 16 }
 0x382   :  { %v2421_v40 = vpop.permute.xlu1 %2420  ;;  %v3915_v0 = vpop.f32.mrf.mxu0  ;;  %3978 = vmatmul.mubr.bf16.gmra.mxu0 %v4365_v30  ;;  %v3395_v62 = vld [vmem:[#allocation2 + $0x190] sm:$0xff] }
 0x383   :  { %2592 = vst.msk [vmem:[#allocation2 + $0xa8] sm:$0xf] %vm2570_vm11, %v2421_v40  ;;  %v2483_v7 = vpop.permute.xlu0 %2482  ;;  %v3916_v50 = vadd.f32 %v7450_v18, %v3915_v0  ;;  %v3396_v22 = vld [vmem:[#allocation2 + $0x198] sm:$0xff]  ;;  %4430 = vmatprep.mubr.msk.bf16.mxu0 %vm3776_vm14, %v4529_v13 }
 0x384   :  { %2623 = vst.msk [vmem:[#allocation2 + $0x1a0] sm:$0xf] %vm2570_vm11, %v2483_v7  ;;  %2697 = vrot.lane.b32.xlu1 %v7212_v41, %s4585_s11  ;;  %v3917_v14 = vpop.f32.mrf.mxu0  ;;  %v4397_v20 = vcombine.low %v3395_v62, %v3396_v22  ;;  %2695 = vrot.lane.b32.xlu0 %v7222_v11, %s4585_s11  ;;  %v7549_v7 = vrot.slane %v2906_v49, 5  ;;  %v2930_v62 = vshll.u32 %v7309_v1, 16  ;;  %v2934_v22 = vshrl.u32 %v7309_v1, 16 }
 0x385   :  { %v4164_v34 = vmax.f32 %v3916_v50, 0.0  ;;  %v2912_v50 = vrot.slane %v2910_v16, 4 }
 0x386   :  { %v2485_v52 = vpop.permute.xlu1 %2484  ;;  %v4043_v51 = vpop.f32.mrf.mxu1  ;;  %4106 = vmatmul.mubr.bf16.gmra.mxu1 %v4397_v20 }
 0x387   :  { %2624 = vst.msk [vmem:[#allocation2 + $0x1a8] sm:$0xf] %vm2570_vm11, %v2485_v52  ;;  %v4227_v35 = vadd.f32 %v4226_v21, %v4164_v34  ;;  %v4044_v41 = vadd.f32 %v7450_v18, %v4043_v51  ;;  %v2680_v58 = vpop.permute.xlu0 %2679  ;;  %v3918_v54 = vpop.f32.mrf.mxu0  ;;  %v2099_v21 = vrot.slane %v2098_v36, 4  ;;  %v2899_v34 = vrot.slane %v2897_v12, 4  ;;  %4446 = vmatprep.mubr.msk.bf16.mxu1 %vm3776_vm14, %v4531_v9 }
 0x388   :  { %2852 = vst.msk [vmem:[#allocation2 + $0xa0] sm:$0xf] %vm2831_vm12, %v2680_v58  ;;  %v3919_v11 = vadd.f32 %v7450_v18, %v3918_v54  ;;  %2761 = vrot.lane.b32.xlu1 %v7241_v8, %s4585_s11  ;;  %v4045_v47 = vpop.f32.mrf.mxu1  ;;  %2759 = vrot.lane.b32.xlu0 %v7258_v44, %s4585_s11  ;;  %v8459_v44 = vld [vmem:[#allocation46_spill] sm:$0xff]  ;;  %v2902_v36 = vrot.slane %v2900_v24, 5  ;;  %v2913_v58 = vor.u32 %v2912_v50, %v7549_v7 }
 0x389   :  { %v4196_v46 = vmax.f32 %v4044_v41, 0.0  ;;  %v3920_v17 = vpop.f32.mrf.mxu0  ;;  %v2936_v47 = vrot.slane %v2934_v22, 4 }
 0x38a   :  { %v2682_v43 = vpop.permute.xlu1 %2681  ;;  %v4165_v6 = vmax.f32 %v3919_v11, 0.0  ;;  %v4046_v42 = vpop.f32.mrf.mxu1  ;;  %v2932_v11 = vrot.slane %v2930_v62, 5 }
 0x38b   :  { %2853 = vst.msk [vmem:[#allocation2 + $0xa8] sm:$0xf] %vm2831_vm12, %v2682_v43  ;;  %v4264_v26 = vadd.f32 %v7475_v3, %v4196_v46  ;;  %v4047_v55 = vadd.f32 %v7450_v18, %v4046_v42  ;;  %v2744_v23 = vpop.permute.xlu0 %2743  ;;  %v2104_v3 = vsel %vm4661_vm3, %v2099_v21, %v2103_v60  ;;  %v2916_v46 = vshll.u32 %v7326_v31, 16 }
 0x38c   :  { %v7520_v8 = vadd.f32 %v4227_v35, %v4165_v6  ;;  %2884 = vst.msk [vmem:[#allocation2 + $0x1a0] sm:$0xf] %vm2831_vm12, %v2744_v23  ;;  %3002 = vrot.lane.b32.xlu1 %v8459_v44, %s4586_s9  ;;  %v4048_v29 = vpop.f32.mrf.mxu1  ;;  %3000 = vrot.lane.b32.xlu0 %v8460_v57, %s4586_s9  ;;  %v2926_v6 = vrot.slane %v2924_v28, 5 }
 0x38d   :  { %v4197_v48 = vmax.f32 %v4047_v55, 0.0  ;;  %v2914_v55 = vrot.slane %v2913_v58, 4  ;;  %v2918_v44 = vrot.slane %v2916_v46, 5  ;;  %v2937_v29 = vor.u32 %v2936_v47, %v2932_v11 }
 0x38e   :  { %v2746_v33 = vpop.permute.xlu1 %2745 }
 0x38f   :  { %2885 = vst.msk [vmem:[#allocation2 + $0x1a8] sm:$0xf] %vm2831_vm12, %v2746_v33  ;;  %v7531_v38 = vadd.f32 %v4264_v26, %v4197_v48  ;;  %v2985_v10 = vpop.permute.xlu0 %2984  ;;  %v2940_v48 = vshll.u32 %v7340_v53, 16  ;;  %v2919_v16 = vsel %vm4661_vm3, %v2914_v55, %v2918_v44 }
 0x390   :  { %3157 = vst.msk [vmem:[#allocation2 + $0xa0] sm:$0xf] %vm3136_vm13, %v2985_v10  ;;  %3066 = vrot.lane.b32.xlu1 %v2104_v3, %s4586_s9  ;;  %3064 = vrot.lane.b32.xlu0 %v2094_v59, %s4586_s9 }
 0x392   :  { %v2987_v40 = vpop.permute.xlu1 %2986 }
 0x393   :  { %3158 = vst.msk [vmem:[#allocation2 + $0xa8] sm:$0xf] %vm3136_vm13, %v2987_v40  ;;  %v3049_v15 = vpop.permute.xlu0 %3048 }
 0x394   :  { %3189 = vst.msk [vmem:[#allocation2 + $0x1a0] sm:$0xf] %vm3136_vm13, %v3049_v15  ;;  %2231 = vrot.lane.b32.xlu1 %v2104_v3, %s4582_s14  ;;  %2229 = vrot.lane.b32.xlu0 %v2094_v59, %s4582_s14 }
 0x396   :  { %v3051_v56 = vpop.permute.xlu1 %3050 }
 0x397   :  { %3190 = vst.msk [vmem:[#allocation2 + $0x1a8] sm:$0xf] %vm3136_vm13, %v3051_v56  ;;  %v2214_v52 = vpop.permute.xlu0 %2213  ;;  %v3365_v0 = vld [vmem:[#allocation2 + $0xa0] sm:$0xff] }
 0x398   :  { %2352 = vst.msk [vmem:[#allocation2 + $0x1b0] sm:$0xf] %vm2297_vm10, %v2214_v52  ;;  %2440 = vrot.lane.b32.xlu1 %v7232_v32, %s4584_s27  ;;  %2438 = vrot.lane.b32.xlu0 %v7236_v19, %s4584_s27  ;;  %v2921_v32 = vshrl.u32 %v7314_v61, 16 }
 0x39a   :  { %v2216_v30 = vpop.permute.xlu1 %2215  ;;  %v3366_v5 = vld [vmem:[#allocation2 + $0xa8] sm:$0xff]  ;;  %v3923_v14 = vpop.f32.mrf.mxu0  ;;  %v2923_v60 = vrot.slane %v2921_v32, 4 }
 0x39b   :  { %2353 = vst.msk [vmem:[#allocation2 + $0x1b8] sm:$0xf] %vm2297_vm10, %v2216_v30  ;;  %v4367_v37 = vcombine.low %v3365_v0, %v3366_v5  ;;  %v2423_v43 = vpop.permute.xlu0 %2422  ;;  %v3924_v19 = vadd.f32 %v7450_v18, %v3923_v14  ;;  %v3397_v51 = vld [vmem:[#allocation2 + $0x1a0] sm:$0xff]  ;;  %v2942_v30 = vrot.slane %v2940_v48, 5 }
 0x39c   :  { %2593 = vst.msk [vmem:[#allocation2 + $0xb0] sm:$0xf] %vm2570_vm11, %v2423_v43  ;;  %2504 = vrot.lane.b32.xlu1 %v7268_v39, %s4584_s27  ;;  %v3925_v35 = vpop.f32.mrf.mxu0  ;;  %2502 = vrot.lane.b32.xlu0 %v7272_v4, %s4584_s27  ;;  %v2903_v39 = vor.u32 %v2902_v36, %v2899_v34  ;;  %v2927_v10 = vor.u32 %v2926_v6, %v2923_v60  ;;  %v4533_v34 = vld [vmem:[#allocation2 + $0xb4] ss:$8 sps:$4 sm:$0xff]  }
 0x39d   :  { %3986 = vmatmul.mubr.bf16.gmra.mxu0 %v4367_v37  ;;  %v4166_v54 = vmax.f32 %v3924_v19, 0.0 }
 0x39e   :  { %v2425_v27 = vpop.permute.xlu1 %2424  ;;  %v3398_v20 = vld [vmem:[#allocation2 + $0x1a8] sm:$0xff]  ;;  %v4051_v21 = vpop.f32.mrf.mxu1  ;;  %v2904_v59 = vrot.slane %v2903_v39, 4  ;;  %v2928_v24 = vrot.slane %v2927_v10, 4  ;;  %4431 = vmatprep.mubr.msk.bf16.mxu0 %vm3776_vm14, %v4533_v34 }
 0x39f   :  { %2594 = vst.msk [vmem:[#allocation2 + $0xb8] sm:$0xf] %vm2570_vm11, %v2425_v27  ;;  %v4399_v41 = vcombine.low %v3397_v51, %v3398_v20  ;;  %v4229_v33 = vadd.f32 %v7520_v8, %v4166_v54  ;;  %v4052_v42 = vadd.f32 %v7450_v18, %v4051_v21  ;;  %v2487_v25 = vpop.permute.xlu0 %2486  ;;  %v3926_v4 = vpop.f32.mrf.mxu0 }
 0x3a0   :  { %2625 = vst.msk [vmem:[#allocation2 + $0x1b0] sm:$0xf] %vm2570_vm11, %v2487_v25  ;;  %v3927_v26 = vadd.f32 %v7450_v18, %v3926_v4  ;;  %2701 = vrot.lane.b32.xlu1 %v7288_v45, %s4585_s11  ;;  %v4053_v31 = vpop.f32.mrf.mxu1  ;;  %2699 = vrot.lane.b32.xlu0 %v7294_v63, %s4585_s11  ;;  %v2909_v12 = vsel %vm4661_vm3, %v2904_v59, %v7549_v7 }
 0x3a1   :  { %4114 = vmatmul.mubr.bf16.gmra.mxu1 %v4399_v41  ;;  %v4198_v23 = vmax.f32 %v4052_v42, 0.0  ;;  %v3928_v8 = vpop.f32.mrf.mxu0  ;;  %v2933_v13 = vsel %vm4661_vm3, %v2928_v24, %v2932_v11  ;;  %v4535_v11 = vld [vmem:[#allocation2 + $0x1b4] ss:$8 sps:$4 sm:$0xff]   ;;  %v4537_v24 = vld [vmem:[#allocation2 + $0xc4] ss:$8 sps:$4 sm:$0xff]  }
 0x3a2   :  { %v2489_v17 = vpop.permute.xlu1 %2488  ;;  %v4167_v57 = vmax.f32 %v3927_v26, 0.0  ;;  %v4054_v40 = vpop.f32.mrf.mxu1  ;;  %4447 = vmatprep.mubr.msk.bf16.mxu1 %vm3776_vm14, %v4535_v11 }
 0x3a3   :  { %2626 = vst.msk [vmem:[#allocation2 + $0x1b8] sm:$0xf] %vm2570_vm11, %v2489_v17  ;;  %v4266_v56 = vadd.f32 %v7531_v38, %v4198_v23  ;;  %v4055_v45 = vadd.f32 %v7450_v18, %v4054_v40  ;;  %v2684_v15 = vpop.permute.xlu0 %2683  ;;  %v2938_v38 = vrot.slane %v2937_v29, 4 }
 0x3a4   :  { %v4230_v49 = vadd.f32 %v4229_v33, %v4167_v57  ;;  %2854 = vst.msk [vmem:[#allocation2 + $0xb0] sm:$0xf] %vm2831_vm12, %v2684_v15  ;;  %2765 = vrot.lane.b32.xlu1 %v7309_v1, %s4585_s11  ;;  %v4056_v63 = vpop.f32.mrf.mxu1  ;;  %2763 = vrot.lane.b32.xlu0 %v7314_v61, %s4585_s11 }
 0x3a5   :  { %v4199_v53 = vmax.f32 %v4055_v45, 0.0  ;;  %v2943_v61 = vsel %vm4661_vm3, %v2938_v38, %v2942_v30 }
 0x3a6   :  { %v2686_v3 = vpop.permute.xlu1 %2685 }
 0x3a7   :  { %2855 = vst.msk [vmem:[#allocation2 + $0xb8] sm:$0xf] %vm2831_vm12, %v2686_v3  ;;  %v4267_v52 = vadd.f32 %v4266_v56, %v4199_v53  ;;  %v2748_v1 = vpop.permute.xlu0 %2747 }
 0x3a8   :  { %2886 = vst.msk [vmem:[#allocation2 + $0x1b0] sm:$0xf] %vm2831_vm12, %v2748_v1  ;;  %3006 = vrot.lane.b32.xlu1 %v2919_v16, %s4586_s9  ;;  %3004 = vrot.lane.b32.xlu0 %v2909_v12, %s4586_s9 }
 0x3aa   :  { %v2750_v5 = vpop.permute.xlu1 %2749 }
 0x3ab   :  { %2887 = vst.msk [vmem:[#allocation2 + $0x1b8] sm:$0xf] %vm2831_vm12, %v2750_v5  ;;  %v2989_v37 = vpop.permute.xlu0 %2988 }
 0x3ac   :  { %3159 = vst.msk [vmem:[#allocation2 + $0xb0] sm:$0xf] %vm3136_vm13, %v2989_v37  ;;  %3070 = vrot.lane.b32.xlu1 %v2943_v61, %s4586_s9  ;;  %3068 = vrot.lane.b32.xlu0 %v2933_v13, %s4586_s9 }
 0x3ae   :  { %v2991_v0 = vpop.permute.xlu1 %2990 }
 0x3af   :  { %3160 = vst.msk [vmem:[#allocation2 + $0xb8] sm:$0xf] %vm3136_vm13, %v2991_v0  ;;  %v3053_v50 = vpop.permute.xlu0 %3052 }
 0x3b0   :  { %3191 = vst.msk [vmem:[#allocation2 + $0x1b0] sm:$0xf] %vm3136_vm13, %v3053_v50 }
 0x3b2   :  { %v3055_v7 = vpop.permute.xlu1 %3054  ;;  %v3931_v22 = vpop.f32.mrf.mxu0 }
 0x3b3   :  { %3192 = vst.msk [vmem:[#allocation2 + $0x1b8] sm:$0xf] %vm3136_vm13, %v3055_v7  ;;  %v2218_v2 = vpop.permute.xlu0 %2217  ;;  %v3932_v14 = vadd.f32 %v7450_v18, %v3931_v22  ;;  %v3367_v20 = vld [vmem:[#allocation2 + $0xb0] sm:$0xff] }
 0x3b4   :  { %2354 = vst.msk [vmem:[#allocation2 + $0x1c0] sm:$0xf] %vm2297_vm10, %v2218_v2  ;;  %v3933_v36 = vpop.f32.mrf.mxu0 }
 0x3b5   :  { %v4168_v28 = vmax.f32 %v3932_v14, 0.0 }
 0x3b6   :  { %v2220_v62 = vpop.permute.xlu1 %2219  ;;  %v3368_v27 = vld [vmem:[#allocation2 + $0xb8] sm:$0xff]  ;;  %v4059_v19 = vpop.f32.mrf.mxu1 }
 0x3b7   :  { %2355 = vst.msk [vmem:[#allocation2 + $0x1c8] sm:$0xf] %vm2297_vm10, %v2220_v62  ;;  %v4369_v32 = vcombine.low %v3367_v20, %v3368_v27  ;;  %v4231_v9 = vadd.f32 %v4230_v49, %v4168_v28  ;;  %v4060_v35 = vadd.f32 %v7450_v18, %v4059_v19  ;;  %v2427_v41 = vpop.permute.xlu0 %2426  ;;  %v3934_v58 = vpop.f32.mrf.mxu0  ;;  %v3399_v54 = vld [vmem:[#allocation2 + $0x1b0] sm:$0xff]  ;;  %v4539_v20 = vld [vmem:[#allocation2 + $0x1c4] ss:$8 sps:$4 sm:$0xff]  }
 0x3b8   :  { %2595 = vst.msk [vmem:[#allocation2 + $0xc0] sm:$0xf] %vm2570_vm11, %v2427_v41  ;;  %v3935_v47 = vadd.f32 %v7450_v18, %v3934_v58  ;;  %v4061_v46 = vpop.f32.mrf.mxu1 }
 0x3b9   :  { %3994 = vmatmul.mubr.bf16.gmra.mxu0 %v4369_v32  ;;  %v4200_v21 = vmax.f32 %v4060_v35, 0.0  ;;  %v3936_v60 = vpop.f32.mrf.mxu0 }
 0x3ba   :  { %v2429_v43 = vpop.permute.xlu1 %2428  ;;  %v3400_v51 = vld [vmem:[#allocation2 + $0x1b8] sm:$0xff]  ;;  %v4169_v6 = vmax.f32 %v3935_v47, 0.0  ;;  %v4062_v33 = vpop.f32.mrf.mxu1  ;;  %4432 = vmatprep.mubr.msk.bf16.mxu0 %vm3776_vm14, %v4537_v24 }
 0x3bb   :  { %2596 = vst.msk [vmem:[#allocation2 + $0xc8] sm:$0xf] %vm2570_vm11, %v2429_v43  ;;  %v4401_v17 = vcombine.low %v3399_v54, %v3400_v51  ;;  %v4268_v42 = vadd.f32 %v4267_v52, %v4200_v21  ;;  %v4063_v25 = vadd.f32 %v7450_v18, %v4062_v33  ;;  %v2491_v4 = vpop.permute.xlu0 %2490 }
 0x3bc   :  { %v4232_v26 = vadd.f32 %v4231_v9, %v4169_v6  ;;  %2627 = vst.msk [vmem:[#allocation2 + $0x1c0] sm:$0xf] %vm2570_vm11, %v2491_v4  ;;  %v4064_v31 = vpop.f32.mrf.mxu1 }
 0x3bd   :  { %4122 = vmatmul.mubr.bf16.gmra.mxu1 %v4401_v17  ;;  %v4201_v55 = vmax.f32 %v4063_v25, 0.0 }
 0x3be   :  { %v2493_v39 = vpop.permute.xlu1 %2492  ;;  %4448 = vmatprep.mubr.msk.bf16.mxu1 %vm3776_vm14, %v4539_v20 }
 0x3bf   :  { %2628 = vst.msk [vmem:[#allocation2 + $0x1c8] sm:$0xf] %vm2570_vm11, %v2493_v39  ;;  %v4269_v8 = vadd.f32 %v4268_v42, %v4201_v55  ;;  %v2688_v44 = vpop.permute.xlu0 %2687 }
 0x3c0   :  { %2856 = vst.msk [vmem:[#allocation2 + $0xc0] sm:$0xf] %vm2831_vm12, %v2688_v44 }
 0x3c2   :  { %v2690_v23 = vpop.permute.xlu1 %2689 }
 0x3c3   :  { %2857 = vst.msk [vmem:[#allocation2 + $0xc8] sm:$0xf] %vm2831_vm12, %v2690_v23  ;;  %v2752_v48 = vpop.permute.xlu0 %2751 }
 0x3c4   :  { %2888 = vst.msk [vmem:[#allocation2 + $0x1c0] sm:$0xf] %vm2831_vm12, %v2752_v48 }
 0x3c6   :  { %v2754_v29 = vpop.permute.xlu1 %2753 }
 0x3c7   :  { %2889 = vst.msk [vmem:[#allocation2 + $0x1c8] sm:$0xf] %vm2831_vm12, %v2754_v29  ;;  %v2993_v3 = vpop.permute.xlu0 %2992 }
 0x3c8   :  { %3161 = vst.msk [vmem:[#allocation2 + $0xc0] sm:$0xf] %vm3136_vm13, %v2993_v3 }
 0x3ca   :  { %v2995_v57 = vpop.permute.xlu1 %2994  ;;  %v3939_v59 = vpop.f32.mrf.mxu0 }
 0x3cb   :  { %3162 = vst.msk [vmem:[#allocation2 + $0xc8] sm:$0xf] %vm3136_vm13, %v2995_v57  ;;  %v3057_v10 = vpop.permute.xlu0 %3056  ;;  %v3940_v56 = vadd.f32 %v7450_v18, %v3939_v59  ;;  %v4541_v59 = vld [vmem:[#allocation2 + $0xd4] ss:$8 sps:$4 sm:$0xff]  }
 0x3cc   :  { %3193 = vst.msk [vmem:[#allocation2 + $0x1c0] sm:$0xf] %vm3136_vm13, %v3057_v10  ;;  %v3941_v45 = vpop.f32.mrf.mxu0 }
 0x3cd   :  { %v4170_v15 = vmax.f32 %v3940_v56, 0.0 }
 0x3ce   :  { %v3059_v40 = vpop.permute.xlu1 %3058  ;;  %v4067_v63 = vpop.f32.mrf.mxu1 }
 0x3cf   :  { %3194 = vst.msk [vmem:[#allocation2 + $0x1c8] sm:$0xf] %vm3136_vm13, %v3059_v40  ;;  %v4233_v16 = vadd.f32 %v4232_v26, %v4170_v15  ;;  %v4068_v38 = vadd.f32 %v7450_v18, %v4067_v63  ;;  %v2222_v30 = vpop.permute.xlu0 %2221  ;;  %v3942_v5 = vpop.f32.mrf.mxu0  ;;  %v3369_v12 = vld [vmem:[#allocation2 + $0xc0] sm:$0xff] }
 0x3d0   :  { %2356 = vst.msk [vmem:[#allocation2 + $0x1d0] sm:$0xf] %vm2297_vm10, %v2222_v30  ;;  %v3943_v52 = vadd.f32 %v7450_v18, %v3942_v5  ;;  %v4069_v1 = vpop.f32.mrf.mxu1  ;;  %v4543_v30 = vld [vmem:[#allocation2 + $0x1d4] ss:$8 sps:$4 sm:$0xff]  }
 0x3d1   :  { %v4202_v0 = vmax.f32 %v4068_v38, 0.0  ;;  %v3944_v13 = vpop.f32.mrf.mxu0 }
 0x3d2   :  { %v2224_v49 = vpop.permute.xlu1 %2223  ;;  %v3370_v53 = vld [vmem:[#allocation2 + $0xc8] sm:$0xff]  ;;  %v4171_v37 = vmax.f32 %v3943_v52, 0.0  ;;  %v4070_v50 = vpop.f32.mrf.mxu1 }
 0x3d3   :  { %2357 = vst.msk [vmem:[#allocation2 + $0x1d8] sm:$0xf] %vm2297_vm10, %v2224_v49  ;;  %v4371_v61 = vcombine.low %v3369_v12, %v3370_v53  ;;  %v4270_v22 = vadd.f32 %v4269_v8, %v4202_v0  ;;  %v4071_v27 = vadd.f32 %v7450_v18, %v4070_v50  ;;  %v2431_v2 = vpop.permute.xlu0 %2430  ;;  %v3401_v14 = vld [vmem:[#allocation2 + $0x1c0] sm:$0xff] }
 0x3d4   :  { %v4234_v34 = vadd.f32 %v4233_v16, %v4171_v37  ;;  %2597 = vst.msk [vmem:[#allocation2 + $0xd0] sm:$0xf] %vm2570_vm11, %v2431_v2  ;;  %v4072_v36 = vpop.f32.mrf.mxu1 }
 0x3d5   :  { %4002 = vmatmul.mubr.bf16.gmra.mxu0 %v4371_v61  ;;  %v4203_v28 = vmax.f32 %v4071_v27, 0.0 }
 0x3d6   :  { %v2433_v7 = vpop.permute.xlu1 %2432  ;;  %v3402_v62 = vld [vmem:[#allocation2 + $0x1c8] sm:$0xff]  ;;  %4433 = vmatprep.mubr.msk.bf16.mxu0 %vm3776_vm14, %v4541_v59 }
 0x3d7   :  { %2598 = vst.msk [vmem:[#allocation2 + $0xd8] sm:$0xf] %vm2570_vm11, %v2433_v7  ;;  %v4403_v32 = vcombine.low %v3401_v14, %v3402_v62  ;;  %v4271_v19 = vadd.f32 %v4270_v22, %v4203_v28  ;;  %v2495_v51 = vpop.permute.xlu0 %2494 }
 0x3d8   :  { %2629 = vst.msk [vmem:[#allocation2 + $0x1d0] sm:$0xf] %vm2570_vm11, %v2495_v51 }
 0x3d9   :  { %4130 = vmatmul.mubr.bf16.gmra.mxu1 %v4403_v32 }
 0x3da   :  { %v2497_v43 = vpop.permute.xlu1 %2496  ;;  %4449 = vmatprep.mubr.msk.bf16.mxu1 %vm3776_vm14, %v4543_v30 }
 0x3db   :  { %2630 = vst.msk [vmem:[#allocation2 + $0x1d8] sm:$0xf] %vm2570_vm11, %v2497_v43  ;;  %v2692_v35 = vpop.permute.xlu0 %2691 }
 0x3dc   :  { %2858 = vst.msk [vmem:[#allocation2 + $0xd0] sm:$0xf] %vm2831_vm12, %v2692_v35 }
 0x3de   :  { %v2694_v9 = vpop.permute.xlu1 %2693 }
 0x3df   :  { %2859 = vst.msk [vmem:[#allocation2 + $0xd8] sm:$0xf] %vm2831_vm12, %v2694_v9  ;;  %v2756_v58 = vpop.permute.xlu0 %2755 }
 0x3e0   :  { %2890 = vst.msk [vmem:[#allocation2 + $0x1d0] sm:$0xf] %vm2831_vm12, %v2756_v58 }
 0x3e2   :  { %v2758_v41 = vpop.permute.xlu1 %2757  ;;  %v3947_v11 = vpop.f32.mrf.mxu0 }
 0x3e3   :  { %2891 = vst.msk [vmem:[#allocation2 + $0x1d8] sm:$0xf] %vm2831_vm12, %v2758_v41  ;;  %v2997_v47 = vpop.permute.xlu0 %2996  ;;  %v3948_v46 = vadd.f32 %v7450_v18, %v3947_v11 }
 0x3e4   :  { %3163 = vst.msk [vmem:[#allocation2 + $0xd0] sm:$0xf] %vm3136_vm13, %v2997_v47  ;;  %v3949_v17 = vpop.f32.mrf.mxu0 }
 0x3e5   :  { %v4172_v21 = vmax.f32 %v3948_v46, 0.0 }
 0x3e6   :  { %v2999_v54 = vpop.permute.xlu1 %2998  ;;  %v4075_v6 = vpop.f32.mrf.mxu1 }
 0x3e7   :  { %3164 = vst.msk [vmem:[#allocation2 + $0xd8] sm:$0xf] %vm3136_vm13, %v2999_v54  ;;  %v4235_v39 = vadd.f32 %v4234_v34, %v4172_v21  ;;  %v4076_v33 = vadd.f32 %v7450_v18, %v4075_v6  ;;  %v3061_v42 = vpop.permute.xlu0 %3060  ;;  %v3950_v25 = vpop.f32.mrf.mxu0  ;;  %v4545_v6 = vld [vmem:[#allocation2 + $0xe4] ss:$8 sps:$4 sm:$0xff]  }
 0x3e8   :  { %3195 = vst.msk [vmem:[#allocation2 + $0x1d0] sm:$0xf] %vm3136_vm13, %v3061_v42  ;;  %v3951_v4 = vadd.f32 %v7450_v18, %v3950_v25  ;;  %v4077_v26 = vpop.f32.mrf.mxu1 }
 0x3e9   :  { %v4204_v31 = vmax.f32 %v4076_v33, 0.0  ;;  %v3952_v55 = vpop.f32.mrf.mxu0  ;;  %v4547_v26 = vld [vmem:[#allocation2 + $0x1e4] ss:$8 sps:$4 sm:$0xff]  }
 0x3ea   :  { %v3063_v60 = vpop.permute.xlu1 %3062  ;;  %v4173_v23 = vmax.f32 %v3951_v4, 0.0  ;;  %v4078_v44 = vpop.f32.mrf.mxu1 }
 0x3eb   :  { %3196 = vst.msk [vmem:[#allocation2 + $0x1d8] sm:$0xf] %vm3136_vm13, %v3063_v60  ;;  %v4272_v48 = vadd.f32 %v4271_v19, %v4204_v31  ;;  %v4079_v57 = vadd.f32 %v7450_v18, %v4078_v44  ;;  %v2226_v3 = vpop.permute.xlu0 %2225  ;;  %v3371_v40 = vld [vmem:[#allocation2 + $0xd0] sm:$0xff] }
 0x3ec   :  { %v4236_v10 = vadd.f32 %v4235_v39, %v4173_v23  ;;  %2358 = vst.msk [vmem:[#allocation2 + $0x1e0] sm:$0xf] %vm2297_vm10, %v2226_v3  ;;  %v4080_v56 = vpop.f32.mrf.mxu1 }
 0x3ed   :  { %v4205_v15 = vmax.f32 %v4079_v57, 0.0 }
 0x3ee   :  { %v2228_v8 = vpop.permute.xlu1 %2227  ;;  %v3372_v29 = vld [vmem:[#allocation2 + $0xd8] sm:$0xff] }
 0x3ef   :  { %2359 = vst.msk [vmem:[#allocation2 + $0x1e8] sm:$0xf] %vm2297_vm10, %v2228_v8  ;;  %v4373_v45 = vcombine.low %v3371_v40, %v3372_v29  ;;  %v4273_v53 = vadd.f32 %v4272_v48, %v4205_v15  ;;  %v2435_v16 = vpop.permute.xlu0 %2434  ;;  %v3403_v38 = vld [vmem:[#allocation2 + $0x1d0] sm:$0xff] }
 0x3f0   :  { %2599 = vst.msk [vmem:[#allocation2 + $0xe0] sm:$0xf] %vm2570_vm11, %v2435_v16 }
 0x3f1   :  { %4010 = vmatmul.mubr.bf16.gmra.mxu0 %v4373_v45 }
 0x3f2   :  { %v2437_v49 = vpop.permute.xlu1 %2436  ;;  %v3404_v63 = vld [vmem:[#allocation2 + $0x1d8] sm:$0xff]  ;;  %4434 = vmatprep.mubr.msk.bf16.mxu0 %vm3776_vm14, %v4545_v6 }
 0x3f3   :  { %2600 = vst.msk [vmem:[#allocation2 + $0xe8] sm:$0xf] %vm2570_vm11, %v2437_v49  ;;  %v4405_v5 = vcombine.low %v3403_v38, %v3404_v63  ;;  %v2499_v24 = vpop.permute.xlu0 %2498 }
 0x3f4   :  { %2631 = vst.msk [vmem:[#allocation2 + $0x1e0] sm:$0xf] %vm2570_vm11, %v2499_v24 }
 0x3f5   :  { %4138 = vmatmul.mubr.bf16.gmra.mxu1 %v4405_v5 }
 0x3f6   :  { %v2501_v12 = vpop.permute.xlu1 %2500  ;;  %4450 = vmatprep.mubr.msk.bf16.mxu1 %vm3776_vm14, %v4547_v26 }
 0x3f7   :  { %2632 = vst.msk [vmem:[#allocation2 + $0x1e8] sm:$0xf] %vm2570_vm11, %v2501_v12  ;;  %v2696_v1 = vpop.permute.xlu0 %2695 }
 0x3f8   :  { %2860 = vst.msk [vmem:[#allocation2 + $0xe0] sm:$0xf] %vm2831_vm12, %v2696_v1 }
 0x3fa   :  { %v2698_v52 = vpop.permute.xlu1 %2697  ;;  %v3955_v0 = vpop.f32.mrf.mxu0 }
 0x3fb   :  { %2861 = vst.msk [vmem:[#allocation2 + $0xe8] sm:$0xf] %vm2831_vm12, %v2698_v52  ;;  %v2760_v13 = vpop.permute.xlu0 %2759  ;;  %v3956_v37 = vadd.f32 %v7450_v18, %v3955_v0 }
 0x3fc   :  { %2892 = vst.msk [vmem:[#allocation2 + $0x1e0] sm:$0xf] %vm2831_vm12, %v2760_v13  ;;  %v3957_v7 = vpop.f32.mrf.mxu0 }
 0x3fd   :  { %v4174_v50 = vmax.f32 %v3956_v37, 0.0 }
 0x3fe   :  { %v2762_v61 = vpop.permute.xlu1 %2761  ;;  %v4083_v22 = vpop.f32.mrf.mxu1 }
 0x3ff   :  { %2893 = vst.msk [vmem:[#allocation2 + $0x1e8] sm:$0xf] %vm2831_vm12, %v2762_v61  ;;  %v4237_v27 = vadd.f32 %v4236_v10, %v4174_v50  ;;  %v4084_v2 = vadd.f32 %v7450_v18, %v4083_v22  ;;  %v3001_v14 = vpop.permute.xlu0 %3000  ;;  %v3958_v20 = vpop.f32.mrf.mxu0  ;;  %v4549_v50 = vld [vmem:[#allocation2 + $0xf4] ss:$8 sps:$4 sm:$0xff]  }
 0x400   :  { %3165 = vst.msk [vmem:[#allocation2 + $0xe0] sm:$0xf] %vm3136_vm13, %v3001_v14  ;;  %v3959_v34 = vadd.f32 %v7450_v18, %v3958_v20  ;;  %v4085_v36 = vpop.f32.mrf.mxu1  ;;  %v4552_v22 = vld [vmem:[#allocation2 + $0x1f4] ss:$8 sps:$4 sm:$0xff]  }
 0x401   :  { %v4206_v32 = vmax.f32 %v4084_v2, 0.0  ;;  %v3960_v28 = vpop.f32.mrf.mxu0  ;;  %v7694_v2 = vld [vmem:[%s7733_s2] ss:$0 sm:$0xff] }
 0x402   :  { %v3003_v62 = vpop.permute.xlu1 %3002  ;;  %v4175_v43 = vmax.f32 %v3959_v34, 0.0  ;;  %v4086_v51 = vpop.f32.mrf.mxu1 }
 0x403   :  { %3166 = vst.msk [vmem:[#allocation2 + $0xe8] sm:$0xf] %vm3136_vm13, %v3003_v62  ;;  %v4274_v9 = vadd.f32 %v4273_v53, %v4206_v32  ;;  %v4087_v35 = vadd.f32 %v7450_v18, %v4086_v51  ;;  %v3065_v41 = vpop.permute.xlu0 %3064 }
 0x404   :  { %v4238_v58 = vadd.f32 %v4237_v27, %v4175_v43  ;;  %3197 = vst.msk [vmem:[#allocation2 + $0x1e0] sm:$0xf] %vm3136_vm13, %v3065_v41  ;;  %v4088_v54 = vpop.f32.mrf.mxu1 }
 0x405   :  { %v4207_v11 = vmax.f32 %v4087_v35, 0.0 }
 0x406   :  { %v3067_v19 = vpop.permute.xlu1 %3066 }
 0x407   :  { %3198 = vst.msk [vmem:[#allocation2 + $0x1e8] sm:$0xf] %vm3136_vm13, %v3067_v19  ;;  %v4275_v17 = vadd.f32 %v4274_v9, %v4207_v11  ;;  %v2230_v21 = vpop.permute.xlu0 %2229  ;;  %v3373_v60 = vld [vmem:[#allocation2 + $0xe0] sm:$0xff] }
 0x408   :  { %2360 = vst.msk [vmem:[#allocation2 + $0x1f0] sm:$0xf] %vm2297_vm10, %v2230_v21 }
 0x40a   :  { %v2232_v47 = vpop.permute.xlu1 %2231  ;;  %v3374_v46 = vld [vmem:[#allocation2 + $0xe8] sm:$0xff] }
 0x40b   :  { %2361 = vst.msk [vmem:[#allocation2 + $0x1f8] sm:$0xf] %vm2297_vm10, %v2232_v47  ;;  %v4375_v39 = vcombine.low %v3373_v60, %v3374_v46  ;;  %v2439_v25 = vpop.permute.xlu0 %2438  ;;  %v3405_v4 = vld [vmem:[#allocation2 + $0x1e0] sm:$0xff] }
 0x40c   :  { %2601 = vst.msk [vmem:[#allocation2 + $0xf0] sm:$0xf] %vm2570_vm11, %v2439_v25 }
 0x40d   :  { %4018 = vmatmul.mubr.bf16.gmra.mxu0 %v4375_v39 }
 0x40e   :  { %v2441_v33 = vpop.permute.xlu1 %2440  ;;  %v3406_v42 = vld [vmem:[#allocation2 + $0x1e8] sm:$0xff]  ;;  %4435 = vmatprep.mubr.msk.bf16.mxu0 %vm3776_vm14, %v4549_v50 }
 0x40f   :  { %2602 = vst.msk [vmem:[#allocation2 + $0xf8] sm:$0xf] %vm2570_vm11, %v2441_v33  ;;  %v4407_v31 = vcombine.low %v3405_v4, %v3406_v42  ;;  %v2503_v23 = vpop.permute.xlu0 %2502 }
 0x410   :  { %2633 = vst.msk [vmem:[#allocation2 + $0x1f0] sm:$0xf] %vm2570_vm11, %v2503_v23 }
 0x411   :  { %4146 = vmatmul.mubr.bf16.gmra.mxu1 %v4407_v31 }
 0x412   :  { %v2505_v55 = vpop.permute.xlu1 %2504  ;;  %v3963_v44 = vpop.f32.mrf.mxu0  ;;  %4451 = vmatprep.mubr.msk.bf16.mxu1 %vm3776_vm14, %v4552_v22 }
 0x413   :  { %2634 = vst.msk [vmem:[#allocation2 + $0x1f8] sm:$0xf] %vm2570_vm11, %v2505_v55  ;;  %v2700_v29 = vpop.permute.xlu0 %2699  ;;  %v3964_v48 = vadd.f32 %v7450_v18, %v3963_v44 }
 0x414   :  { %2862 = vst.msk [vmem:[#allocation2 + $0xf0] sm:$0xf] %vm2831_vm12, %v2700_v29  ;;  %v3965_v57 = vpop.f32.mrf.mxu0 }
 0x415   :  { %v4176_v3 = vmax.f32 %v3964_v48, 0.0 }
 0x416   :  { %v2702_v8 = vpop.permute.xlu1 %2701  ;;  %v4091_v59 = vpop.f32.mrf.mxu1 }
 0x417   :  { %2863 = vst.msk [vmem:[#allocation2 + $0xf8] sm:$0xf] %vm2831_vm12, %v2702_v8  ;;  %v4239_v10 = vadd.f32 %v4238_v58, %v4176_v3  ;;  %v4092_v56 = vadd.f32 %v7450_v18, %v4091_v59  ;;  %v2764_v45 = vpop.permute.xlu0 %2763  ;;  %v3966_v15 = vpop.f32.mrf.mxu0 }
 0x418   :  { %2894 = vst.msk [vmem:[#allocation2 + $0x1f0] sm:$0xf] %vm2831_vm12, %v2764_v45  ;;  %v3967_v49 = vadd.f32 %v7450_v18, %v3966_v15  ;;  %v4093_v63 = vpop.f32.mrf.mxu1 }
 0x419   :  { %v4208_v53 = vmax.f32 %v4092_v56, 0.0  ;;  %v3968_v16 = vpop.f32.mrf.mxu0 }
 0x41a   :  { %v2766_v40 = vpop.permute.xlu1 %2765  ;;  %v4177_v38 = vmax.f32 %v3967_v49, 0.0  ;;  %v4094_v5 = vpop.f32.mrf.mxu1 }
 0x41b   :  { %2895 = vst.msk [vmem:[#allocation2 + $0x1f8] sm:$0xf] %vm2831_vm12, %v2766_v40  ;;  %v4276_v12 = vadd.f32 %v4275_v17, %v4208_v53  ;;  %v4095_v24 = vadd.f32 %v7450_v18, %v4094_v5  ;;  %v3005_v52 = vpop.permute.xlu0 %3004 }
 0x41c   :  { %v4240_v1 = vadd.f32 %v4239_v10, %v4177_v38  ;;  %3167 = vst.msk [vmem:[#allocation2 + $0xf0] sm:$0xf] %vm3136_vm13, %v3005_v52  ;;  %v4096_v61 = vpop.f32.mrf.mxu1 }
 0x41d   :  { %v4209_v0 = vmax.f32 %v4095_v24, 0.0 }
 0x41e   :  { %v3007_v30 = vpop.permute.xlu1 %3006 }
 0x41f   :  { %3168 = vst.msk [vmem:[#allocation2 + $0xf8] sm:$0xf] %vm3136_vm13, %v3007_v30  ;;  %v4277_v37 = vadd.f32 %v4276_v12, %v4209_v0  ;;  %v3069_v7 = vpop.permute.xlu0 %3068 }
 0x420   :  { %3199 = vst.msk [vmem:[#allocation2 + $0x1f0] sm:$0xf] %vm3136_vm13, %v3069_v7 }
 0x422   :  { %v3071_v13 = vpop.permute.xlu1 %3070 }
 0x423   :  { %3200 = vst.msk [vmem:[#allocation2 + $0x1f8] sm:$0xf] %vm3136_vm13, %v3071_v13 }
 0x426   :  { %v4551_v62 = vld [vmem:[#allocation2 + $0xf0] ss:$8 sps:$4 sm:$0xff]  }
 0x427   :  { %4026 = vmatmul.mubr.bf16.gmra.mxu0 %v4551_v62 }
 0x42a   :  { %v4554_v18 = vld [vmem:[#allocation2 + $0x1f0] ss:$8 sps:$4 sm:$0xff]   ;;  %v3971_v27 = vpop.f32.mrf.mxu0 }
 0x42b   :  { %4154 = vmatmul.mubr.bf16.gmra.mxu1 %v4554_v18  ;;  %v3972_v14 = vadd.f32 %v7694_v2, %v3971_v27 }
 0x42c   :  { %v3973_v20 = vpop.f32.mrf.mxu0 }
 0x42d   :  { %v4178_v34 = vmax.f32 %v3972_v14, 0.0 }
 0x42e   :  { %v3974_v36 = vpop.f32.mrf.mxu0  ;;  %v4099_v32 = vpop.f32.mrf.mxu1 }
 0x42f   :  { %v4241_v28 = vadd.f32 %v4240_v1, %v4178_v34  ;;  %v3975_v43 = vadd.f32 %v7694_v2, %v3974_v36  ;;  %v4100_v19 = vadd.f32 %v7694_v2, %v4099_v32 }
 0x430   :  { %v3976_v51 = vpop.f32.mrf.mxu0  ;;  %v4101_v9 = vpop.f32.mrf.mxu1 }
 0x431   :  { %v4179_v35 = vmax.f32 %v3975_v43, 0.0  ;;  %v4210_v41 = vmax.f32 %v4100_v19, 0.0 }
 0x432   :  { %v4102_v58 = vpop.f32.mrf.mxu1 }
 0x433   :  { %v4242_v54 = vadd.f32 %v4241_v28, %v4179_v35  ;;  %v4278_v11 = vadd.f32 %v4277_v37, %v4210_v41  ;;  %v4103_v47 = vadd.f32 %v7694_v2, %v4102_v58 }
 0x434   :  { %v4104_v46 = vpop.f32.mrf.mxu1 }
 0x435   :  { %v4211_v17 = vmax.f32 %v4103_v47, 0.0 }
 0x437   :  { %v4279_v21 = vadd.f32 %v4278_v11, %v4211_v17 }
 0x442   :  { %v3979_v60 = vpop.f32.mrf.mxu0 }
 0x443   :  { %v3980_v6 = vadd.f32 %v7694_v2, %v3979_v60 }
 0x444   :  { %v3981_v39 = vpop.f32.mrf.mxu0 }
 0x445   :  { %v4180_v33 = vmax.f32 %v3980_v6, 0.0 }
 0x446   :  { %v3982_v42 = vpop.f32.mrf.mxu0  ;;  %v4107_v25 = vpop.f32.mrf.mxu1 }
 0x447   :  { %v4243_v4 = vadd.f32 %v4242_v54, %v4180_v33  ;;  %v3983_v26 = vadd.f32 %v7694_v2, %v3982_v42  ;;  %v4108_v31 = vadd.f32 %v7694_v2, %v4107_v25 }
 0x448   :  { %v3984_v55 = vpop.f32.mrf.mxu0  ;;  %v4109_v23 = vpop.f32.mrf.mxu1 }
 0x449   :  { %v4181_v8 = vmax.f32 %v3983_v26, 0.0  ;;  %v4212_v44 = vmax.f32 %v4108_v31, 0.0 }
 0x44a   :  { %v4110_v29 = vpop.f32.mrf.mxu1 }
 0x44b   :  { %v4244_v48 = vadd.f32 %v4243_v4, %v4181_v8  ;;  %v4280_v57 = vadd.f32 %v4279_v21, %v4212_v44  ;;  %v4111_v3 = vadd.f32 %v7694_v2, %v4110_v29 }
 0x44c   :  { %v4112_v40 = vpop.f32.mrf.mxu1 }
 0x44d   :  { %v4213_v59 = vmax.f32 %v4111_v3, 0.0 }
 0x44f   :  { %v4281_v10 = vadd.f32 %v4280_v57, %v4213_v59 }
 0x45d   :  { %v3987_v56 = vpop.f32.mrf.mxu0 }
 0x45e   :  { %v3988_v45 = vadd.f32 %v7694_v2, %v3987_v56 }
 0x45f   :  { %v3989_v15 = vpop.f32.mrf.mxu0 }
 0x460   :  { %v4182_v49 = vmax.f32 %v3988_v45, 0.0 }
 0x461   :  { %v3990_v63 = vpop.f32.mrf.mxu0  ;;  %v4115_v53 = vpop.f32.mrf.mxu1 }
 0x462   :  { %v4245_v16 = vadd.f32 %v4244_v48, %v4182_v49  ;;  %v3991_v38 = vadd.f32 %v7694_v2, %v3990_v63  ;;  %v4116_v30 = vadd.f32 %v7694_v2, %v4115_v53 }
 0x463   :  { %v3992_v5 = vpop.f32.mrf.mxu0  ;;  %v4117_v12 = vpop.f32.mrf.mxu1 }
 0x464   :  { %v4183_v24 = vmax.f32 %v3991_v38, 0.0  ;;  %v4214_v52 = vmax.f32 %v4116_v30, 0.0 }
 0x465   :  { %v4118_v1 = vpop.f32.mrf.mxu1 }
 0x466   :  { %v4246_v61 = vadd.f32 %v4245_v16, %v4183_v24  ;;  %v4282_v0 = vadd.f32 %v4281_v10, %v4214_v52  ;;  %v4119_v13 = vadd.f32 %v7694_v2, %v4118_v1 }
 0x467   :  { %v4120_v37 = vpop.f32.mrf.mxu1 }
 0x468   :  { %v4215_v7 = vmax.f32 %v4119_v13, 0.0 }
 0x46a   :  { %v4283_v50 = vadd.f32 %v4282_v0, %v4215_v7 }
 0x479   :  { %v3995_v62 = vpop.f32.mrf.mxu0 }
 0x47a   :  { %v3996_v22 = vadd.f32 %v7694_v2, %v3995_v62 }
 0x47b   :  { %v3997_v18 = vpop.f32.mrf.mxu0 }
 0x47c   :  { %v4184_v27 = vmax.f32 %v3996_v22, 0.0 }
 0x47d   :  { %v3998_v14 = vpop.f32.mrf.mxu0  ;;  %v4123_v20 = vpop.f32.mrf.mxu1 }
 0x47e   :  { %v4247_v34 = vadd.f32 %v4246_v61, %v4184_v27  ;;  %v3999_v36 = vadd.f32 %v7694_v2, %v3998_v14  ;;  %v4124_v32 = vadd.f32 %v7694_v2, %v4123_v20 }
 0x47f   :  { %v4000_v28 = vpop.f32.mrf.mxu0  ;;  %v4125_v43 = vpop.f32.mrf.mxu1 }
 0x480   :  { %v4185_v19 = vmax.f32 %v3999_v36, 0.0  ;;  %v4216_v51 = vmax.f32 %v4124_v32, 0.0 }
 0x481   :  { %v4126_v9 = vpop.f32.mrf.mxu1 }
 0x482   :  { %v4248_v35 = vadd.f32 %v4247_v34, %v4185_v19  ;;  %v4284_v41 = vadd.f32 %v4283_v50, %v4216_v51  ;;  %v4127_v58 = vadd.f32 %v7694_v2, %v4126_v9 }
 0x483   :  { %v4128_v54 = vpop.f32.mrf.mxu1 }
 0x484   :  { %v4217_v11 = vmax.f32 %v4127_v58, 0.0 }
 0x486   :  { %v4285_v47 = vadd.f32 %v4284_v41, %v4217_v11 }
 0x495   :  { %v4003_v46 = vpop.f32.mrf.mxu0 }
 0x496   :  { %v4004_v17 = vadd.f32 %v7694_v2, %v4003_v46 }
 0x497   :  { %v4005_v21 = vpop.f32.mrf.mxu0 }
 0x498   :  { %v4186_v60 = vmax.f32 %v4004_v17, 0.0 }
 0x499   :  { %v4006_v6 = vpop.f32.mrf.mxu0  ;;  %v4131_v39 = vpop.f32.mrf.mxu1 }
 0x49a   :  { %v4249_v33 = vadd.f32 %v4248_v35, %v4186_v60  ;;  %v4007_v42 = vadd.f32 %v7694_v2, %v4006_v6  ;;  %v4132_v25 = vadd.f32 %v7694_v2, %v4131_v39 }
 0x49b   :  { %v4008_v4 = vpop.f32.mrf.mxu0  ;;  %v4133_v26 = vpop.f32.mrf.mxu1 }
 0x49c   :  { %v4187_v31 = vmax.f32 %v4007_v42, 0.0  ;;  %v4218_v55 = vmax.f32 %v4132_v25, 0.0 }
 0x49d   :  { %v4134_v23 = vpop.f32.mrf.mxu1 }
 0x49e   :  { %v4250_v8 = vadd.f32 %v4249_v33, %v4187_v31  ;;  %v4286_v44 = vadd.f32 %v4285_v47, %v4218_v55  ;;  %v4135_v29 = vadd.f32 %v7694_v2, %v4134_v23 }
 0x49f   :  { %v4136_v48 = vpop.f32.mrf.mxu1 }
 0x4a0   :  { %v4219_v57 = vmax.f32 %v4135_v29, 0.0 }
 0x4a2   :  { %v4287_v3 = vadd.f32 %v4286_v44, %v4219_v57 }
 0x4b1   :  { %v4011_v40 = vpop.f32.mrf.mxu0 }
 0x4b2   :  { %v4012_v1 = vadd.f32 %v7694_v2, %v4011_v40 }
 0x4b3   :  { %v4013_v59 = vpop.f32.mrf.mxu0 }
 0x4b4   :  { %v4188_v13 = vmax.f32 %v4012_v1, 0.0 }
 0x4b5   :  { %v4014_v10 = vpop.f32.mrf.mxu0  ;;  %v4139_v56 = vpop.f32.mrf.mxu1 }
 0x4b6   :  { %v4015_v61 = vadd.f32 %v7694_v2, %v4014_v10  ;;  %v4140_v0 = vadd.f32 %v7694_v2, %v4139_v56  ;;  %v4251_v18 = vadd.f32 %v4250_v8, %v4188_v13 }
 0x4b7   :  { %v4016_v45 = vpop.f32.mrf.mxu0  ;;  %v4141_v15 = vpop.f32.mrf.mxu1 }
 0x4b8   :  { %v4189_v50 = vmax.f32 %v4015_v61, 0.0  ;;  %v4220_v22 = vmax.f32 %v4140_v0, 0.0 }
 0x4b9   :  { %v4142_v49 = vpop.f32.mrf.mxu1 }
 0x4ba   :  { %v4143_v7 = vadd.f32 %v7694_v2, %v4142_v49  ;;  %v4252_v36 = vadd.f32 %v4251_v18, %v4189_v50  ;;  %v4288_v19 = vadd.f32 %v4287_v3, %v4220_v22 }
 0x4bb   :  { %v4144_v63 = vpop.f32.mrf.mxu1 }
 0x4bc   :  { %v4221_v20 = vmax.f32 %v4143_v7, 0.0 }
 0x4be   :  { %v4289_v58 = vadd.f32 %v4288_v19, %v4221_v20 }
 0x4cd   :  { %v4019_v53 = vpop.f32.mrf.mxu0 }
 0x4ce   :  { %v4020_v37 = vadd.f32 %v7694_v2, %v4019_v53 }
 0x4cf   :  { %v4021_v16 = vpop.f32.mrf.mxu0 }
 0x4d0   :  { %v4190_v27 = vmax.f32 %v4020_v37, 0.0 }
 0x4d1   :  { %v4022_v38 = vpop.f32.mrf.mxu0  ;;  %v4147_v30 = vpop.f32.mrf.mxu1 }
 0x4d2   :  { %v4023_v62 = vadd.f32 %v7694_v2, %v4022_v38  ;;  %v4148_v14 = vadd.f32 %v7694_v2, %v4147_v30  ;;  %v4253_v9 = vadd.f32 %v4252_v36, %v4190_v27 }
 0x4d3   :  { %v4024_v5 = vpop.f32.mrf.mxu0  ;;  %v4149_v12 = vpop.f32.mrf.mxu1 }
 0x4d4   :  { %v4191_v32 = vmax.f32 %v4023_v62, 0.0  ;;  %v4222_v35 = vmax.f32 %v4148_v14, 0.0 }
 0x4d5   :  { %v4150_v24 = vpop.f32.mrf.mxu1 }
 0x4d6   :  { %v4151_v28 = vadd.f32 %v7694_v2, %v4150_v24  ;;  %v4254_v47 = vadd.f32 %v4253_v9, %v4191_v32  ;;  %v4290_v39 = vadd.f32 %v4289_v58, %v4222_v35 }
 0x4d7   :  { %v4152_v52 = vpop.f32.mrf.mxu1 }
 0x4d8   :  { %v4223_v46 = vmax.f32 %v4151_v28, 0.0 }
 0x4da   :  { %v4291_v26 = vadd.f32 %v4290_v39, %v4223_v46 }
 0x4e7   :  { %v4027_v34 = vpop.f32.mrf.mxu0 }
 0x4e8   :  { %v4028_v43 = vadd.f32 %v7694_v2, %v4027_v34 }
 0x4e9   :  { %v4029_v51 = vpop.f32.mrf.mxu0 }
 0x4ea   :  { %v4192_v41 = vmax.f32 %v4028_v43, 0.0 }
 0x4eb   :  { %v4030_v54 = vpop.f32.mrf.mxu0  ;;  %v4155_v11 = vpop.f32.mrf.mxu1 }
 0x4ec   :  { %v4031_v17 = vadd.f32 %v7694_v2, %v4030_v54  ;;  %v4156_v21 = vadd.f32 %v7694_v2, %v4155_v11  ;;  %v4255_v33 = vadd.f32 %v4254_v47, %v4192_v41 }
 0x4ed   :  { %v4032_v60 = vpop.f32.mrf.mxu0  ;;  %v4157_v6 = vpop.f32.mrf.mxu1 }
 0x4ee   :  { %v4193_v42 = vmax.f32 %v4031_v17, 0.0  ;;  %v4224_v25 = vmax.f32 %v4156_v21, 0.0 }
 0x4ef   :  { %v4158_v4 = vpop.f32.mrf.mxu1 }
 0x4f0   :  { %v4256_v31 = vadd.f32 %v4255_v33, %v4193_v42  ;;  %v4159_v55 = vadd.f32 %v7694_v2, %v4158_v4  ;;  %v4292_v44 = vadd.f32 %v4291_v26, %v4224_v25 }
 0x4f1   :  { %v4160_v23 = vpop.f32.mrf.mxu1 }
 0x4f2   :  { %v4257_v8 = vrot.slane %v4256_v31, 4  ;;  %v4225_v29 = vmax.f32 %v4159_v55, 0.0 }
 0x4f4   :  { %v4258_v48 = vadd.f32 %v4257_v8, %v4256_v31  ;;  %v4293_v57 = vadd.f32 %v4292_v44, %v4225_v29 }
 0x4f6   :  { %v4259_v3 = vrot.slane %v4258_v48, 2  ;;  %v4294_v40 = vrot.slane %v4293_v57, 4 }
 0x4f8   :  { %v4260_v59 = vadd.f32 %v4259_v3, %v4258_v48  ;;  %v4295_v10 = vadd.f32 %v4294_v40, %v4293_v57 }
 0x4fa   :  { %v4296_v56 = vrot.slane %v4295_v10, 2  ;;  %v4261_v45 = vrot.slane %v4260_v59, 1 }
 0x4fc   :  { %v4297_v15 = vadd.f32 %v4296_v56, %v4295_v10  ;;  %v4262_v63 = vadd.f32 %v4261_v45, %v4260_v59 }
 0x4fe   :  { %v4298_v49 = vrot.slane %v4297_v15, 1 }
 0x500   :  { %v4299_v53 = vadd.f32 %v4298_v49, %v4297_v15 }
 0x502   :  { %v4303_v16 = vsel %vm4302_vm15, %v4299_v53, %v4262_v63 }
 0x503   :  { %4305 = vst [vmem:[%s7734_s3] sm:$0x3] %v4303_v16 }

</bundles_post_ra>
